<compile_context>
chip_gen: v7x
topology: tpu7x:2x2x1
jax: 0.10.0
libtpu: 0.0.40
codegen_flags: <defaults>
</compile_context>

<pallas_src>
import functools

import jax
import jax.numpy as jnp
from jax.experimental import pallas as pl
from jax.experimental.pallas import tpu as pltpu  # noqa: F401  (TPU backend)


# ----------------------------------------------------------------------------
# Helpers
# ----------------------------------------------------------------------------
def _round_up(n, m):
    return ((n + m - 1) // m) * m


# ----------------------------------------------------------------------------
# Pallas kernels
# ----------------------------------------------------------------------------
def _lstm_cell_step(x_t, h, c, w_ih_ref, w_hh_ref, b_ref, h_pad):
    """One LSTM time step. Weights are pre-transposed and gate-packed as
    [i | f | o | g] along the last axis (each block h_pad lanes wide)."""
    gates = (
        jnp.dot(x_t, w_ih_ref[...], preferred_element_type=jnp.float32)
        + jnp.dot(h, w_hh_ref[...], preferred_element_type=jnp.float32)
        + b_ref[...]
    )
    sig = jax.nn.sigmoid(gates[:, : 3 * h_pad])      # one wide EUP op: i, f, o
    i_g = sig[:, 0 * h_pad:1 * h_pad]
    f_g = sig[:, 1 * h_pad:2 * h_pad]
    o_g = sig[:, 2 * h_pad:3 * h_pad]
    g_g = jnp.tanh(gates[:, 3 * h_pad:4 * h_pad])    # one wide EUP op: g

    c_new = f_g * c + i_g * g_g
    h_new = o_g * jnp.tanh(c_new)
    return h_new, c_new


def _lstm_layer_kernel(x_ref, w_ih_ref, w_hh_ref, b_ref, out_ref,
                       *, hidden_pad, seq_len):
    """Full time recurrence for one LSTM layer in a single kernel invocation.
    x_ref: (seq, B_pad, in_pad); out_ref: (seq, B_pad, H_pad)."""
    b_pad = x_ref.shape[1]
    h0 = jnp.zeros((b_pad, hidden_pad), jnp.float32)
    c0 = jnp.zeros((b_pad, hidden_pad), jnp.float32)

    def body(t, carry):
        h, c = carry
        x_t = x_ref[t]                                # (B_pad, in_pad)
        h, c = _lstm_cell_step(x_t, h, c, w_ih_ref, w_hh_ref, b_ref, hidden_pad)
        out_ref[pl.ds(t, 1)] = h[None]                # (1, B_pad, H_pad) store
        return h, c

    jax.lax.fori_loop(0, seq_len, body, (h0, c0), unroll=True)


def _lstm_last_layer_kernel(x_ref, w_ih_ref, w_hh_ref, b_ref,
                            w_dec_ref, b_dec_ref, out_ref,
                            *, hidden_pad, seq_len):
    """Last LSTM layer fused with the decoder: only the final hidden state is
    needed, so no per-step HBM writes; decoder runs on the loop carry."""
    b_pad = x_ref.shape[1]
    h0 = jnp.zeros((b_pad, hidden_pad), jnp.float32)
    c0 = jnp.zeros((b_pad, hidden_pad), jnp.float32)

    def body(t, carry):
        h, c = carry
        return _lstm_cell_step(x_ref[t], h, c,
                               w_ih_ref, w_hh_ref, b_ref, hidden_pad)

    h_last, _ = jax.lax.fori_loop(0, seq_len, body, (h0, c0), unroll=True)

    logits = jnp.dot(h_last, w_dec_ref[...],
                     preferred_element_type=jnp.float32) + b_dec_ref[...]
    out_ref[...] = 10.0 * jax.nn.sigmoid(logits)      # (B_pad, OUT_pad)


# ----------------------------------------------------------------------------
# Wrappers (single invocation, no grid -> whole arrays resident in VMEM)
# ----------------------------------------------------------------------------
def lstm_layer(x, w_ih_t, w_hh_t, b):
    """x: (seq, B_pad, in_pad) f32 -> (seq, B_pad, H_pad) f32."""
    seq, b_pad, _ = x.shape
    h_pad = w_hh_t.shape[0]
    kernel = functools.partial(_lstm_layer_kernel,
                               hidden_pad=h_pad, seq_len=seq)
    return pl.pallas_call(
        kernel,
        out_shape=jax.ShapeDtypeStruct((seq, b_pad, h_pad), jnp.float32),
    )(x, w_ih_t, w_hh_t, b)


def lstm_last_layer_with_decoder(x, w_ih_t, w_hh_t, b, w_dec_t, b_dec):
    """x: (seq, B_pad, in_pad) f32 -> (B_pad, OUT_pad) f32 (decoder fused)."""
    seq, b_pad, _ = x.shape
    h_pad = w_hh_t.shape[0]
    out_pad = w_dec_t.shape[1]
    kernel = functools.partial(_lstm_last_layer_kernel,
                               hidden_pad=h_pad, seq_len=seq)
    return pl.pallas_call(
        kernel,
        out_shape=jax.ShapeDtypeStruct((b_pad, out_pad), jnp.float32),
    )(x, w_ih_t, w_hh_t, b, w_dec_t, b_dec)


def lstm_model(inputs, params):
    """inputs: (seq, batch) int32 token ids -> (batch, 1) f32."""
    seq, batch = inputs.shape
    b_pad = _round_up(max(batch, 8), 8)

    # Embedding lookup (gather) stays as plain-JAX glue; table is pre-padded.
    x = jnp.take(params["embedding"], inputs, axis=0)      # (seq, batch, E_pad)
    x = jnp.pad(x, ((0, 0), (0, b_pad - batch), (0, 0)))   # pad sublanes

    layers = params["lstm"]
    for layer in layers[:-1]:
        x = lstm_layer(x, layer["w_ih_t"], layer["w_hh_t"], layer["b"])

    last = layers[-1]
    out_padded = lstm_last_layer_with_decoder(
        x, last["w_ih_t"], last["w_hh_t"], last["b"],
        params["w_dec_t"], params["b_dec"])
    return out_padded[:batch, :1]                          # (batch, 1)


# ----------------------------------------------------------------------------
# Parameter construction: generate PyTorch-layout weights, then repack
# (gate-reorder i,f,g,o -> i,f,o,g; transpose; zero-pad to lane alignment).
# ----------------------------------------------------------------------------
def _repack_lstm_layer(w_ih, w_hh, b_ih, b_hh, hidden, h_pad, in_dim, in_pad):
    def repack(w, rows, rows_pad):
        blocks = [w[k * hidden:(k + 1) * hidden] for k in range(4)]  # i, f, g, o
        i_b, f_b, g_b, o_b = blocks
        cols = []
        for blk in (i_b, f_b, o_b, g_b):                             # i, f, o, g
            blk_t = jnp.pad(blk.T, ((0, rows_pad - rows), (0, h_pad - hidden)))
            cols.append(blk_t)
        return jnp.concatenate(cols, axis=1)                         # (rows_pad, 4*h_pad)

    w_ih_t = repack(w_ih, in_dim, in_pad)
    w_hh_t = repack(w_hh, hidden, h_pad)

    b = b_ih + b_hh
    b_i, b_f, b_g, b_o = [b[k * hidden:(k + 1) * hidden] for k in range(4)]
    b_packed = jnp.concatenate(
        [jnp.pad(v, (0, h_pad - hidden)) for v in (b_i, b_f, b_o, b_g)]
    ).reshape(1, 4 * h_pad)

    return {"w_ih_t": w_ih_t, "w_hh_t": w_hh_t, "b": b_packed}


def init_params(key, vocab_size, embed_size, num_hiddens, num_layers):
    e_pad = _round_up(embed_size, 128)
    h_pad = _round_up(num_hiddens, 128)
    out_pad = 128

    keys = jax.random.split(key, 2 + 4 * num_layers + 2)
    k_iter = iter(keys)
    bound = 1.0 / jnp.sqrt(jnp.float32(num_hiddens))

    embedding = jax.random.normal(next(k_iter), (vocab_size, embed_size),
                                  jnp.float32)
    params = {
        "embedding": jnp.pad(embedding, ((0, 0), (0, e_pad - embed_size))),
        "lstm": [],
    }

    in_dim, in_pad = embed_size, e_pad
    for _ in range(num_layers):
        w_ih = jax.random.uniform(next(k_iter), (4 * num_hiddens, in_dim),
                                  jnp.float32, -bound, bound)
        w_hh = jax.random.uniform(next(k_iter), (4 * num_hiddens, num_hiddens),
                                  jnp.float32, -bound, bound)
        b_ih = jax.random.uniform(next(k_iter), (4 * num_hiddens,),
                                  jnp.float32, -bound, bound)
        b_hh = jax.random.uniform(next(k_iter), (4 * num_hiddens,),
                                  jnp.float32, -bound, bound)
        params["lstm"].append(
            _repack_lstm_layer(w_ih, w_hh, b_ih, b_hh,
                               num_hiddens, h_pad, in_dim, in_pad))
        in_dim, in_pad = num_hiddens, h_pad

    w_dec = jax.random.uniform(next(k_iter), (1, num_hiddens),
                               jnp.float32, -bound, bound)
    b_dec = jax.random.uniform(next(k_iter), (1, 1),
                               jnp.float32, -bound, bound)
    # Decoder packed lane-dense: (H_pad, 128) weights, (1, 128) bias; only
    # column 0 carries the real Linear(H -> 1); padding is zero.
    params["w_dec_t"] = jnp.pad(
        w_dec.T, ((0, h_pad - num_hiddens), (0, out_pad - 1)))
    params["b_dec"] = jnp.pad(b_dec, ((0, 0), (0, out_pad - 1)))
    return params


# ----------------------------------------------------------------------------
# Main
# ----------------------------------------------------------------------------
if __name__ == "__main__":
    vocab_size = 100
    embed_size = 32
    num_hiddens = 32
    num_layers = 2
    seq_len = 8
    batch = 2

    key = jax.random.PRNGKey(0)
    k_params, k_inputs = jax.random.split(key)

    params = init_params(k_params, vocab_size, embed_size,
                         num_hiddens, num_layers)
    # time-major token ids, like PyTorch nn.LSTM default (seq, batch)
    inputs = jax.random.randint(k_inputs, (seq_len, batch), 0, vocab_size,
                                dtype=jnp.int32)

    out = lstm_model(inputs, params)
    jax.block_until_ready(out)
    assert out.shape == (batch, 1)
    print("KERNEL_OK")
</pallas_src>

<mosaic_0001>
module attributes {stable_mosaic.version = 11 : i64} {
  func.func @_lstm_layer_kernel(%arg0: memref<8x8x128xf32, #tpu.memory_space<vmem>>, %arg1: memref<128x512xf32, #tpu.memory_space<vmem>>, %arg2: memref<128x512xf32, #tpu.memory_space<vmem>>, %arg3: memref<1x512xf32, #tpu.memory_space<vmem>>, %arg4: memref<8x8x128xf32, #tpu.memory_space<vmem>>) attributes {dimension_semantics = [], scalar_prefetch = 0 : i64, scratch_operands = 0 : i64, tpu.core_type = #tpu.core_type<tc>} {
    %cst = arith.constant 0.000000e+00 : f32
    %0 = vector.broadcast %cst : f32 to vector<8x128xf32>
    %cst_0 = arith.constant 0.000000e+00 : f32
    %1 = vector.broadcast %cst_0 : f32 to vector<8x128xf32>
    %c0_i32 = arith.constant 0 : i32
    %2 = arith.index_cast %c0_i32 : i32 to index
    %c0 = arith.constant 0 : index
    %c0_1 = arith.constant 0 : index
    %3 = vector.load %arg0[%2, %c0, %c0_1] : memref<8x8x128xf32, #tpu.memory_space<vmem>>, vector<1x8x128xf32>
    %4 = vector.shape_cast %3 : vector<1x8x128xf32> to vector<8x128xf32>
    %c0_2 = arith.constant 0 : index
    %c0_3 = arith.constant 0 : index
    %5 = vector.load %arg1[%c0_2, %c0_3] : memref<128x512xf32, #tpu.memory_space<vmem>>, vector<128x512xf32>
    %cst_4 = arith.constant dense<0.000000e+00> : vector<8x512xf32>
    %6 = tpu.matmul %4, %5, %cst_4 {dimension_numbers = #tpu.dot_dimension_numbers<[1], [0], [0], [1], [0, 0, 1, 1], [], []>} : vector<8x128xf32>, vector<128x512xf32>, vector<8x512xf32> -> vector<8x512xf32>
    %c0_5 = arith.constant 0 : index
    %c0_6 = arith.constant 0 : index
    %7 = vector.load %arg2[%c0_5, %c0_6] : memref<128x512xf32, #tpu.memory_space<vmem>>, vector<128x512xf32>
    %cst_7 = arith.constant dense<0.000000e+00> : vector<8x512xf32>
    %8 = tpu.matmul %0, %7, %cst_7 {dimension_numbers = #tpu.dot_dimension_numbers<[1], [0], [0], [1], [0, 0, 1, 1], [], []>} : vector<8x128xf32>, vector<128x512xf32>, vector<8x512xf32> -> vector<8x512xf32>
    %9 = arith.addf %6, %8 : vector<8x512xf32>
    %c0_8 = arith.constant 0 : index
    %c0_9 = arith.constant 0 : index
    %10 = vector.load %arg3[%c0_8, %c0_9] : memref<1x512xf32, #tpu.memory_space<vmem>>, vector<1x512xf32>
    %11 = vector.broadcast %10 : vector<1x512xf32> to vector<8x512xf32>
    %12 = arith.addf %9, %11 : vector<8x512xf32>
    %13 = vector.extract_strided_slice %12 {offsets = [0, 0], sizes = [8, 384], strides = [1, 1]} : vector<8x512xf32> to vector<8x384xf32>
    %14 = arith.negf %13 : vector<8x384xf32>
    %15 = math.exp %14 : vector<8x384xf32>
    %cst_10 = arith.constant 1.000000e+00 : f32
    %16 = vector.broadcast %cst_10 : f32 to vector<8x384xf32>
    %17 = arith.addf %16, %15 : vector<8x384xf32>
    %18 = arith.divf %16, %17 : vector<8x384xf32>
    %19 = vector.extract_strided_slice %18 {offsets = [0, 0], sizes = [8, 128], strides = [1, 1]} : vector<8x384xf32> to vector<8x128xf32>
    %20 = vector.extract_strided_slice %18 {offsets = [0, 128], sizes = [8, 128], strides = [1, 1]} : vector<8x384xf32> to vector<8x128xf32>
    %21 = vector.extract_strided_slice %18 {offsets = [0, 256], sizes = [8, 128], strides = [1, 1]} : vector<8x384xf32> to vector<8x128xf32>
    %22 = vector.extract_strided_slice %12 {offsets = [0, 384], sizes = [8, 128], strides = [1, 1]} : vector<8x512xf32> to vector<8x128xf32>
    %23 = math.tanh %22 : vector<8x128xf32>
    %24 = arith.mulf %20, %1 : vector<8x128xf32>
    %25 = arith.mulf %19, %23 : vector<8x128xf32>
    %26 = arith.addf %24, %25 : vector<8x128xf32>
    %27 = math.tanh %26 : vector<8x128xf32>
    %28 = arith.mulf %21, %27 : vector<8x128xf32>
    %29 = vector.shape_cast %28 : vector<8x128xf32> to vector<1x8x128xf32>
    %30 = arith.index_cast %c0_i32 : i32 to index
    %c0_11 = arith.constant 0 : index
    %c0_12 = arith.constant 0 : index
    %31 = vector.load %arg4[%30, %c0_11, %c0_12] : memref<8x8x128xf32, #tpu.memory_space<vmem>>, vector<1x8x128xf32>
    tpu.vector_store %arg4[%30, %c0_11, %c0_12], %29 {strides = array<i32>} : memref<8x8x128xf32, #tpu.memory_space<vmem>>, vector<1x8x128xf32>,
    %c1_i32 = arith.constant 1 : i32
    %32 = arith.index_cast %c1_i32 : i32 to index
    %c0_13 = arith.constant 0 : index
    %c0_14 = arith.constant 0 : index
    %33 = vector.load %arg0[%32, %c0_13, %c0_14] : memref<8x8x128xf32, #tpu.memory_space<vmem>>, vector<1x8x128xf32>
    %34 = vector.shape_cast %33 : vector<1x8x128xf32> to vector<8x128xf32>
    %c0_15 = arith.constant 0 : index
    %c0_16 = arith.constant 0 : index
    %35 = vector.load %arg1[%c0_15, %c0_16] : memref<128x512xf32, #tpu.memory_space<vmem>>, vector<128x512xf32>
    %cst_17 = arith.constant dense<0.000000e+00> : vector<8x512xf32>
    %36 = tpu.matmul %34, %35, %cst_17 {dimension_numbers = #tpu.dot_dimension_numbers<[1], [0], [0], [1], [0, 0, 1, 1], [], []>} : vector<8x128xf32>, vector<128x512xf32>, vector<8x512xf32> -> vector<8x512xf32>
    %c0_18 = arith.constant 0 : index
    %c0_19 = arith.constant 0 : index
    %37 = vector.load %arg2[%c0_18, %c0_19] : memref<128x512xf32, #tpu.memory_space<vmem>>, vector<128x512xf32>
    %cst_20 = arith.constant dense<0.000000e+00> : vector<8x512xf32>
    %38 = tpu.matmul %28, %37, %cst_20 {dimension_numbers = #tpu.dot_dimension_numbers<[1], [0], [0], [1], [0, 0, 1, 1], [], []>} : vector<8x128xf32>, vector<128x512xf32>, vector<8x512xf32> -> vector<8x512xf32>
    %39 = arith.addf %36, %38 : vector<8x512xf32>
    %c0_21 = arith.constant 0 : index
    %c0_22 = arith.constant 0 : index
    %40 = vector.load %arg3[%c0_21, %c0_22] : memref<1x512xf32, #tpu.memory_space<vmem>>, vector<1x512xf32>
    %41 = vector.broadcast %40 : vector<1x512xf32> to vector<8x512xf32>
    %42 = arith.addf %39, %41 : vector<8x512xf32>
    %43 = vector.extract_strided_slice %42 {offsets = [0, 0], sizes = [8, 384], strides = [1, 1]} : vector<8x512xf32> to vector<8x384xf32>
    %44 = arith.negf %43 : vector<8x384xf32>
    %45 = math.exp %44 : vector<8x384xf32>
    %cst_23 = arith.constant 1.000000e+00 : f32
    %46 = vector.broadcast %cst_23 : f32 to vector<8x384xf32>
    %47 = arith.addf %46, %45 : vector<8x384xf32>
    %48 = arith.divf %46, %47 : vector<8x384xf32>
    %49 = vector.extract_strided_slice %48 {offsets = [0, 0], sizes = [8, 128], strides = [1, 1]} : vector<8x384xf32> to vector<8x128xf32>
    %50 = vector.extract_strided_slice %48 {offsets = [0, 128], sizes = [8, 128], strides = [1, 1]} : vector<8x384xf32> to vector<8x128xf32>
    %51 = vector.extract_strided_slice %48 {offsets = [0, 256], sizes = [8, 128], strides = [1, 1]} : vector<8x384xf32> to vector<8x128xf32>
    %52 = vector.extract_strided_slice %42 {offsets = [0, 384], sizes = [8, 128], strides = [1, 1]} : vector<8x512xf32> to vector<8x128xf32>
    %53 = math.tanh %52 : vector<8x128xf32>
    %54 = arith.mulf %50, %26 : vector<8x128xf32>
    %55 = arith.mulf %49, %53 : vector<8x128xf32>
    %56 = arith.addf %54, %55 : vector<8x128xf32>
    %57 = math.tanh %56 : vector<8x128xf32>
    %58 = arith.mulf %51, %57 : vector<8x128xf32>
    %59 = vector.shape_cast %58 : vector<8x128xf32> to vector<1x8x128xf32>
    %60 = arith.index_cast %c1_i32 : i32 to index
    %c0_24 = arith.constant 0 : index
    %c0_25 = arith.constant 0 : index
    %61 = vector.load %arg4[%60, %c0_24, %c0_25] : memref<8x8x128xf32, #tpu.memory_space<vmem>>, vector<1x8x128xf32>
    tpu.vector_store %arg4[%60, %c0_24, %c0_25], %59 {strides = array<i32>} : memref<8x8x128xf32, #tpu.memory_space<vmem>>, vector<1x8x128xf32>,
    %c2_i32 = arith.constant 2 : i32
    %62 = arith.index_cast %c2_i32 : i32 to index
    %c0_26 = arith.constant 0 : index
    %c0_27 = arith.constant 0 : index
    %63 = vector.load %arg0[%62, %c0_26, %c0_27] : memref<8x8x128xf32, #tpu.memory_space<vmem>>, vector<1x8x128xf32>
    %64 = vector.shape_cast %63 : vector<1x8x128xf32> to vector<8x128xf32>
    %c0_28 = arith.constant 0 : index
    %c0_29 = arith.constant 0 : index
    %65 = vector.load %arg1[%c0_28, %c0_29] : memref<128x512xf32, #tpu.memory_space<vmem>>, vector<128x512xf32>
    %cst_30 = arith.constant dense<0.000000e+00> : vector<8x512xf32>
    %66 = tpu.matmul %64, %65, %cst_30 {dimension_numbers = #tpu.dot_dimension_numbers<[1], [0], [0], [1], [0, 0, 1, 1], [], []>} : vector<8x128xf32>, vector<128x512xf32>, vector<8x512xf32> -> vector<8x512xf32>
    %c0_31 = arith.constant 0 : index
    %c0_32 = arith.constant 0 : index
    %67 = vector.load %arg2[%c0_31, %c0_32] : memref<128x512xf32, #tpu.memory_space<vmem>>, vector<128x512xf32>
    %cst_33 = arith.constant dense<0.000000e+00> : vector<8x512xf32>
    %68 = tpu.matmul %58, %67, %cst_33 {dimension_numbers = #tpu.dot_dimension_numbers<[1], [0], [0], [1], [0, 0, 1, 1], [], []>} : vector<8x128xf32>, vector<128x512xf32>, vector<8x512xf32> -> vector<8x512xf32>
    %69 = arith.addf %66, %68 : vector<8x512xf32>
    %c0_34 = arith.constant 0 : index
    %c0_35 = arith.constant 0 : index
    %70 = vector.load %arg3[%c0_34, %c0_35] : memref<1x512xf32, #tpu.memory_space<vmem>>, vector<1x512xf32>
    %71 = vector.broadcast %70 : vector<1x512xf32> to vector<8x512xf32>
    %72 = arith.addf %69, %71 : vector<8x512xf32>
    %73 = vector.extract_strided_slice %72 {offsets = [0, 0], sizes = [8, 384], strides = [1, 1]} : vector<8x512xf32> to vector<8x384xf32>
    %74 = arith.negf %73 : vector<8x384xf32>
    %75 = math.exp %74 : vector<8x384xf32>
    %cst_36 = arith.constant 1.000000e+00 : f32
    %76 = vector.broadcast %cst_36 : f32 to vector<8x384xf32>
    %77 = arith.addf %76, %75 : vector<8x384xf32>
    %78 = arith.divf %76, %77 : vector<8x384xf32>
    %79 = vector.extract_strided_slice %78 {offsets = [0, 0], sizes = [8, 128], strides = [1, 1]} : vector<8x384xf32> to vector<8x128xf32>
    %80 = vector.extract_strided_slice %78 {offsets = [0, 128], sizes = [8, 128], strides = [1, 1]} : vector<8x384xf32> to vector<8x128xf32>
    %81 = vector.extract_strided_slice %78 {offsets = [0, 256], sizes = [8, 128], strides = [1, 1]} : vector<8x384xf32> to vector<8x128xf32>
    %82 = vector.extract_strided_slice %72 {offsets = [0, 384], sizes = [8, 128], strides = [1, 1]} : vector<8x512xf32> to vector<8x128xf32>
    %83 = math.tanh %82 : vector<8x128xf32>
    %84 = arith.mulf %80, %56 : vector<8x128xf32>
    %85 = arith.mulf %79, %83 : vector<8x128xf32>
    %86 = arith.addf %84, %85 : vector<8x128xf32>
    %87 = math.tanh %86 : vector<8x128xf32>
    %88 = arith.mulf %81, %87 : vector<8x128xf32>
    %89 = vector.shape_cast %88 : vector<8x128xf32> to vector<1x8x128xf32>
    %90 = arith.index_cast %c2_i32 : i32 to index
    %c0_37 = arith.constant 0 : index
    %c0_38 = arith.constant 0 : index
    %91 = vector.load %arg4[%90, %c0_37, %c0_38] : memref<8x8x128xf32, #tpu.memory_space<vmem>>, vector<1x8x128xf32>
    tpu.vector_store %arg4[%90, %c0_37, %c0_38], %89 {strides = array<i32>} : memref<8x8x128xf32, #tpu.memory_space<vmem>>, vector<1x8x128xf32>,
    %c3_i32 = arith.constant 3 : i32
    %92 = arith.index_cast %c3_i32 : i32 to index
    %c0_39 = arith.constant 0 : index
    %c0_40 = arith.constant 0 : index
    %93 = vector.load %arg0[%92, %c0_39, %c0_40] : memref<8x8x128xf32, #tpu.memory_space<vmem>>, vector<1x8x128xf32>
    %94 = vector.shape_cast %93 : vector<1x8x128xf32> to vector<8x128xf32>
    %c0_41 = arith.constant 0 : index
    %c0_42 = arith.constant 0 : index
    %95 = vector.load %arg1[%c0_41, %c0_42] : memref<128x512xf32, #tpu.memory_space<vmem>>, vector<128x512xf32>
    %cst_43 = arith.constant dense<0.000000e+00> : vector<8x512xf32>
    %96 = tpu.matmul %94, %95, %cst_43 {dimension_numbers = #tpu.dot_dimension_numbers<[1], [0], [0], [1], [0, 0, 1, 1], [], []>} : vector<8x128xf32>, vector<128x512xf32>, vector<8x512xf32> -> vector<8x512xf32>
    %c0_44 = arith.constant 0 : index
    %c0_45 = arith.constant 0 : index
    %97 = vector.load %arg2[%c0_44, %c0_45] : memref<128x512xf32, #tpu.memory_space<vmem>>, vector<128x512xf32>
    %cst_46 = arith.constant dense<0.000000e+00> : vector<8x512xf32>
    %98 = tpu.matmul %88, %97, %cst_46 {dimension_numbers = #tpu.dot_dimension_numbers<[1], [0], [0], [1], [0, 0, 1, 1], [], []>} : vector<8x128xf32>, vector<128x512xf32>, vector<8x512xf32> -> vector<8x512xf32>
    %99 = arith.addf %96, %98 : vector<8x512xf32>
    %c0_47 = arith.constant 0 : index
    %c0_48 = arith.constant 0 : index
    %100 = vector.load %arg3[%c0_47, %c0_48] : memref<1x512xf32, #tpu.memory_space<vmem>>, vector<1x512xf32>
    %101 = vector.broadcast %100 : vector<1x512xf32> to vector<8x512xf32>
    %102 = arith.addf %99, %101 : vector<8x512xf32>
    %103 = vector.extract_strided_slice %102 {offsets = [0, 0], sizes = [8, 384], strides = [1, 1]} : vector<8x512xf32> to vector<8x384xf32>
    %104 = arith.negf %103 : vector<8x384xf32>
    %105 = math.exp %104 : vector<8x384xf32>
    %cst_49 = arith.constant 1.000000e+00 : f32
    %106 = vector.broadcast %cst_49 : f32 to vector<8x384xf32>
    %107 = arith.addf %106, %105 : vector<8x384xf32>
    %108 = arith.divf %106, %107 : vector<8x384xf32>
    %109 = vector.extract_strided_slice %108 {offsets = [0, 0], sizes = [8, 128], strides = [1, 1]} : vector<8x384xf32> to vector<8x128xf32>
    %110 = vector.extract_strided_slice %108 {offsets = [0, 128], sizes = [8, 128], strides = [1, 1]} : vector<8x384xf32> to vector<8x128xf32>
    %111 = vector.extract_strided_slice %108 {offsets = [0, 256], sizes = [8, 128], strides = [1, 1]} : vector<8x384xf32> to vector<8x128xf32>
    %112 = vector.extract_strided_slice %102 {offsets = [0, 384], sizes = [8, 128], strides = [1, 1]} : vector<8x512xf32> to vector<8x128xf32>
    %113 = math.tanh %112 : vector<8x128xf32>
    %114 = arith.mulf %110, %86 : vector<8x128xf32>
    %115 = arith.mulf %109, %113 : vector<8x128xf32>
    %116 = arith.addf %114, %115 : vector<8x128xf32>
    %117 = math.tanh %116 : vector<8x128xf32>
    %118 = arith.mulf %111, %117 : vector<8x128xf32>
    %119 = vector.shape_cast %118 : vector<8x128xf32> to vector<1x8x128xf32>
    %120 = arith.index_cast %c3_i32 : i32 to index
    %c0_50 = arith.constant 0 : index
    %c0_51 = arith.constant 0 : index
    %121 = vector.load %arg4[%120, %c0_50, %c0_51] : memref<8x8x128xf32, #tpu.memory_space<vmem>>, vector<1x8x128xf32>
    tpu.vector_store %arg4[%120, %c0_50, %c0_51], %119 {strides = array<i32>} : memref<8x8x128xf32, #tpu.memory_space<vmem>>, vector<1x8x128xf32>,
    %c4_i32 = arith.constant 4 : i32
    %122 = arith.index_cast %c4_i32 : i32 to index
    %c0_52 = arith.constant 0 : index
    %c0_53 = arith.constant 0 : index
    %123 = vector.load %arg0[%122, %c0_52, %c0_53] : memref<8x8x128xf32, #tpu.memory_space<vmem>>, vector<1x8x128xf32>
    %124 = vector.shape_cast %123 : vector<1x8x128xf32> to vector<8x128xf32>
    %c0_54 = arith.constant 0 : index
    %c0_55 = arith.constant 0 : index
    %125 = vector.load %arg1[%c0_54, %c0_55] : memref<128x512xf32, #tpu.memory_space<vmem>>, vector<128x512xf32>
    %cst_56 = arith.constant dense<0.000000e+00> : vector<8x512xf32>
    %126 = tpu.matmul %124, %125, %cst_56 {dimension_numbers = #tpu.dot_dimension_numbers<[1], [0], [0], [1], [0, 0, 1, 1], [], []>} : vector<8x128xf32>, vector<128x512xf32>, vector<8x512xf32> -> vector<8x512xf32>
    %c0_57 = arith.constant 0 : index
    %c0_58 = arith.constant 0 : index
    %127 = vector.load %arg2[%c0_57, %c0_58] : memref<128x512xf32, #tpu.memory_space<vmem>>, vector<128x512xf32>
    %cst_59 = arith.constant dense<0.000000e+00> : vector<8x512xf32>
    %128 = tpu.matmul %118, %127, %cst_59 {dimension_numbers = #tpu.dot_dimension_numbers<[1], [0], [0], [1], [0, 0, 1, 1], [], []>} : vector<8x128xf32>, vector<128x512xf32>, vector<8x512xf32> -> vector<8x512xf32>
    %129 = arith.addf %126, %128 : vector<8x512xf32>
    %c0_60 = arith.constant 0 : index
    %c0_61 = arith.constant 0 : index
    %130 = vector.load %arg3[%c0_60, %c0_61] : memref<1x512xf32, #tpu.memory_space<vmem>>, vector<1x512xf32>
    %131 = vector.broadcast %130 : vector<1x512xf32> to vector<8x512xf32>
    %132 = arith.addf %129, %131 : vector<8x512xf32>
    %133 = vector.extract_strided_slice %132 {offsets = [0, 0], sizes = [8, 384], strides = [1, 1]} : vector<8x512xf32> to vector<8x384xf32>
    %134 = arith.negf %133 : vector<8x384xf32>
    %135 = math.exp %134 : vector<8x384xf32>
    %cst_62 = arith.constant 1.000000e+00 : f32
    %136 = vector.broadcast %cst_62 : f32 to vector<8x384xf32>
    %137 = arith.addf %136, %135 : vector<8x384xf32>
    %138 = arith.divf %136, %137 : vector<8x384xf32>
    %139 = vector.extract_strided_slice %138 {offsets = [0, 0], sizes = [8, 128], strides = [1, 1]} : vector<8x384xf32> to vector<8x128xf32>
    %140 = vector.extract_strided_slice %138 {offsets = [0, 128], sizes = [8, 128], strides = [1, 1]} : vector<8x384xf32> to vector<8x128xf32>
    %141 = vector.extract_strided_slice %138 {offsets = [0, 256], sizes = [8, 128], strides = [1, 1]} : vector<8x384xf32> to vector<8x128xf32>
    %142 = vector.extract_strided_slice %132 {offsets = [0, 384], sizes = [8, 128], strides = [1, 1]} : vector<8x512xf32> to vector<8x128xf32>
    %143 = math.tanh %142 : vector<8x128xf32>
    %144 = arith.mulf %140, %116 : vector<8x128xf32>
    %145 = arith.mulf %139, %143 : vector<8x128xf32>
    %146 = arith.addf %144, %145 : vector<8x128xf32>
    %147 = math.tanh %146 : vector<8x128xf32>
    %148 = arith.mulf %141, %147 : vector<8x128xf32>
    %149 = vector.shape_cast %148 : vector<8x128xf32> to vector<1x8x128xf32>
    %150 = arith.index_cast %c4_i32 : i32 to index
    %c0_63 = arith.constant 0 : index
    %c0_64 = arith.constant 0 : index
    %151 = vector.load %arg4[%150, %c0_63, %c0_64] : memref<8x8x128xf32, #tpu.memory_space<vmem>>, vector<1x8x128xf32>
    tpu.vector_store %arg4[%150, %c0_63, %c0_64], %149 {strides = array<i32>} : memref<8x8x128xf32, #tpu.memory_space<vmem>>, vector<1x8x128xf32>,
    %c5_i32 = arith.constant 5 : i32
    %152 = arith.index_cast %c5_i32 : i32 to index
    %c0_65 = arith.constant 0 : index
    %c0_66 = arith.constant 0 : index
    %153 = vector.load %arg0[%152, %c0_65, %c0_66] : memref<8x8x128xf32, #tpu.memory_space<vmem>>, vector<1x8x128xf32>
    %154 = vector.shape_cast %153 : vector<1x8x128xf32> to vector<8x128xf32>
    %c0_67 = arith.constant 0 : index
    %c0_68 = arith.constant 0 : index
    %155 = vector.load %arg1[%c0_67, %c0_68] : memref<128x512xf32, #tpu.memory_space<vmem>>, vector<128x512xf32>
    %cst_69 = arith.constant dense<0.000000e+00> : vector<8x512xf32>
    %156 = tpu.matmul %154, %155, %cst_69 {dimension_numbers = #tpu.dot_dimension_numbers<[1], [0], [0], [1], [0, 0, 1, 1], [], []>} : vector<8x128xf32>, vector<128x512xf32>, vector<8x512xf32> -> vector<8x512xf32>
    %c0_70 = arith.constant 0 : index
    %c0_71 = arith.constant 0 : index
    %157 = vector.load %arg2[%c0_70, %c0_71] : memref<128x512xf32, #tpu.memory_space<vmem>>, vector<128x512xf32>
    %cst_72 = arith.constant dense<0.000000e+00> : vector<8x512xf32>
    %158 = tpu.matmul %148, %157, %cst_72 {dimension_numbers = #tpu.dot_dimension_numbers<[1], [0], [0], [1], [0, 0, 1, 1], [], []>} : vector<8x128xf32>, vector<128x512xf32>, vector<8x512xf32> -> vector<8x512xf32>
    %159 = arith.addf %156, %158 : vector<8x512xf32>
    %c0_73 = arith.constant 0 : index
    %c0_74 = arith.constant 0 : index
    %160 = vector.load %arg3[%c0_73, %c0_74] : memref<1x512xf32, #tpu.memory_space<vmem>>, vector<1x512xf32>
    %161 = vector.broadcast %160 : vector<1x512xf32> to vector<8x512xf32>
    %162 = arith.addf %159, %161 : vector<8x512xf32>
    %163 = vector.extract_strided_slice %162 {offsets = [0, 0], sizes = [8, 384], strides = [1, 1]} : vector<8x512xf32> to vector<8x384xf32>
    %164 = arith.negf %163 : vector<8x384xf32>
    %165 = math.exp %164 : vector<8x384xf32>
    %cst_75 = arith.constant 1.000000e+00 : f32
    %166 = vector.broadcast %cst_75 : f32 to vector<8x384xf32>
    %167 = arith.addf %166, %165 : vector<8x384xf32>
    %168 = arith.divf %166, %167 : vector<8x384xf32>
    %169 = vector.extract_strided_slice %168 {offsets = [0, 0], sizes = [8, 128], strides = [1, 1]} : vector<8x384xf32> to vector<8x128xf32>
    %170 = vector.extract_strided_slice %168 {offsets = [0, 128], sizes = [8, 128], strides = [1, 1]} : vector<8x384xf32> to vector<8x128xf32>
    %171 = vector.extract_strided_slice %168 {offsets = [0, 256], sizes = [8, 128], strides = [1, 1]} : vector<8x384xf32> to vector<8x128xf32>
    %172 = vector.extract_strided_slice %162 {offsets = [0, 384], sizes = [8, 128], strides = [1, 1]} : vector<8x512xf32> to vector<8x128xf32>
    %173 = math.tanh %172 : vector<8x128xf32>
    %174 = arith.mulf %170, %146 : vector<8x128xf32>
    %175 = arith.mulf %169, %173 : vector<8x128xf32>
    %176 = arith.addf %174, %175 : vector<8x128xf32>
    %177 = math.tanh %176 : vector<8x128xf32>
    %178 = arith.mulf %171, %177 : vector<8x128xf32>
    %179 = vector.shape_cast %178 : vector<8x128xf32> to vector<1x8x128xf32>
    %180 = arith.index_cast %c5_i32 : i32 to index
    %c0_76 = arith.constant 0 : index
    %c0_77 = arith.constant 0 : index
    %181 = vector.load %arg4[%180, %c0_76, %c0_77] : memref<8x8x128xf32, #tpu.memory_space<vmem>>, vector<1x8x128xf32>
    tpu.vector_store %arg4[%180, %c0_76, %c0_77], %179 {strides = array<i32>} : memref<8x8x128xf32, #tpu.memory_space<vmem>>, vector<1x8x128xf32>,
    %c6_i32 = arith.constant 6 : i32
    %182 = arith.index_cast %c6_i32 : i32 to index
    %c0_78 = arith.constant 0 : index
    %c0_79 = arith.constant 0 : index
    %183 = vector.load %arg0[%182, %c0_78, %c0_79] : memref<8x8x128xf32, #tpu.memory_space<vmem>>, vector<1x8x128xf32>
    %184 = vector.shape_cast %183 : vector<1x8x128xf32> to vector<8x128xf32>
    %c0_80 = arith.constant 0 : index
    %c0_81 = arith.constant 0 : index
    %185 = vector.load %arg1[%c0_80, %c0_81] : memref<128x512xf32, #tpu.memory_space<vmem>>, vector<128x512xf32>
    %cst_82 = arith.constant dense<0.000000e+00> : vector<8x512xf32>
    %186 = tpu.matmul %184, %185, %cst_82 {dimension_numbers = #tpu.dot_dimension_numbers<[1], [0], [0], [1], [0, 0, 1, 1], [], []>} : vector<8x128xf32>, vector<128x512xf32>, vector<8x512xf32> -> vector<8x512xf32>
    %c0_83 = arith.constant 0 : index
    %c0_84 = arith.constant 0 : index
    %187 = vector.load %arg2[%c0_83, %c0_84] : memref<128x512xf32, #tpu.memory_space<vmem>>, vector<128x512xf32>
    %cst_85 = arith.constant dense<0.000000e+00> : vector<8x512xf32>
    %188 = tpu.matmul %178, %187, %cst_85 {dimension_numbers = #tpu.dot_dimension_numbers<[1], [0], [0], [1], [0, 0, 1, 1], [], []>} : vector<8x128xf32>, vector<128x512xf32>, vector<8x512xf32> -> vector<8x512xf32>
    %189 = arith.addf %186, %188 : vector<8x512xf32>
    %c0_86 = arith.constant 0 : index
    %c0_87 = arith.constant 0 : index
    %190 = vector.load %arg3[%c0_86, %c0_87] : memref<1x512xf32, #tpu.memory_space<vmem>>, vector<1x512xf32>
    %191 = vector.broadcast %190 : vector<1x512xf32> to vector<8x512xf32>
    %192 = arith.addf %189, %191 : vector<8x512xf32>
    %193 = vector.extract_strided_slice %192 {offsets = [0, 0], sizes = [8, 384], strides = [1, 1]} : vector<8x512xf32> to vector<8x384xf32>
    %194 = arith.negf %193 : vector<8x384xf32>
    %195 = math.exp %194 : vector<8x384xf32>
    %cst_88 = arith.constant 1.000000e+00 : f32
    %196 = vector.broadcast %cst_88 : f32 to vector<8x384xf32>
    %197 = arith.addf %196, %195 : vector<8x384xf32>
    %198 = arith.divf %196, %197 : vector<8x384xf32>
    %199 = vector.extract_strided_slice %198 {offsets = [0, 0], sizes = [8, 128], strides = [1, 1]} : vector<8x384xf32> to vector<8x128xf32>
    %200 = vector.extract_strided_slice %198 {offsets = [0, 128], sizes = [8, 128], strides = [1, 1]} : vector<8x384xf32> to vector<8x128xf32>
    %201 = vector.extract_strided_slice %198 {offsets = [0, 256], sizes = [8, 128], strides = [1, 1]} : vector<8x384xf32> to vector<8x128xf32>
    %202 = vector.extract_strided_slice %192 {offsets = [0, 384], sizes = [8, 128], strides = [1, 1]} : vector<8x512xf32> to vector<8x128xf32>
    %203 = math.tanh %202 : vector<8x128xf32>
    %204 = arith.mulf %200, %176 : vector<8x128xf32>
    %205 = arith.mulf %199, %203 : vector<8x128xf32>
    %206 = arith.addf %204, %205 : vector<8x128xf32>
    %207 = math.tanh %206 : vector<8x128xf32>
    %208 = arith.mulf %201, %207 : vector<8x128xf32>
    %209 = vector.shape_cast %208 : vector<8x128xf32> to vector<1x8x128xf32>
    %210 = arith.index_cast %c6_i32 : i32 to index
    %c0_89 = arith.constant 0 : index
    %c0_90 = arith.constant 0 : index
    %211 = vector.load %arg4[%210, %c0_89, %c0_90] : memref<8x8x128xf32, #tpu.memory_space<vmem>>, vector<1x8x128xf32>
    tpu.vector_store %arg4[%210, %c0_89, %c0_90], %209 {strides = array<i32>} : memref<8x8x128xf32, #tpu.memory_space<vmem>>, vector<1x8x128xf32>,
    %c7_i32 = arith.constant 7 : i32
    %212 = arith.index_cast %c7_i32 : i32 to index
    %c0_91 = arith.constant 0 : index
    %c0_92 = arith.constant 0 : index
    %213 = vector.load %arg0[%212, %c0_91, %c0_92] : memref<8x8x128xf32, #tpu.memory_space<vmem>>, vector<1x8x128xf32>
    %214 = vector.shape_cast %213 : vector<1x8x128xf32> to vector<8x128xf32>
    %c0_93 = arith.constant 0 : index
    %c0_94 = arith.constant 0 : index
    %215 = vector.load %arg1[%c0_93, %c0_94] : memref<128x512xf32, #tpu.memory_space<vmem>>, vector<128x512xf32>
    %cst_95 = arith.constant dense<0.000000e+00> : vector<8x512xf32>
    %216 = tpu.matmul %214, %215, %cst_95 {dimension_numbers = #tpu.dot_dimension_numbers<[1], [0], [0], [1], [0, 0, 1, 1], [], []>} : vector<8x128xf32>, vector<128x512xf32>, vector<8x512xf32> -> vector<8x512xf32>
    %c0_96 = arith.constant 0 : index
    %c0_97 = arith.constant 0 : index
    %217 = vector.load %arg2[%c0_96, %c0_97] : memref<128x512xf32, #tpu.memory_space<vmem>>, vector<128x512xf32>
    %cst_98 = arith.constant dense<0.000000e+00> : vector<8x512xf32>
    %218 = tpu.matmul %208, %217, %cst_98 {dimension_numbers = #tpu.dot_dimension_numbers<[1], [0], [0], [1], [0, 0, 1, 1], [], []>} : vector<8x128xf32>, vector<128x512xf32>, vector<8x512xf32> -> vector<8x512xf32>
    %219 = arith.addf %216, %218 : vector<8x512xf32>
    %c0_99 = arith.constant 0 : index
    %c0_100 = arith.constant 0 : index
    %220 = vector.load %arg3[%c0_99, %c0_100] : memref<1x512xf32, #tpu.memory_space<vmem>>, vector<1x512xf32>
    %221 = vector.broadcast %220 : vector<1x512xf32> to vector<8x512xf32>
    %222 = arith.addf %219, %221 : vector<8x512xf32>
    %223 = vector.extract_strided_slice %222 {offsets = [0, 0], sizes = [8, 384], strides = [1, 1]} : vector<8x512xf32> to vector<8x384xf32>
    %224 = arith.negf %223 : vector<8x384xf32>
    %225 = math.exp %224 : vector<8x384xf32>
    %cst_101 = arith.constant 1.000000e+00 : f32
    %226 = vector.broadcast %cst_101 : f32 to vector<8x384xf32>
    %227 = arith.addf %226, %225 : vector<8x384xf32>
    %228 = arith.divf %226, %227 : vector<8x384xf32>
    %229 = vector.extract_strided_slice %228 {offsets = [0, 0], sizes = [8, 128], strides = [1, 1]} : vector<8x384xf32> to vector<8x128xf32>
    %230 = vector.extract_strided_slice %228 {offsets = [0, 128], sizes = [8, 128], strides = [1, 1]} : vector<8x384xf32> to vector<8x128xf32>
    %231 = vector.extract_strided_slice %228 {offsets = [0, 256], sizes = [8, 128], strides = [1, 1]} : vector<8x384xf32> to vector<8x128xf32>
    %232 = vector.extract_strided_slice %222 {offsets = [0, 384], sizes = [8, 128], strides = [1, 1]} : vector<8x512xf32> to vector<8x128xf32>
    %233 = math.tanh %232 : vector<8x128xf32>
    %234 = arith.mulf %230, %206 : vector<8x128xf32>
    %235 = arith.mulf %229, %233 : vector<8x128xf32>
    %236 = arith.addf %234, %235 : vector<8x128xf32>
    %237 = math.tanh %236 : vector<8x128xf32>
    %238 = arith.mulf %231, %237 : vector<8x128xf32>
    %239 = vector.shape_cast %238 : vector<8x128xf32> to vector<1x8x128xf32>
    %240 = arith.index_cast %c7_i32 : i32 to index
    %c0_102 = arith.constant 0 : index
    %c0_103 = arith.constant 0 : index
    %241 = vector.load %arg4[%240, %c0_102, %c0_103] : memref<8x8x128xf32, #tpu.memory_space<vmem>>, vector<1x8x128xf32>
    tpu.vector_store %arg4[%240, %c0_102, %c0_103], %239 {strides = array<i32>} : memref<8x8x128xf32, #tpu.memory_space<vmem>>, vector<1x8x128xf32>,
    %c8_i32 = arith.constant 8 : i32
    return
  }
}

</mosaic_0001>

<bundles_post_ra>
// kernel: tpu_custom_call.1
= control target key start
LH: loop header
LB: loop body
LE: loop exit
PB: predicated region body
PF: predicated region fallthrough
CT: control target
= control target key end

     0   :  { %9 = vsyncpa [#allocation3], 0  ;;  %s6358_s0 = inlined_call_operand.hbm [shape: f32[8,8,128], index: 0, kind: input, shape index: {}]   ;;  %s6359_s1 = inlined_call_operand.hbm [shape: f32[128,512], index: 1, kind: input, shape index: {}]   ;;  %s6360_s2 = inlined_call_operand.hbm [shape: f32[128,512], index: 2, kind: input, shape index: {}]   ;;  %s6361_s3 = inlined_call_operand.vmem [shape: f32[1,512], index: 3, kind: input, shape index: {}]   ;;  %s6362_s4 = inlined_call_operand.hbm [shape: f32[8,8,128], index: 4, kind: output, shape index: {}]  }
   0x1   :  { %10 = vsyncpa [#allocation6], 0 }
   0x2   :  { %11 = vsyncpa [#allocation4], 0  ;;  %s5114_s15 = smov [#allocation5]   ;;  %s5020_s19 = scalar_lea.hbm %s6359_s1, 8192 }
   0x3   :  { %s29_s16 = sshll.u32 %s5114_s15, 4  ;;  %p5021_p0 = scmp.ne.s32.totalorder %s6359_s1, %s5020_s19  ;;  %s30_s16 = int_to_ptr.vmem [resolvable:$true] %s29_s16 }
   0x4   :  { %p5024_p1 = scmp.lt.u32.totalorder %s5020_s19, %s6359_s1 }
   0x6   :  { %p5026_p2 = pnand %p5024_p1, %p5021_p0 }
   0x8   :  { %5029 = shalt.err (!%p5026_p2)
}
   0x9   :  { %s5030_s24 = scalar_lea.vmem %s30_s16, 8192  ;;  %p5035_p4 = scmp.lt.s32.totalorder %s30_s16, %s30_s16 }
   0xa   :  { %p5031_p3 = scmp.ne.s32.totalorder %s30_s16, %s5030_s24  ;;  %p5036_p5 = scmp.lt.s32.totalorder %s5030_s24, %s5030_s24 }
   0xc   :  { %p5037_p6 = por %p5036_p5, %p5035_p4 }
   0xe   :  { %p5038_p7 = pnand %p5037_p6, %p5031_p3 }
  0x10   :  { %5041 = shalt.err (!%p5038_p7)
}
  0x11   :  { %s5115_s25 = smov 512   ;;  %s5116_s26 = smov 32  }
  0x12   :  { %35 = dma.hbm_to_vmem [thread:$0]  %s6359_s1, 8192, %s30_s16, [#allocation6], %s5115_s25, %s5115_s25, %s5116_s26  }
  0x13   :  { %s5117_s29 = smov [#allocation2]   ;;  %s5042_s7 = scalar_lea.hbm %s6358_s0, 1024 }
  0x14   :  { %s17_s30 = sshll.u32 %s5117_s29, 4  ;;  %p5043_p8 = scmp.ne.s32.totalorder %s6358_s0, %s5042_s7  ;;  %s18_s30 = int_to_ptr.vmem [resolvable:$true] %s17_s30 }
  0x15   :  { %p5046_p9 = scmp.lt.u32.totalorder %s5042_s7, %s6358_s0 }
  0x17   :  { %p5048_p10 = pnand %p5046_p9, %p5043_p8 }
  0x19   :  { %5051 = shalt.err (!%p5048_p10)
}
  0x1a   :  { %s5052_s12 = scalar_lea.vmem %s18_s30, 1024  ;;  %p5057_p12 = scmp.lt.s32.totalorder %s18_s30, %s18_s30 }
  0x1b   :  { %p5053_p11 = scmp.ne.s32.totalorder %s18_s30, %s5052_s12  ;;  %p5058_p13 = scmp.lt.s32.totalorder %s5052_s12, %s5052_s12 }
  0x1d   :  { %p5059_p0 = por %p5058_p13, %p5057_p12 }
  0x1f   :  { %p5060_p1 = pnand %p5059_p0, %p5053_p11 }
  0x21   :  { %5063 = shalt.err (!%p5060_p1)
}
  0x22   :  { %s5118_s1 = smov 128   ;;  %s5119_s13 = smov 8  }
  0x23   :  { %23 = dma.hbm_to_vmem [thread:$0]  %s6358_s0, 1024, %s18_s30, [#allocation3], %s5118_s1, %s5118_s1, %s5119_s13  }
  0x24   :  { %s5120_s16 = smov [#allocation7]   ;;  %s5064_s20 = scalar_lea.hbm %s6360_s2, 8192 }
  0x25   :  { %s41_s17 = sshll.u32 %s5120_s16, 4  ;;  %p5065_p2 = scmp.ne.s32.totalorder %s6360_s2, %s5064_s20  ;;  %s42_s17 = int_to_ptr.vmem [resolvable:$true] %s41_s17 }
  0x26   :  { %p5068_p3 = scmp.lt.u32.totalorder %s5064_s20, %s6360_s2 }
  0x28   :  { %p5070_p4 = pnand %p5068_p3, %p5065_p2 }
  0x2a   :  { %5073 = shalt.err (!%p5070_p4)
}
  0x2b   :  { %s5074_s27 = scalar_lea.vmem %s42_s17, 8192  ;;  %p5079_p6 = scmp.lt.s32.totalorder %s42_s17, %s42_s17 }
  0x2c   :  { %p5075_p5 = scmp.ne.s32.totalorder %s42_s17, %s5074_s27  ;;  %p5080_p7 = scmp.lt.s32.totalorder %s5074_s27, %s5074_s27 }
  0x2e   :  { %p5081_p8 = por %p5080_p7, %p5079_p6 }
  0x30   :  { %p5082_p9 = pnand %p5081_p8, %p5075_p5 }
  0x32   :  { %5085 = shalt.err (!%p5082_p9)
}
  0x33   :  { %47 = dma.hbm_to_vmem [thread:$0]  %s6360_s2, 8192, %s42_s17, [#allocation6], %s5115_s25, %s5115_s25, %s5116_s26  }
  0x34   :  { %5108 = dma.done.wait [#allocation3], 1024  }
  0x35   :  { %5109 = vsyncadd [#allocation3], 4294966272 }
  0x36   :  { %5110 = dma.done.wait [#allocation6], 16384  }
  0x37   :  { %5111 = vsyncadd [#allocation6], 4294950912  ;;  %v6363_v0 = vmov 0.0   ;;  %v125_v1 = vld [vmem:[#allocation7 + $0x8] sm:$0xff]  ;;  %v127_v3 = vld [vmem:[#allocation7 + $0x18] sm:$0xff] }
  0x38   :  { %252 = vmatprep.mubr.f32.mxu0 %v6363_v0  ;;  %323 = vmatprep.mubr.f32.mxu1 %v6363_v0  ;;  %v129_v2 = vld [vmem:[#allocation7 + $0x28] sm:$0xff]  ;;  %v131_v5 = vld [vmem:[#allocation7 + $0x38] sm:$0xff]  ;;  %v124_v6 = vld [vmem:[#allocation7] sm:$0xff] }
  0x39   :  { %v5195_v4 = vpack.c.bf16 %v129_v2, %v125_v1  ;;  %v128_v7 = vld [vmem:[#allocation7 + $0x20] sm:$0xff]  ;;  %v5197_v8 = vpack.c.bf16 %v131_v5, %v127_v3  ;;  %v126_v10 = vld [vmem:[#allocation7 + $0x10] sm:$0xff]  ;;  %v133_v12 = vld [vmem:[#allocation7 + $0x48] sm:$0xff] }
  0x3a   :  { %v5199_v9 = vpack.c.bf16 %v128_v7, %v124_v6  ;;  %v130_v11 = vld [vmem:[#allocation7 + $0x30] sm:$0xff]  ;;  %v137_v14 = vld [vmem:[#allocation7 + $0x68] sm:$0xff]  ;;  %v135_v15 = vld [vmem:[#allocation7 + $0x58] sm:$0xff] }
  0x3b   :  { %3828 = vmatprep.subr.bf16.mxu0 %v5195_v4  ;;  %v5202_v13 = vpack.c.bf16 %v130_v11, %v126_v10  ;;  %v139_v16 = vld [vmem:[#allocation7 + $0x78] sm:$0xff]  ;;  %3860 = vmatprep.subr.bf16.mxu1 %v5197_v8  ;;  %v5206_v17 = vpack.c.bf16 %v137_v14, %v133_v12  ;;  %v132_v19 = vld [vmem:[#allocation7 + $0x40] sm:$0xff]  ;;  %v134_v21 = vld [vmem:[#allocation7 + $0x50] sm:$0xff] }
  0x3c   :  { %3830 = vmatpush1.bf16.msra.mxu0 %v5199_v9  ;;  %v5208_v18 = vpack.c.bf16 %v139_v16, %v135_v15  ;;  %v136_v20 = vld [vmem:[#allocation7 + $0x60] sm:$0xff]  ;;  %v138_v23 = vld [vmem:[#allocation7 + $0x70] sm:$0xff]  ;;  %v141_v24 = vld [vmem:[#allocation7 + $0x88] sm:$0xff] }
  0x3d   :  { %3862 = vmatpush1.bf16.msra.mxu1 %v5202_v13  ;;  %v5211_v22 = vpack.c.bf16 %v136_v20, %v132_v19  ;;  %v145_v25 = vld [vmem:[#allocation7 + $0xa8] sm:$0xff]  ;;  %3832 = vmatprep.subr.bf16.mxu0 %v5206_v17  ;;  %v5215_v26 = vpack.c.bf16 %v138_v23, %v134_v21  ;;  %v143_v28 = vld [vmem:[#allocation7 + $0x98] sm:$0xff]  ;;  %v140_v30 = vld [vmem:[#allocation7 + $0x80] sm:$0xff] }
  0x3e   :  { %3864 = vmatprep.subr.bf16.mxu1 %v5208_v18  ;;  %v5217_v27 = vpack.c.bf16 %v145_v25, %v141_v24  ;;  %v147_v29 = vld [vmem:[#allocation7 + $0xb8] sm:$0xff]  ;;  %v144_v32 = vld [vmem:[#allocation7 + $0xa0] sm:$0xff]  ;;  %v142_v33 = vld [vmem:[#allocation7 + $0x90] sm:$0xff] }
  0x3f   :  { %v5219_v31 = vpack.c.bf16 %v147_v29, %v143_v28  ;;  %v146_v34 = vld [vmem:[#allocation7 + $0xb0] sm:$0xff]  ;;  %v5222_v35 = vpack.c.bf16 %v144_v32, %v140_v30  ;;  %v149_v36 = vld [vmem:[#allocation7 + $0xc8] sm:$0xff]  ;;  %v151_v38 = vld [vmem:[#allocation7 + $0xd8] sm:$0xff] }
  0x40   :  { %3834 = vmatpush1.bf16.msra.mxu0 %v5211_v22  ;;  %v153_v37 = vld [vmem:[#allocation7 + $0xe8] sm:$0xff]  ;;  %v5226_v39 = vpack.c.bf16 %v146_v34, %v142_v33  ;;  %v155_v41 = vld [vmem:[#allocation7 + $0xf8] sm:$0xff]  ;;  %v148_v42 = vld [vmem:[#allocation7 + $0xc0] sm:$0xff] }
  0x41   :  { %3866 = vmatpush1.bf16.msra.mxu1 %v5215_v26  ;;  %3836 = vmatprep.subr.bf16.mxu0 %v5217_v27  ;;  %v5228_v40 = vpack.c.bf16 %v153_v37, %v149_v36  ;;  %v152_v43 = vld [vmem:[#allocation7 + $0xe0] sm:$0xff]  ;;  %v5231_v44 = vpack.c.bf16 %v155_v41, %v151_v38  ;;  %v150_v45 = vld [vmem:[#allocation7 + $0xd0] sm:$0xff]  ;;  %v157_v47 = vld [vmem:[#allocation7 + $0x108] sm:$0xff] }
  0x42   :  { %3868 = vmatprep.subr.bf16.mxu1 %v5219_v31  ;;  %v154_v46 = vld [vmem:[#allocation7 + $0xf0] sm:$0xff]  ;;  %v161_v48 = vld [vmem:[#allocation7 + $0x128] sm:$0xff]  ;;  %v159_v49 = vld [vmem:[#allocation7 + $0x118] sm:$0xff]  ;;  %v5234_v51 = vpack.c.bf16 %v152_v43, %v148_v42 }
  0x43   :  { %v163_v50 = vld [vmem:[#allocation7 + $0x138] sm:$0xff]  ;;  %v5238_v52 = vpack.c.bf16 %v154_v46, %v150_v45  ;;  %v5240_v53 = vpack.c.bf16 %v161_v48, %v157_v47  ;;  %v156_v54 = vld [vmem:[#allocation7 + $0x100] sm:$0xff]  ;;  %v158_v56 = vld [vmem:[#allocation7 + $0x110] sm:$0xff] }
  0x44   :  { %3838 = vmatpush1.bf16.msra.mxu0 %v5222_v35  ;;  %v160_v55 = vld [vmem:[#allocation7 + $0x120] sm:$0xff]  ;;  %v5243_v57 = vpack.c.bf16 %v163_v50, %v159_v49  ;;  %v162_v58 = vld [vmem:[#allocation7 + $0x130] sm:$0xff]  ;;  %v165_v59 = vld [vmem:[#allocation7 + $0x148] sm:$0xff] }
  0x45   :  { %3870 = vmatpush1.bf16.msra.mxu1 %v5226_v39  ;;  %3840 = vmatprep.subr.bf16.mxu0 %v5228_v40  ;;  %v169_v60 = vld [vmem:[#allocation7 + $0x168] sm:$0xff]  ;;  %v167_v61 = vld [vmem:[#allocation7 + $0x158] sm:$0xff]  ;;  %v5246_v63 = vpack.c.bf16 %v160_v55, %v156_v54  ;;  %v5250_v1 = vpack.c.bf16 %v162_v58, %v158_v56  ;;  %v164_v3 = vld [vmem:[#allocation7 + $0x140] sm:$0xff] }
  0x46   :  { %3872 = vmatprep.subr.bf16.mxu1 %v5231_v44  ;;  %v171_v62 = vld [vmem:[#allocation7 + $0x178] sm:$0xff]  ;;  %v5252_v2 = vpack.c.bf16 %v169_v60, %v165_v59  ;;  %v168_v5 = vld [vmem:[#allocation7 + $0x160] sm:$0xff]  ;;  %v166_v6 = vld [vmem:[#allocation7 + $0x150] sm:$0xff] }
  0x47   :  { %v5255_v7 = vpack.c.bf16 %v171_v62, %v167_v61  ;;  %v170_v10 = vld [vmem:[#allocation7 + $0x170] sm:$0xff]  ;;  %v173_v11 = vld [vmem:[#allocation7 + $0x188] sm:$0xff]  ;;  %v175_v14 = vld [vmem:[#allocation7 + $0x198] sm:$0xff]  ;;  %v5258_v16 = vpack.c.bf16 %v168_v5, %v164_v3 }
  0x48   :  { %3842 = vmatpush1.bf16.msra.mxu0 %v5234_v51  ;;  %v177_v12 = vld [vmem:[#allocation7 + $0x1a8] sm:$0xff]  ;;  %v179_v15 = vld [vmem:[#allocation7 + $0x1b8] sm:$0xff]  ;;  %v5262_v19 = vpack.c.bf16 %v170_v10, %v166_v6  ;;  %v172_v21 = vld [vmem:[#allocation7 + $0x180] sm:$0xff] }
  0x49   :  { %3874 = vmatpush1.bf16.msra.mxu1 %v5238_v52  ;;  %3844 = vmatprep.subr.bf16.mxu0 %v5240_v53  ;;  %v5264_v20 = vpack.c.bf16 %v177_v12, %v173_v11  ;;  %v176_v23 = vld [vmem:[#allocation7 + $0x1a0] sm:$0xff]  ;;  %v174_v24 = vld [vmem:[#allocation7 + $0x190] sm:$0xff]  ;;  %v5267_v25 = vpack.c.bf16 %v179_v15, %v175_v14  ;;  %v181_v29 = vld [vmem:[#allocation7 + $0x1c8] sm:$0xff] }
  0x4a   :  { %3876 = vmatprep.subr.bf16.mxu1 %v5243_v57  ;;  %v178_v28 = vld [vmem:[#allocation7 + $0x1b0] sm:$0xff]  ;;  %v185_v30 = vld [vmem:[#allocation7 + $0x1e8] sm:$0xff]  ;;  %v183_v32 = vld [vmem:[#allocation7 + $0x1d8] sm:$0xff]  ;;  %v5270_v34 = vpack.c.bf16 %v176_v23, %v172_v21 }
  0x4b   :  { %v187_v33 = vld [vmem:[#allocation7 + $0x1f8] sm:$0xff]  ;;  %v5274_v36 = vpack.c.bf16 %v178_v28, %v174_v24  ;;  %v5276_v37 = vpack.c.bf16 %v185_v30, %v181_v29  ;;  %v180_v38 = vld [vmem:[#allocation7 + $0x1c0] sm:$0xff]  ;;  %v182_v42 = vld [vmem:[#allocation7 + $0x1d0] sm:$0xff] }
  0x4c   :  { %3846 = vmatpush1.bf16.msra.mxu0 %v5246_v63  ;;  %v184_v41 = vld [vmem:[#allocation7 + $0x1e0] sm:$0xff]  ;;  %v5279_v43 = vpack.c.bf16 %v187_v33, %v183_v32  ;;  %v186_v45 = vld [vmem:[#allocation7 + $0x1f0] sm:$0xff]  ;;  %v61_v46 = vld [vmem:[#allocation5 + $0x8] sm:$0xff] }
  0x4d   :  { %3878 = vmatpush1.bf16.msra.mxu1 %v5250_v1  ;;  %3848 = vmatprep.subr.bf16.mxu0 %v5252_v2  ;;  %v65_v47 = vld [vmem:[#allocation5 + $0x28] sm:$0xff]  ;;  %v63_v48 = vld [vmem:[#allocation5 + $0x18] sm:$0xff]  ;;  %v5282_v50 = vpack.c.bf16 %v184_v41, %v180_v38  ;;  %v5286_v54 = vpack.c.bf16 %v186_v45, %v182_v42  ;;  %v60_v56 = vld [vmem:[#allocation5] sm:$0xff] }
  0x4e   :  { %3880 = vmatprep.subr.bf16.mxu1 %v5255_v7  ;;  %v67_v49 = vld [vmem:[#allocation5 + $0x38] sm:$0xff]  ;;  %v5288_v55 = vpack.c.bf16 %v65_v47, %v61_v46  ;;  %v64_v58 = vld [vmem:[#allocation5 + $0x20] sm:$0xff]  ;;  %v62_v59 = vld [vmem:[#allocation5 + $0x10] sm:$0xff] }
  0x4f   :  { %v5291_v60 = vpack.c.bf16 %v67_v49, %v63_v48  ;;  %v66_v61 = vld [vmem:[#allocation5 + $0x30] sm:$0xff]  ;;  %v69_v62 = vld [vmem:[#allocation5 + $0x48] sm:$0xff]  ;;  %v71_v5 = vld [vmem:[#allocation5 + $0x58] sm:$0xff]  ;;  %v5294_v10 = vpack.c.bf16 %v64_v58, %v60_v56 }
  0x50   :  { %3850 = vmatpush1.bf16.msra.mxu0 %v5258_v16  ;;  %v73_v3 = vld [vmem:[#allocation5 + $0x68] sm:$0xff]  ;;  %v75_v6 = vld [vmem:[#allocation5 + $0x78] sm:$0xff]  ;;  %v5298_v11 = vpack.c.bf16 %v66_v61, %v62_v59  ;;  %v68_v14 = vld [vmem:[#allocation5 + $0x40] sm:$0xff] }
  0x51   :  { %3882 = vmatpush1.bf16.msra.mxu1 %v5262_v19  ;;  %3852 = vmatprep.subr.bf16.mxu0 %v5264_v20  ;;  %v5300_v12 = vpack.c.bf16 %v73_v3, %v69_v62  ;;  %v72_v15 = vld [vmem:[#allocation5 + $0x60] sm:$0xff]  ;;  %v70_v21 = vld [vmem:[#allocation5 + $0x50] sm:$0xff]  ;;  %v5303_v23 = vpack.c.bf16 %v75_v6, %v71_v5  ;;  %v77_v28 = vld [vmem:[#allocation5 + $0x88] sm:$0xff] }
  0x52   :  { %3884 = vmatprep.subr.bf16.mxu1 %v5267_v25  ;;  %v74_v24 = vld [vmem:[#allocation5 + $0x70] sm:$0xff]  ;;  %v81_v29 = vld [vmem:[#allocation5 + $0xa8] sm:$0xff]  ;;  %v79_v30 = vld [vmem:[#allocation5 + $0x98] sm:$0xff]  ;;  %v5308_v33 = vpack.c.bf16 %v72_v15, %v68_v14 }
  0x53   :  { %v83_v32 = vld [vmem:[#allocation5 + $0xb8] sm:$0xff]  ;;  %v5312_v38 = vpack.c.bf16 %v74_v24, %v70_v21  ;;  %v5314_v41 = vpack.c.bf16 %v81_v29, %v77_v28  ;;  %v76_v42 = vld [vmem:[#allocation5 + $0x80] sm:$0xff]  ;;  %v78_v46 = vld [vmem:[#allocation5 + $0x90] sm:$0xff] }
  0x54   :  { %3854 = vmatpush1.bf16.msra.mxu0 %v5270_v34  ;;  %v80_v45 = vld [vmem:[#allocation5 + $0xa0] sm:$0xff]  ;;  %v5317_v47 = vpack.c.bf16 %v83_v32, %v79_v30  ;;  %v82_v48 = vld [vmem:[#allocation5 + $0xb0] sm:$0xff]  ;;  %v85_v49 = vld [vmem:[#allocation5 + $0xc8] sm:$0xff] }
  0x55   :  { %3886 = vmatpush1.bf16.msra.mxu1 %v5274_v36  ;;  %3856 = vmatprep.subr.bf16.mxu0 %v5276_v37  ;;  %v89_v56 = vld [vmem:[#allocation5 + $0xe8] sm:$0xff]  ;;  %v87_v58 = vld [vmem:[#allocation5 + $0xd8] sm:$0xff]  ;;  %v5322_v61 = vpack.c.bf16 %v80_v45, %v76_v42  ;;  %v5326_v62 = vpack.c.bf16 %v82_v48, %v78_v46  ;;  %v84_v5 = vld [vmem:[#allocation5 + $0xc0] sm:$0xff] }
  0x56   :  { %3888 = vmatprep.subr.bf16.mxu1 %v5279_v43  ;;  %v91_v59 = vld [vmem:[#allocation5 + $0xf8] sm:$0xff]  ;;  %v5328_v3 = vpack.c.bf16 %v89_v56, %v85_v49  ;;  %v88_v6 = vld [vmem:[#allocation5 + $0xe0] sm:$0xff]  ;;  %v86_v14 = vld [vmem:[#allocation5 + $0xd0] sm:$0xff] }
  0x57   :  { %6423 = vst [vmem:[#allocation12_spill] sm:$0xff] %v5326_v62  ;;  %v5331_v15 = vpack.c.bf16 %v91_v59, %v87_v58  ;;  %v90_v21 = vld [vmem:[#allocation5 + $0xf0] sm:$0xff]  ;;  %v93_v24 = vld [vmem:[#allocation5 + $0x108] sm:$0xff]  ;;  %v95_v29 = vld [vmem:[#allocation5 + $0x118] sm:$0xff]  ;;  %v5334_v32 = vpack.c.bf16 %v88_v6, %v84_v5 }
  0x58   :  { %3858 = vmatpush1.bf16.msra.mxu0 %v5282_v50  ;;  %6424 = vst [vmem:[#allocation13_spill] sm:$0xff] %v5328_v3  ;;  %v97_v28 = vld [vmem:[#allocation5 + $0x128] sm:$0xff]  ;;  %v99_v30 = vld [vmem:[#allocation5 + $0x138] sm:$0xff]  ;;  %v5338_v42 = vpack.c.bf16 %v90_v21, %v86_v14  ;;  %v92_v46 = vld [vmem:[#allocation5 + $0x100] sm:$0xff] }
  0x59   :  { %3890 = vmatpush1.bf16.msra.mxu1 %v5286_v54  ;;  %3892 = vmatprep.subr.bf16.mxu0 %v5288_v55  ;;  %6425 = vst [vmem:[#allocation14_spill] sm:$0xff] %v5331_v15  ;;  %6426 = vst [vmem:[#allocation15_spill] sm:$0xff] %v5334_v32  ;;  %v5340_v45 = vpack.c.bf16 %v97_v28, %v93_v24  ;;  %v96_v48 = vld [vmem:[#allocation5 + $0x120] sm:$0xff]  ;;  %v94_v49 = vld [vmem:[#allocation5 + $0x110] sm:$0xff]  ;;  %v5343_v56 = vpack.c.bf16 %v99_v30, %v95_v29 }
  0x5a   :  { %3924 = vmatprep.subr.bf16.mxu1 %v5291_v60  ;;  %6427 = vst [vmem:[#allocation16_spill] sm:$0xff] %v5338_v42  ;;  %v98_v58 = vld [vmem:[#allocation5 + $0x130] sm:$0xff]  ;;  %v101_v59 = vld [vmem:[#allocation5 + $0x148] sm:$0xff]  ;;  %v103_v5 = vld [vmem:[#allocation5 + $0x158] sm:$0xff] }
  0x5b   :  { %253 = vmatmul.mubr.f32.vlgmr.msra.gmra.mrb[0].mxu0 %v6363_v0  ;;  %6428 = vst [vmem:[#allocation17_spill] sm:$0xff] %v5340_v45  ;;  %6429 = vst [vmem:[#allocation18_spill] sm:$0xff] %v5343_v56  ;;  %v107_v6 = vld [vmem:[#allocation5 + $0x178] sm:$0xff]  ;;  %v5350_v14 = vpack.c.bf16 %v98_v58, %v94_v49  ;;  %v100_v24 = vld [vmem:[#allocation5 + $0x140] sm:$0xff] }
  0x5c   :  { %324 = vmatmul.mubr.f32.vlgmr.msra.gmra.mrb[0].mxu1 %v6363_v0  ;;  %3894 = vmatpush1.bf16.msra.mxu0 %v5294_v10  ;;  %v104_v28 = vld [vmem:[#allocation5 + $0x160] sm:$0xff]  ;;  %v102_v29 = vld [vmem:[#allocation5 + $0x150] sm:$0xff]  ;;  %v5355_v30 = vpack.c.bf16 %v107_v6, %v103_v5 }
  0x5d   :  { %3926 = vmatpush1.bf16.msra.mxu1 %v5298_v11  ;;  %3896 = vmatprep.subr.bf16.mxu0 %v5300_v12  ;;  %6431 = vst [vmem:[#allocation20_spill] sm:$0xff] %v5350_v14  ;;  %v108_v58 = vld [vmem:[#allocation5 + $0x180] sm:$0xff]  ;;  %v110_v5 = vld [vmem:[#allocation5 + $0x190] sm:$0xff] }
  0x5e   :  { %3928 = vmatprep.subr.bf16.mxu1 %v5303_v23  ;;  %394 = vmatprep.mubr.f32.mxu0 %v6363_v0  ;;  %6432 = vst [vmem:[#allocation21_spill] sm:$0xff] %v5355_v30 }
  0x5f   :  { %465 = vmatprep.mubr.f32.mxu1 %v6363_v0  ;;  %v105_v0 = vld [vmem:[#allocation5 + $0x168] sm:$0xff] }
  0x60   :  { %3898 = vmatpush1.bf16.msra.mxu0 %v5308_v33  ;;  %v5352_v21 = vpack.c.bf16 %v105_v0, %v101_v59  ;;  %v112_v59 = vld [vmem:[#allocation5 + $0x1a0] sm:$0xff] }
  0x61   :  { %3930 = vmatpush1.bf16.msra.mxu1 %v5312_v38  ;;  %3900 = vmatprep.subr.bf16.mxu0 %v5314_v41 }
  0x62   :  { %3932 = vmatprep.subr.bf16.mxu1 %v5317_v47 }
  0x64   :  { %3902 = vmatpush1.bf16.msra.mxu0 %v5322_v61 }
  0x65   :  { %3934 = vmatpush1.bf16.msra.mxu1 %v5326_v62  ;;  %3904 = vmatprep.subr.bf16.mxu0 %v5328_v3  ;;  %v5346_v62 = vpack.c.bf16 %v96_v48, %v92_v46  ;;  %v109_v3 = vld [vmem:[#allocation5 + $0x188] sm:$0xff]  ;;  %v111_v46 = vld [vmem:[#allocation5 + $0x198] sm:$0xff] }
  0x66   :  { %3936 = vmatprep.subr.bf16.mxu1 %v5331_v15  ;;  %v106_v15 = vld [vmem:[#allocation5 + $0x170] sm:$0xff]  ;;  %v115_v48 = vld [vmem:[#allocation5 + $0x1b8] sm:$0xff] }
  0x67   :  { %6430 = vst [vmem:[#allocation19_spill] sm:$0xff] %v5346_v62  ;;  %v5362_v0 = vpack.c.bf16 %v106_v15, %v102_v29  ;;  %v5367_v6 = vpack.c.bf16 %v115_v48, %v111_v46  ;;  %v120_v29 = vld [vmem:[#allocation5 + $0x1e0] sm:$0xff]  ;;  %v118_v48 = vld [vmem:[#allocation5 + $0x1d0] sm:$0xff] }
  0x68   :  { %3906 = vmatpush1.bf16.msra.mxu0 %v5334_v32  ;;  %v113_v32 = vld [vmem:[#allocation5 + $0x1a8] sm:$0xff] }
  0x69   :  { %3938 = vmatpush1.bf16.msra.mxu1 %v5338_v42  ;;  %3908 = vmatprep.subr.bf16.mxu0 %v5340_v45  ;;  %v5358_v42 = vpack.c.bf16 %v104_v28, %v100_v24  ;;  %v5364_v49 = vpack.c.bf16 %v113_v32, %v109_v3  ;;  %v117_v45 = vld [vmem:[#allocation5 + $0x1c8] sm:$0xff]  ;;  %v119_v24 = vld [vmem:[#allocation5 + $0x1d8] sm:$0xff]  ;;  %v116_v32 = vld [vmem:[#allocation5 + $0x1c0] sm:$0xff] }
  0x6a   :  { %3940 = vmatprep.subr.bf16.mxu1 %v5343_v56  ;;  %v114_v56 = vld [vmem:[#allocation5 + $0x1b0] sm:$0xff]  ;;  %v123_v28 = vld [vmem:[#allocation5 + $0x1f8] sm:$0xff] }
  0x6b   :  { %v5374_v3 = vpack.c.bf16 %v114_v56, %v110_v5  ;;  %v5379_v46 = vpack.c.bf16 %v123_v28, %v119_v24  ;;  %v6438_v24 = vld [vmem:[#allocation16_spill] sm:$0xff]  ;;  %v6439_v28 = vld [vmem:[#allocation17_spill] sm:$0xff] }
  0x6c   :  { %3910 = vmatpush1.bf16.msra.mxu0 %v5346_v62  ;;  %v121_v62 = vld [vmem:[#allocation5 + $0x1e8] sm:$0xff] }
  0x6d   :  { %3942 = vmatpush1.bf16.msra.mxu1 %v5350_v14  ;;  %3912 = vmatprep.subr.bf16.mxu0 %v5352_v21  ;;  %v5370_v14 = vpack.c.bf16 %v112_v59, %v108_v58  ;;  %v5376_v15 = vpack.c.bf16 %v121_v62, %v117_v45  ;;  %v5382_v58 = vpack.c.bf16 %v120_v29, %v116_v32  ;;  %v59_v62 = vld [vmem:[#allocation2] sm:$0xff]  ;;  %v6433_v45 = vmov 0.0   ;;  %v1057_v29 = vld [vmem:[#allocation7 + $0x10] sm:$0xff] }
  0x6e   :  { %3944 = vmatprep.subr.bf16.mxu1 %v5355_v30  ;;  %v122_v30 = vld [vmem:[#allocation5 + $0x1f0] sm:$0xff] }
  0x6f   :  { %v5386_v56 = vpack.c.bf16 %v122_v30, %v118_v48 }
  0x70   :  { %3914 = vmatpush1.bf16.msra.mxu0 %v5358_v42 }
  0x71   :  { %3946 = vmatpush1.bf16.msra.mxu1 %v5362_v0  ;;  %3916 = vmatprep.subr.bf16.mxu0 %v5364_v49 }
  0x72   :  { %3948 = vmatprep.subr.bf16.mxu1 %v5367_v6 }
  0x74   :  { %3918 = vmatpush1.bf16.msra.mxu0 %v5370_v14 }
  0x75   :  { %3950 = vmatpush1.bf16.msra.mxu1 %v5374_v3  ;;  %3920 = vmatprep.subr.bf16.mxu0 %v5376_v15 }
  0x76   :  { %3952 = vmatprep.subr.bf16.mxu1 %v5379_v46 }
  0x78   :  { %3922 = vmatpush1.bf16.msra.mxu0 %v5382_v58 }
  0x79   :  { %3954 = vmatpush1.bf16.msra.mxu1 %v5386_v56  ;;  %3956 = vmatprep.subr.bf16.mxu0 %v5195_v4  ;;  %v474_v4 = vlaneseq }
  0x7a   :  { %3988 = vmatprep.subr.bf16.mxu1 %v5197_v8 }
  0x7b   :  { %395 = vmatmul.mubr.f32.vlgmr.msra.gmra.mrb[0].mxu0 %v59_v62  ;;  %v475_v8 = vshrl.u32 %v474_v4, 7 }
  0x7c   :  { %466 = vmatmul.mubr.f32.vlgmr.msra.gmra.mrb[0].mxu1 %v59_v62  ;;  %3958 = vmatpush1.bf16.msra.mxu0 %v5199_v9  ;;  %v1066_v62 = vld [vmem:[#allocation7 + $0x58] sm:$0xff] }
  0x7d   :  { %3990 = vmatpush1.bf16.msra.mxu1 %v5202_v13  ;;  %3960 = vmatprep.subr.bf16.mxu0 %v5206_v17  ;;  %v5427_v9 = vsub.s32 0, %v475_v8  ;;  %v472_v13 = vld [vmem:[%s6361_s3] sm:$0xf]  ;;  %v5432_v17 = vsub.s32 1, %v475_v8 }
  0x7e   :  { %3992 = vmatprep.subr.bf16.mxu1 %v5208_v18  ;;  %717 = vmatprep.mubr.f32.mxu0 %v6433_v45 }
  0x7f   :  { %788 = vmatprep.mubr.f32.mxu1 %v6433_v45  ;;  %v477_v18 = vrot.slane %v472_v13, %v5427_v9 }
  0x80   :  { %3962 = vmatpush1.bf16.msra.mxu0 %v5211_v22  ;;  %v481_v22 = vrot.slane %v472_v13, %v5432_v17 }
  0x81   :  { %3994 = vmatpush1.bf16.msra.mxu1 %v5215_v26  ;;  %3964 = vmatprep.subr.bf16.mxu0 %v5217_v27  ;;  %v5436_v27 = vsub.s32 2, %v475_v8 }
  0x82   :  { %3996 = vmatprep.subr.bf16.mxu1 %v5219_v31 }
  0x84   :  { %3966 = vmatpush1.bf16.msra.mxu0 %v5222_v35 }
  0x85   :  { %3998 = vmatpush1.bf16.msra.mxu1 %v5226_v39  ;;  %3968 = vmatprep.subr.bf16.mxu0 %v5228_v40 }
  0x86   :  { %4000 = vmatprep.subr.bf16.mxu1 %v5231_v44 }
  0x88   :  { %3970 = vmatpush1.bf16.msra.mxu0 %v5234_v51 }
  0x89   :  { %4002 = vmatpush1.bf16.msra.mxu1 %v5238_v52  ;;  %3972 = vmatprep.subr.bf16.mxu0 %v5240_v53  ;;  %v485_v52 = vrot.slane %v472_v13, %v5436_v27 }
  0x8a   :  { %4004 = vmatprep.subr.bf16.mxu1 %v5243_v57  ;;  %v5439_v57 = vsub.s32 3, %v475_v8  ;;  %v1070_v8 = vld [vmem:[#allocation7 + $0x78] sm:$0xff] }
  0x8c   :  { %3974 = vmatpush1.bf16.msra.mxu0 %v5246_v63 }
  0x8d   :  { %4006 = vmatpush1.bf16.msra.mxu1 %v5250_v1  ;;  %3976 = vmatprep.subr.bf16.mxu0 %v5252_v2  ;;  %v489_v1 = vrot.slane %v472_v13, %v5439_v57  ;;  %v1063_v13 = vld [vmem:[#allocation7 + $0x40] sm:$0xff] }
  0x8e   :  { %4008 = vmatprep.subr.bf16.mxu1 %v5255_v7 }
  0x90   :  { %3978 = vmatpush1.bf16.msra.mxu0 %v5258_v16 }
  0x91   :  { %4010 = vmatpush1.bf16.msra.mxu1 %v5262_v19  ;;  %3980 = vmatprep.subr.bf16.mxu0 %v5264_v20 }
  0x92   :  { %4012 = vmatprep.subr.bf16.mxu1 %v5267_v25 }
  0x94   :  { %3982 = vmatpush1.bf16.msra.mxu0 %v5270_v34 }
  0x95   :  { %4014 = vmatpush1.bf16.msra.mxu1 %v5274_v36  ;;  %3984 = vmatprep.subr.bf16.mxu0 %v5276_v37 }
  0x96   :  { %4016 = vmatprep.subr.bf16.mxu1 %v5279_v43 }
  0x98   :  { %3986 = vmatpush1.bf16.msra.mxu0 %v5282_v50 }
  0x99   :  { %4018 = vmatpush1.bf16.msra.mxu1 %v5286_v54  ;;  %4020 = vmatprep.subr.bf16.mxu0 %v5288_v55 }
  0x9a   :  { %4052 = vmatprep.subr.bf16.mxu1 %v5291_v60 }
 0x14e   :  { %v396_v26 = vpop.f32.mrb[0].mxu0 }
 0x14f   :  { %v494_v31 = vadd.f32 %v477_v18, %v396_v26  ;;  %v467_v35 = vpop.f32.mrb[0].mxu1  ;;  %v398_v39 = vpop.f32.mrb[1].mxu0  ;;  %v1067_v18 = vld [vmem:[#allocation7 + $0x60] sm:$0xff] }
 0x150   :  { %v495_v40 = vadd.f32 %v481_v22, %v398_v39  ;;  %v469_v44 = vpop.f32.mrb[1].mxu1  ;;  %v496_v63 = vadd.f32 %v485_v52, %v467_v35  ;;  %v5493_v22 = vpack.c.bf16 %v1070_v8, %v1066_v62  ;;  %v5495_v26 = vpack.c.bf16 %v1067_v18, %v1063_v13  ;;  %v1069_v35 = vld [vmem:[#allocation7 + $0x70] sm:$0xff]  ;;  %v1104_v18 = vld [vmem:[#allocation7 + $0x188] sm:$0xff] }
 0x151   :  { %v3803_v51 = vmul.f32 -1.442695, %v494_v31  ;;  %v497_v7 = vadd.f32 %v489_v1, %v469_v44  ;;  %v1065_v31 = vld [vmem:[#allocation7 + $0x50] sm:$0xff]  ;;  %v1076_v44 = vld [vmem:[#allocation7 + $0xa8] sm:$0xff]  ;;  %v1075_v1 = vld [vmem:[#allocation7 + $0xa0] sm:$0xff] }
 0x152   :  { %v3804_v53 = vmul.f32 -1.442695, %v495_v40  ;;  %v3805_v2 = vmul.f32 -1.442695, %v496_v63  ;;  %v5498_v39 = vpack.c.bf16 %v1069_v35, %v1065_v31  ;;  %v1072_v40 = vld [vmem:[#allocation7 + $0x88] sm:$0xff]  ;;  %v1071_v63 = vld [vmem:[#allocation7 + $0x80] sm:$0xff] }
 0x153   :  { %4892 = vpow2.f32 %v3803_v51  ;;  %v1074_v51 = vld [vmem:[#allocation7 + $0x98] sm:$0xff]  ;;  %v5503_v52 = vpack.c.bf16 %v1076_v44, %v1072_v40  ;;  %v1097_v8 = vld [vmem:[#allocation7 + $0x150] sm:$0xff]  ;;  %v1108_v35 = vld [vmem:[#allocation7 + $0x1a8] sm:$0xff] }
 0x154   :  { %4894 = vpow2.f32 %v3804_v53  ;;  %v1078_v53 = vld [vmem:[#allocation7 + $0xb8] sm:$0xff]  ;;  %v1101_v13 = vld [vmem:[#allocation7 + $0x170] sm:$0xff] }
 0x155   :  { %4896 = vpow2.f32 %v3805_v2  ;;  %v5505_v2 = vpack.c.bf16 %v1078_v53, %v1074_v51  ;;  %v5546_v31 = vpack.c.bf16 %v1101_v13, %v1097_v8  ;;  %v1106_v40 = vld [vmem:[#allocation7 + $0x198] sm:$0xff]  ;;  %v5550_v51 = vpack.c.bf16 %v1108_v35, %v1104_v18 }
 0x156   :  { %4898 = vtanh.f32 %v497_v7  ;;  %v5507_v7 = vpack.c.bf16 %v1075_v1, %v1071_v63  ;;  %v1110_v44 = vld [vmem:[#allocation7 + $0x1b8] sm:$0xff]  ;;  %v1103_v63 = vld [vmem:[#allocation7 + $0x180] sm:$0xff] }
 0x157   :  { %v5552_v53 = vpack.c.bf16 %v1110_v44, %v1106_v40  ;;  %v1107_v1 = vld [vmem:[#allocation7 + $0x1a0] sm:$0xff] }
 0x15d   :  { %v4893_v16 = vpop.eup %4892 }
 0x15e   :  { %v507_v19 = vadd.f32 1.0, %v4893_v16  ;;  %v4895_v20 = vpop.eup %4894  ;;  %v1073_v16 = vld [vmem:[#allocation7 + $0x90] sm:$0xff] }
 0x15f   :  { %v508_v25 = vadd.f32 1.0, %v4895_v20  ;;  %v4897_v34 = vpop.eup %4896 }
 0x160   :  { %4900 = vrcp.f32 %v507_v19  ;;  %v4899_v36 = vpop.eup %4898  ;;  %v509_v54 = vadd.f32 1.0, %v4897_v34  ;;  %v1077_v19 = vld [vmem:[#allocation7 + $0xb0] sm:$0xff]  ;;  %v1084_v34 = vld [vmem:[#allocation7 + $0xe8] sm:$0xff] }
 0x161   :  { %4902 = vrcp.f32 %v508_v25  ;;  %v5510_v20 = vpack.c.bf16 %v1077_v19, %v1073_v16  ;;  %v1080_v25 = vld [vmem:[#allocation7 + $0xc8] sm:$0xff]  ;;  %v1105_v16 = vld [vmem:[#allocation7 + $0x190] sm:$0xff]  ;;  %v5555_v19 = vpack.c.bf16 %v1107_v1, %v1103_v63 }
 0x162   :  { %4904 = vrcp.f32 %v509_v54  ;;  %v1083_v54 = vld [vmem:[#allocation7 + $0xe0] sm:$0xff] }
 0x16a   :  { %v4901_v37 = vpop.eup %4900 }
 0x16b   :  { %v518_v43 = vmul.f32 %v4901_v37, %v4899_v36  ;;  %v4903_v50 = vpop.eup %4902  ;;  %v1082_v36 = vld [vmem:[#allocation7 + $0xd8] sm:$0xff]  ;;  %v5515_v37 = vpack.c.bf16 %v1084_v34, %v1080_v25  ;;  %v1109_v25 = vld [vmem:[#allocation7 + $0x1b0] sm:$0xff]  ;;  %v1112_v34 = vld [vmem:[#allocation7 + $0x1c8] sm:$0xff] }
 0x16c   :  { %v517_v55 = vmul.f32 0.0, %v4903_v50  ;;  %v4905_v30 = vpop.eup %4904  ;;  %v1079_v50 = vld [vmem:[#allocation7 + $0xc0] sm:$0xff] }
 0x16e   :  { %v5442_v60 = vadd.f32 %v518_v43, %v517_v55  ;;  %v1086_v43 = vld [vmem:[#allocation7 + $0xf8] sm:$0xff] }
 0x16f   :  { %v5517_v55 = vpack.c.bf16 %v1086_v43, %v1082_v36  ;;  %v1116_v36 = vld [vmem:[#allocation7 + $0x1e8] sm:$0xff]  ;;  %v5559_v43 = vpack.c.bf16 %v1109_v25, %v1105_v16 }
 0x170   :  { %4906 = vtanh.f32 %v5442_v60 }
 0x17a   :  { %v4907_v59 = vpop.eup %4906 }
 0x17b   :  { %v521_v5 = vmul.f32 %v4907_v59, %v4905_v30  ;;  %v5519_v30 = vpack.c.bf16 %v1083_v54, %v1079_v50  ;;  %v1081_v59 = vld [vmem:[#allocation7 + $0xd0] sm:$0xff]  ;;  %v5561_v50 = vpack.c.bf16 %v1116_v36, %v1112_v34  ;;  %v1114_v54 = vld [vmem:[#allocation7 + $0x1d8] sm:$0xff] }
 0x17d   :  { %522 = vst [vmem:[#allocation8] sm:$0xff] %v521_v5  ;;  %718 = vmatmul.mubr.f32.vlgmr.msra.gmra.mrb[2].mxu0 %v521_v5  ;;  %789 = vmatmul.mubr.f32.vlgmr.msra.gmra.mrb[2].mxu1 %v521_v5  ;;  %v1085_v5 = vld [vmem:[#allocation7 + $0xf0] sm:$0xff] }
 0x17e   :  { %4022 = vmatpush1.bf16.msra.mxu0 %v5294_v10  ;;  %4054 = vmatpush1.bf16.msra.mxu1 %v5298_v11  ;;  %v6434_v10 = vld [vmem:[#allocation12_spill] sm:$0xff]  ;;  %v6435_v11 = vld [vmem:[#allocation13_spill] sm:$0xff] }
 0x17f   :  { %4024 = vmatprep.subr.bf16.mxu0 %v5300_v12  ;;  %4056 = vmatprep.subr.bf16.mxu1 %v5303_v23  ;;  %v6436_v12 = vld [vmem:[#allocation14_spill] sm:$0xff]  ;;  %v6437_v23 = vld [vmem:[#allocation15_spill] sm:$0xff] }
 0x180   :  { %859 = vmatprep.mubr.f32.mxu0 %v6433_v45  ;;  %930 = vmatprep.mubr.f32.mxu1 %v6433_v45 }
 0x182   :  { %4026 = vmatpush1.bf16.msra.mxu0 %v5308_v33  ;;  %4058 = vmatpush1.bf16.msra.mxu1 %v5312_v38  ;;  %v6440_v33 = vld [vmem:[#allocation18_spill] sm:$0xff]  ;;  %v6441_v38 = vld [vmem:[#allocation19_spill] sm:$0xff] }
 0x183   :  { %4028 = vmatprep.subr.bf16.mxu0 %v5314_v41  ;;  %4060 = vmatprep.subr.bf16.mxu1 %v5317_v47  ;;  %v6442_v41 = vld [vmem:[#allocation20_spill] sm:$0xff]  ;;  %v6443_v47 = vld [vmem:[#allocation21_spill] sm:$0xff] }
 0x186   :  { %4030 = vmatpush1.bf16.msra.mxu0 %v5322_v61  ;;  %4062 = vmatpush1.bf16.msra.mxu1 %v6434_v10  ;;  %v524_v61 = vld [vmem:[#allocation2 + $0x8] sm:$0xff]  ;;  %v5522_v10 = vpack.c.bf16 %v1085_v5, %v1081_v59  ;;  %v1118_v59 = vld [vmem:[#allocation7 + $0x1f8] sm:$0xff]  ;;  %v1111_v5 = vld [vmem:[#allocation7 + $0x1c0] sm:$0xff] }
 0x187   :  { %4032 = vmatprep.subr.bf16.mxu0 %v6435_v11  ;;  %4064 = vmatprep.subr.bf16.mxu1 %v6436_v12  ;;  %v1088_v11 = vld [vmem:[#allocation7 + $0x108] sm:$0xff] }
 0x188   :  { %v1092_v12 = vld [vmem:[#allocation7 + $0x128] sm:$0xff] }
 0x18a   :  { %4034 = vmatpush1.bf16.msra.mxu0 %v6437_v23  ;;  %4066 = vmatpush1.bf16.msra.mxu1 %v6438_v24  ;;  %v1090_v23 = vld [vmem:[#allocation7 + $0x118] sm:$0xff]  ;;  %v5527_v24 = vpack.c.bf16 %v1092_v12, %v1088_v11  ;;  %v5563_v11 = vpack.c.bf16 %v1118_v59, %v1114_v54  ;;  %v1115_v12 = vld [vmem:[#allocation7 + $0x1e0] sm:$0xff] }
 0x18b   :  { %4036 = vmatprep.subr.bf16.mxu0 %v6439_v28  ;;  %4068 = vmatprep.subr.bf16.mxu1 %v6440_v33  ;;  %v1094_v28 = vld [vmem:[#allocation7 + $0x138] sm:$0xff]  ;;  %v1087_v33 = vld [vmem:[#allocation7 + $0x100] sm:$0xff] }
 0x18e   :  { %4038 = vmatpush1.bf16.msra.mxu0 %v6441_v38  ;;  %4070 = vmatpush1.bf16.msra.mxu1 %v6442_v41  ;;  %v1091_v38 = vld [vmem:[#allocation7 + $0x120] sm:$0xff]  ;;  %v5529_v41 = vpack.c.bf16 %v1094_v28, %v1090_v23  ;;  %v1113_v23 = vld [vmem:[#allocation7 + $0x1d0] sm:$0xff] }
 0x18f   :  { %4040 = vmatprep.subr.bf16.mxu0 %v5352_v21  ;;  %4072 = vmatprep.subr.bf16.mxu1 %v6443_v47  ;;  %v1060_v21 = vld [vmem:[#allocation7 + $0x28] sm:$0xff]  ;;  %v5531_v47 = vpack.c.bf16 %v1091_v38, %v1087_v33  ;;  %v1117_v28 = vld [vmem:[#allocation7 + $0x1f0] sm:$0xff]  ;;  %v5566_v33 = vpack.c.bf16 %v1115_v12, %v1111_v5 }
 0x190   :  { %v992_v38 = vld [vmem:[#allocation5 + $0x8] sm:$0xff] }
 0x192   :  { %4042 = vmatpush1.bf16.msra.mxu0 %v5358_v42  ;;  %4074 = vmatpush1.bf16.msra.mxu1 %v5362_v0  ;;  %v1056_v42 = vld [vmem:[#allocation7 + $0x8] sm:$0xff] }
 0x193   :  { %4044 = vmatprep.subr.bf16.mxu0 %v5364_v49  ;;  %4076 = vmatprep.subr.bf16.mxu1 %v5367_v6  ;;  %v5479_v0 = vpack.c.bf16 %v1060_v21, %v1056_v42  ;;  %v1062_v49 = vld [vmem:[#allocation7 + $0x38] sm:$0xff]  ;;  %v1055_v6 = vld [vmem:[#allocation7] sm:$0xff]  ;;  %v1093_v42 = vld [vmem:[#allocation7 + $0x130] sm:$0xff] }
 0x196   :  { %4046 = vmatpush1.bf16.msra.mxu0 %v5370_v14  ;;  %4078 = vmatpush1.bf16.msra.mxu1 %v5374_v3  ;;  %v1058_v14 = vld [vmem:[#allocation7 + $0x18] sm:$0xff]  ;;  %v1059_v3 = vld [vmem:[#allocation7 + $0x20] sm:$0xff] }
 0x197   :  { %4048 = vmatprep.subr.bf16.mxu0 %v5376_v15  ;;  %4080 = vmatprep.subr.bf16.mxu1 %v5379_v46  ;;  %v5481_v15 = vpack.c.bf16 %v1062_v49, %v1058_v14  ;;  %v5483_v32 = vpack.c.bf16 %v1059_v3, %v1055_v6  ;;  %v1061_v46 = vld [vmem:[#allocation7 + $0x30] sm:$0xff]  ;;  %v1096_v14 = vld [vmem:[#allocation7 + $0x148] sm:$0xff]  ;;  %v1098_v6 = vld [vmem:[#allocation7 + $0x158] sm:$0xff] }
 0x198   :  { %v5486_v48 = vpack.c.bf16 %v1061_v46, %v1057_v29  ;;  %v1100_v49 = vld [vmem:[#allocation7 + $0x168] sm:$0xff]  ;;  %v1102_v29 = vld [vmem:[#allocation7 + $0x178] sm:$0xff]  ;;  %v1095_v46 = vld [vmem:[#allocation7 + $0x140] sm:$0xff] }
 0x199   :  { %v5539_v3 = vpack.c.bf16 %v1100_v49, %v1096_v14  ;;  %v5570_v14 = vpack.c.bf16 %v1117_v28, %v1113_v23 }
 0x19a   :  { %4050 = vmatpush1.bf16.msra.mxu0 %v5382_v58  ;;  %4082 = vmatpush1.bf16.msra.mxu1 %v5386_v56  ;;  %v1064_v58 = vld [vmem:[#allocation7 + $0x48] sm:$0xff] }
 0x19b   :  { %4084 = vmatprep.subr.bf16.mxu0 %v5479_v0  ;;  %4116 = vmatprep.subr.bf16.mxu1 %v5481_v15  ;;  %v1068_v56 = vld [vmem:[#allocation7 + $0x68] sm:$0xff] }
 0x19c   :  { %v5491_v4 = vpack.c.bf16 %v1068_v56, %v1064_v58  ;;  %v1099_v58 = vld [vmem:[#allocation7 + $0x160] sm:$0xff]  ;;  %v5541_v56 = vpack.c.bf16 %v1102_v29, %v1098_v6  ;;  %v998_v6 = vld [vmem:[#allocation5 + $0x38] sm:$0xff] }
 0x19d   :  { %860 = vmatmul.mubr.f32.vlgmr.msra.gmra.mrb[2].mxu0 %v524_v61  ;;  %931 = vmatmul.mubr.f32.vlgmr.msra.gmra.mrb[2].mxu1 %v524_v61  ;;  %v1089_v61 = vld [vmem:[#allocation7 + $0x110] sm:$0xff]  ;;  %v5543_v62 = vpack.c.bf16 %v1099_v58, %v1095_v46  ;;  %v937_v46 = vld [vmem:[%s6361_s3] sm:$0xf] }
 0x19e   :  { %1183 = vmatprep.mubr.f32.mxu0 %v6433_v45  ;;  %1254 = vmatprep.mubr.f32.mxu1 %v6433_v45  ;;  %v5534_v21 = vpack.c.bf16 %v1093_v42, %v1089_v61  ;;  %v996_v61 = vld [vmem:[#allocation5 + $0x28] sm:$0xff]  ;;  %v994_v42 = vld [vmem:[#allocation5 + $0x18] sm:$0xff]  ;;  %v942_v58 = vrot.slane %v937_v46, %v5427_v9  ;;  %v946_v8 = vrot.slane %v937_v46, %v5432_v17 }
 0x19f   :  { %4086 = vmatpush1.bf16.msra.mxu0 %v5483_v32  ;;  %4118 = vmatpush1.bf16.msra.mxu1 %v5486_v48  ;;  %v5572_v49 = vpack.c.bf16 %v996_v61, %v992_v38  ;;  %v5575_v29 = vpack.c.bf16 %v998_v6, %v994_v42  ;;  %v950_v25 = vrot.slane %v937_v46, %v5436_v27 }
 0x1a0   :  { %4088 = vmatprep.subr.bf16.mxu0 %v5491_v4  ;;  %4120 = vmatprep.subr.bf16.mxu1 %v5493_v22  ;;  %v954_v34 = vrot.slane %v937_v46, %v5439_v57 }
 0x1a3   :  { %4090 = vmatpush1.bf16.msra.mxu0 %v5495_v26  ;;  %4122 = vmatpush1.bf16.msra.mxu1 %v5498_v39 }
 0x1a4   :  { %4092 = vmatprep.subr.bf16.mxu0 %v5503_v52  ;;  %4124 = vmatprep.subr.bf16.mxu1 %v5505_v2 }
 0x1a7   :  { %4094 = vmatpush1.bf16.msra.mxu0 %v5507_v7  ;;  %4126 = vmatpush1.bf16.msra.mxu1 %v5510_v20 }
 0x1a8   :  { %4096 = vmatprep.subr.bf16.mxu0 %v5515_v37  ;;  %4128 = vmatprep.subr.bf16.mxu1 %v5517_v55 }
 0x1ab   :  { %4098 = vmatpush1.bf16.msra.mxu0 %v5519_v30  ;;  %4130 = vmatpush1.bf16.msra.mxu1 %v5522_v10 }
 0x1ac   :  { %4100 = vmatprep.subr.bf16.mxu0 %v5527_v24  ;;  %4132 = vmatprep.subr.bf16.mxu1 %v5529_v41 }
 0x1af   :  { %4102 = vmatpush1.bf16.msra.mxu0 %v5531_v47  ;;  %4134 = vmatpush1.bf16.msra.mxu1 %v5534_v21 }
 0x1b0   :  { %4104 = vmatprep.subr.bf16.mxu0 %v5539_v3  ;;  %4136 = vmatprep.subr.bf16.mxu1 %v5541_v56 }
 0x1b3   :  { %4106 = vmatpush1.bf16.msra.mxu0 %v5543_v62  ;;  %4138 = vmatpush1.bf16.msra.mxu1 %v5546_v31 }
 0x1b4   :  { %4108 = vmatprep.subr.bf16.mxu0 %v5550_v51  ;;  %4140 = vmatprep.subr.bf16.mxu1 %v5552_v53 }
 0x1b7   :  { %4110 = vmatpush1.bf16.msra.mxu0 %v5555_v19  ;;  %4142 = vmatpush1.bf16.msra.mxu1 %v5559_v43 }
 0x1b8   :  { %4112 = vmatprep.subr.bf16.mxu0 %v5561_v50  ;;  %4144 = vmatprep.subr.bf16.mxu1 %v5563_v11 }
 0x1bb   :  { %4114 = vmatpush1.bf16.msra.mxu0 %v5566_v33  ;;  %4146 = vmatpush1.bf16.msra.mxu1 %v5570_v14 }
 0x1bc   :  { %4148 = vmatprep.subr.bf16.mxu0 %v5572_v49  ;;  %4180 = vmatprep.subr.bf16.mxu1 %v5575_v29 }
 0x270   :  { %v861_v13 = vpop.f32.mrb[2].mxu0  ;;  %v932_v18 = vpop.f32.mrb[2].mxu1 }
 0x271   :  { %v959_v35 = vadd.f32 %v942_v58, %v861_v13  ;;  %v863_v40 = vpop.f32.mrb[3].mxu0  ;;  %v934_v44 = vpop.f32.mrb[3].mxu1  ;;  %v961_v36 = vadd.f32 %v950_v25, %v932_v18  ;;  %v991_v18 = vld [vmem:[#allocation5] sm:$0xff]  ;;  %v1006_v25 = vld [vmem:[#allocation5 + $0x78] sm:$0xff] }
 0x272   :  { %v960_v63 = vadd.f32 %v946_v8, %v863_v40  ;;  %v962_v54 = vadd.f32 %v954_v34, %v934_v44  ;;  %v993_v40 = vld [vmem:[#allocation5 + $0x10] sm:$0xff] }
 0x273   :  { %v3806_v1 = vmul.f32 -1.442695, %v959_v35  ;;  %v3808_v59 = vmul.f32 -1.442695, %v961_v36  ;;  %v995_v35 = vld [vmem:[#allocation5 + $0x20] sm:$0xff]  ;;  %v997_v44 = vld [vmem:[#allocation5 + $0x30] sm:$0xff] }
 0x274   :  { %v3807_v16 = vmul.f32 -1.442695, %v960_v63  ;;  %v1000_v63 = vld [vmem:[#allocation5 + $0x48] sm:$0xff] }
 0x275   :  { %4908 = vpow2.f32 %v3806_v1  ;;  %v1004_v1 = vld [vmem:[#allocation5 + $0x68] sm:$0xff] }
 0x276   :  { %4910 = vpow2.f32 %v3807_v16  ;;  %v1002_v16 = vld [vmem:[#allocation5 + $0x58] sm:$0xff] }
 0x277   :  { %4912 = vtanh.f32 %v962_v54  ;;  %v5592_v54 = vpack.c.bf16 %v995_v35, %v991_v18  ;;  %v1007_v35 = vld [vmem:[#allocation5 + $0x80] sm:$0xff] }
 0x278   :  { %4914 = vpow2.f32 %v3808_v59  ;;  %v5594_v59 = vpack.c.bf16 %v997_v44, %v993_v40  ;;  %v1011_v40 = vld [vmem:[#allocation5 + $0xa0] sm:$0xff] }
 0x27f   :  { %v4909_v5 = vpop.eup %4908 }
 0x280   :  { %v972_v12 = vadd.f32 1.0, %v4909_v5  ;;  %v4911_v23 = vpop.eup %4910  ;;  %v1003_v5 = vld [vmem:[#allocation5 + $0x60] sm:$0xff] }
 0x281   :  { %v973_v28 = vadd.f32 1.0, %v4911_v23  ;;  %v4913_v38 = vpop.eup %4912  ;;  %v5596_v23 = vpack.c.bf16 %v1004_v1, %v1000_v63  ;;  %v1009_v1 = vld [vmem:[#allocation5 + $0x90] sm:$0xff] }
 0x282   :  { %4916 = vrcp.f32 %v972_v12  ;;  %v4915_v61 = vpop.eup %4914 }
 0x283   :  { %4918 = vrcp.f32 %v973_v28  ;;  %v974_v8 = vadd.f32 1.0, %v4915_v61  ;;  %6444 = vst [vmem:[#allocation12_spill] sm:$0xff] %v5596_v23  ;;  %v5598_v28 = vpack.c.bf16 %v1006_v25, %v1002_v16  ;;  %v1005_v61 = vld [vmem:[#allocation5 + $0x70] sm:$0xff]  ;;  %v1016_v25 = vld [vmem:[#allocation5 + $0xc8] sm:$0xff] }
 0x284   :  { %v1013_v16 = vld [vmem:[#allocation5 + $0xb0] sm:$0xff] }
 0x285   :  { %4920 = vrcp.f32 %v974_v8  ;;  %6445 = vst [vmem:[#allocation13_spill] sm:$0xff] %v5598_v28  ;;  %v1014_v8 = vld [vmem:[#allocation5 + $0xb8] sm:$0xff] }
 0x28c   :  { %v4917_v42 = vpop.eup %4916 }
 0x28d   :  { %v983_v6 = vmul.f32 %v4917_v42, %v4913_v38  ;;  %v4919_v58 = vpop.eup %4918  ;;  %v1001_v38 = vld [vmem:[#allocation5 + $0x50] sm:$0xff]  ;;  %v1008_v42 = vld [vmem:[#allocation5 + $0x88] sm:$0xff] }
 0x28e   :  { %v982_v13 = vmul.f32 %v4919_v58, %v5442_v60  ;;  %v999_v60 = vld [vmem:[#allocation5 + $0x40] sm:$0xff]  ;;  %v1010_v58 = vld [vmem:[#allocation5 + $0x98] sm:$0xff]  ;;  %v5604_v18 = vpack.c.bf16 %v1005_v61, %v1001_v38 }
 0x28f   :  { %v4921_v34 = vpop.eup %4920  ;;  %v5610_v63 = vpack.c.bf16 %v1014_v8, %v1010_v58  ;;  %v1015_v38 = vld [vmem:[#allocation5 + $0xc0] sm:$0xff]  ;;  %v1017_v58 = vld [vmem:[#allocation5 + $0xd0] sm:$0xff] }
 0x290   :  { %v5589_v46 = vadd.f32 %v983_v6, %v982_v13  ;;  %v1012_v6 = vld [vmem:[#allocation5 + $0xa8] sm:$0xff]  ;;  %v5602_v13 = vpack.c.bf16 %v1003_v5, %v999_v60  ;;  %6447 = vst [vmem:[#allocation15_spill] sm:$0xff] %v5604_v18  ;;  %v5616_v60 = vpack.c.bf16 %v1011_v40, %v1007_v35  ;;  %v5618_v5 = vpack.c.bf16 %v1013_v16, %v1009_v1  ;;  %v1019_v61 = vld [vmem:[#allocation5 + $0xe0] sm:$0xff]  ;;  %v1021_v8 = vld [vmem:[#allocation5 + $0xf0] sm:$0xff] }
 0x291   :  { %v5608_v44 = vpack.c.bf16 %v1012_v6, %v1008_v42  ;;  %6449 = vst [vmem:[#allocation17_spill] sm:$0xff] %v5610_v63  ;;  %v5628_v35 = vpack.c.bf16 %v1019_v61, %v1015_v38  ;;  %v5630_v40 = vpack.c.bf16 %v1021_v8, %v1017_v58  ;;  %v1023_v1 = vld [vmem:[#allocation5 + $0x100] sm:$0xff] }
 0x292   :  { %4922 = vtanh.f32 %v5589_v46  ;;  %6446 = vst [vmem:[#allocation14_spill] sm:$0xff] %v5602_v13  ;;  %6450 = vst [vmem:[#allocation18_spill] sm:$0xff] %v5616_v60  ;;  %v1027_v16 = vld [vmem:[#allocation5 + $0x120] sm:$0xff] }
 0x293   :  { %6448 = vst [vmem:[#allocation16_spill] sm:$0xff] %v5608_v44  ;;  %6451 = vst [vmem:[#allocation19_spill] sm:$0xff] %v5618_v5  ;;  %v5640_v38 = vpack.c.bf16 %v1027_v16, %v1023_v1  ;;  %v1031_v58 = vld [vmem:[#allocation5 + $0x140] sm:$0xff] }
 0x294   :  { %6454 = vst [vmem:[#allocation22_spill] sm:$0xff] %v5628_v35  ;;  %6455 = vst [vmem:[#allocation23_spill] sm:$0xff] %v5630_v40  ;;  %v1035_v8 = vld [vmem:[#allocation5 + $0x160] sm:$0xff] }
 0x295   :  { %6458 = vst [vmem:[#allocation26_spill] sm:$0xff] %v5640_v38  ;;  %v5652_v1 = vpack.c.bf16 %v1035_v8, %v1031_v58 }
 0x29c   :  { %v4923_v36 = vpop.eup %4922 }
 0x29d   :  { %v986_v12 = vmul.f32 %v4923_v36, %v4921_v34  ;;  %v1020_v34 = vld [vmem:[#allocation5 + $0xe8] sm:$0xff]  ;;  %v1018_v36 = vld [vmem:[#allocation5 + $0xd8] sm:$0xff] }
 0x29e   :  { %v5622_v42 = vpack.c.bf16 %v1020_v34, %v1016_v25 }
 0x29f   :  { %988 = vst [vmem:[#allocation8 + $0x8] sm:$0xff] %v986_v12  ;;  %1184 = vmatmul.mubr.f32.vlgmr.msra.gmra.mrb[4].mxu0 %v986_v12  ;;  %1255 = vmatmul.mubr.f32.vlgmr.msra.gmra.mrb[4].mxu1 %v986_v12  ;;  %v1022_v12 = vld [vmem:[#allocation5 + $0xf8] sm:$0xff] }
 0x2a0   :  { %4150 = vmatpush1.bf16.msra.mxu0 %v5592_v54  ;;  %4182 = vmatpush1.bf16.msra.mxu1 %v5594_v59  ;;  %6452 = vst [vmem:[#allocation20_spill] sm:$0xff] %v5622_v42  ;;  %v5624_v6 = vpack.c.bf16 %v1022_v12, %v1018_v36  ;;  %v1025_v36 = vld [vmem:[#allocation5 + $0x110] sm:$0xff] }
 0x2a1   :  { %4152 = vmatprep.subr.bf16.mxu0 %v5596_v23  ;;  %4184 = vmatprep.subr.bf16.mxu1 %v5598_v28  ;;  %v1024_v28 = vld [vmem:[#allocation5 + $0x108] sm:$0xff]  ;;  %v1026_v23 = vld [vmem:[#allocation5 + $0x118] sm:$0xff]  ;;  %v1029_v12 = vld [vmem:[#allocation5 + $0x130] sm:$0xff] }
 0x2a2   :  { %1325 = vmatprep.mubr.f32.mxu0 %v6433_v45  ;;  %1396 = vmatprep.mubr.f32.mxu1 %v6433_v45  ;;  %6453 = vst [vmem:[#allocation21_spill] sm:$0xff] %v5624_v6  ;;  %v5642_v61 = vpack.c.bf16 %v1029_v12, %v1025_v36  ;;  %v1039_v36 = vld [vmem:[#allocation5 + $0x180] sm:$0xff] }
 0x2a3   :  { %v1043_v12 = vld [vmem:[#allocation5 + $0x1a0] sm:$0xff] }
 0x2a4   :  { %4154 = vmatpush1.bf16.msra.mxu0 %v5602_v13  ;;  %4186 = vmatpush1.bf16.msra.mxu1 %v5604_v18  ;;  %v1028_v13 = vld [vmem:[#allocation5 + $0x128] sm:$0xff]  ;;  %v1030_v18 = vld [vmem:[#allocation5 + $0x138] sm:$0xff]  ;;  %6459 = vst [vmem:[#allocation27_spill] sm:$0xff] %v5642_v61  ;;  %v5664_v58 = vpack.c.bf16 %v1043_v12, %v1039_v36 }
 0x2a5   :  { %4156 = vmatprep.subr.bf16.mxu0 %v5608_v44  ;;  %4188 = vmatprep.subr.bf16.mxu1 %v5610_v63  ;;  %v5634_v25 = vpack.c.bf16 %v1028_v13, %v1024_v28  ;;  %v5636_v34 = vpack.c.bf16 %v1030_v18, %v1026_v23  ;;  %v1032_v63 = vld [vmem:[#allocation5 + $0x148] sm:$0xff]  ;;  %v1034_v44 = vld [vmem:[#allocation5 + $0x158] sm:$0xff]  ;;  %v1033_v13 = vld [vmem:[#allocation5 + $0x150] sm:$0xff] }
 0x2a6   :  { %v1037_v18 = vld [vmem:[#allocation5 + $0x170] sm:$0xff] }
 0x2a7   :  { %6456 = vst [vmem:[#allocation24_spill] sm:$0xff] %v5634_v25  ;;  %6457 = vst [vmem:[#allocation25_spill] sm:$0xff] %v5636_v34  ;;  %v5654_v16 = vpack.c.bf16 %v1037_v18, %v1033_v13  ;;  %v1047_v13 = vld [vmem:[#allocation5 + $0x1c0] sm:$0xff]  ;;  %v1053_v18 = vld [vmem:[#allocation5 + $0x1f0] sm:$0xff] }
 0x2a8   :  { %4158 = vmatpush1.bf16.msra.mxu0 %v5616_v60  ;;  %4190 = vmatpush1.bf16.msra.mxu1 %v5618_v5  ;;  %v1036_v60 = vld [vmem:[#allocation5 + $0x168] sm:$0xff]  ;;  %v1038_v5 = vld [vmem:[#allocation5 + $0x178] sm:$0xff] }
 0x2a9   :  { %4160 = vmatprep.subr.bf16.mxu0 %v5622_v42  ;;  %4192 = vmatprep.subr.bf16.mxu1 %v5624_v6  ;;  %v5646_v23 = vpack.c.bf16 %v1036_v60, %v1032_v63  ;;  %v5648_v28 = vpack.c.bf16 %v1038_v5, %v1034_v44  ;;  %v1040_v6 = vld [vmem:[#allocation5 + $0x188] sm:$0xff]  ;;  %v1042_v42 = vld [vmem:[#allocation5 + $0x198] sm:$0xff]  ;;  %v1041_v60 = vld [vmem:[#allocation5 + $0x190] sm:$0xff] }
 0x2aa   :  { %v1045_v5 = vld [vmem:[#allocation5 + $0x1b0] sm:$0xff] }
 0x2ab   :  { %v5666_v8 = vpack.c.bf16 %v1045_v5, %v1041_v60  ;;  %v6469_v60 = vld [vmem:[#allocation21_spill] sm:$0xff]  ;;  %v6470_v5 = vld [vmem:[#allocation22_spill] sm:$0xff] }
 0x2ac   :  { %4162 = vmatpush1.bf16.msra.mxu0 %v5628_v35  ;;  %4194 = vmatpush1.bf16.msra.mxu1 %v5630_v40  ;;  %v1044_v35 = vld [vmem:[#allocation5 + $0x1a8] sm:$0xff]  ;;  %v1046_v40 = vld [vmem:[#allocation5 + $0x1b8] sm:$0xff] }
 0x2ad   :  { %4164 = vmatprep.subr.bf16.mxu0 %v5634_v25  ;;  %4196 = vmatprep.subr.bf16.mxu1 %v5636_v34  ;;  %v5658_v44 = vpack.c.bf16 %v1044_v35, %v1040_v6  ;;  %v5660_v63 = vpack.c.bf16 %v1046_v40, %v1042_v42  ;;  %v1048_v34 = vld [vmem:[#allocation5 + $0x1c8] sm:$0xff]  ;;  %v1050_v25 = vld [vmem:[#allocation5 + $0x1d8] sm:$0xff]  ;;  %v1051_v35 = vld [vmem:[#allocation5 + $0x1e0] sm:$0xff] }
 0x2ae   :  { %v1049_v40 = vld [vmem:[#allocation5 + $0x1d0] sm:$0xff]  ;;  %v5676_v36 = vpack.c.bf16 %v1051_v35, %v1047_v13  ;;  %v6471_v13 = vld [vmem:[#allocation23_spill] sm:$0xff]  ;;  %v6472_v35 = vld [vmem:[#allocation24_spill] sm:$0xff] }
 0x2af   :  { %v5678_v12 = vpack.c.bf16 %v1053_v18, %v1049_v40  ;;  %v6473_v40 = vld [vmem:[#allocation25_spill] sm:$0xff]  ;;  %v6474_v18 = vld [vmem:[#allocation26_spill] sm:$0xff] }
 0x2b0   :  { %4166 = vmatpush1.bf16.msra.mxu0 %v5640_v38  ;;  %4198 = vmatpush1.bf16.msra.mxu1 %v5642_v61  ;;  %v1052_v38 = vld [vmem:[#allocation5 + $0x1e8] sm:$0xff]  ;;  %v1054_v61 = vld [vmem:[#allocation5 + $0x1f8] sm:$0xff] }
 0x2b1   :  { %4168 = vmatprep.subr.bf16.mxu0 %v5646_v23  ;;  %4200 = vmatprep.subr.bf16.mxu1 %v5648_v28  ;;  %v5670_v42 = vpack.c.bf16 %v1052_v38, %v1048_v34  ;;  %v5672_v6 = vpack.c.bf16 %v1054_v61, %v1050_v25  ;;  %v990_v25 = vld [vmem:[#allocation2 + $0x10] sm:$0xff]  ;;  %v6464_v34 = vld [vmem:[#allocation16_spill] sm:$0xff]  ;;  %v6465_v38 = vld [vmem:[#allocation17_spill] sm:$0xff] }
 0x2b2   :  { %v6466_v61 = vld [vmem:[#allocation18_spill] sm:$0xff] }
 0x2b4   :  { %4170 = vmatpush1.bf16.msra.mxu0 %v5652_v1  ;;  %4202 = vmatpush1.bf16.msra.mxu1 %v5654_v16 }
 0x2b5   :  { %4172 = vmatprep.subr.bf16.mxu0 %v5658_v44  ;;  %4204 = vmatprep.subr.bf16.mxu1 %v5660_v63 }
 0x2b8   :  { %4174 = vmatpush1.bf16.msra.mxu0 %v5664_v58  ;;  %4206 = vmatpush1.bf16.msra.mxu1 %v5666_v8 }
 0x2b9   :  { %4176 = vmatprep.subr.bf16.mxu0 %v5670_v42  ;;  %4208 = vmatprep.subr.bf16.mxu1 %v5672_v6 }
 0x2bc   :  { %4178 = vmatpush1.bf16.msra.mxu0 %v5676_v36  ;;  %4210 = vmatpush1.bf16.msra.mxu1 %v5678_v12 }
 0x2bd   :  { %4212 = vmatprep.subr.bf16.mxu0 %v5479_v0  ;;  %4244 = vmatprep.subr.bf16.mxu1 %v5481_v15  ;;  %v1403_v0 = vld [vmem:[%s6361_s3] sm:$0xf] }
 0x2be   :  { %v1408_v15 = vrot.slane %v1403_v0, %v5427_v9 }
 0x2bf   :  { %1326 = vmatmul.mubr.f32.vlgmr.msra.gmra.mrb[4].mxu0 %v990_v25  ;;  %1397 = vmatmul.mubr.f32.vlgmr.msra.gmra.mrb[4].mxu1 %v990_v25  ;;  %v6475_v25 = vld [vmem:[#allocation27_spill] sm:$0xff] }
 0x2c0   :  { %4214 = vmatpush1.bf16.msra.mxu0 %v5483_v32  ;;  %4246 = vmatpush1.bf16.msra.mxu1 %v5486_v48  ;;  %v1412_v32 = vrot.slane %v1403_v0, %v5432_v17 }
 0x2c1   :  { %4216 = vmatprep.subr.bf16.mxu0 %v5491_v4  ;;  %4248 = vmatprep.subr.bf16.mxu1 %v5493_v22 }
 0x2c2   :  { %1649 = vmatprep.mubr.f32.mxu0 %v6433_v45  ;;  %1720 = vmatprep.mubr.f32.mxu1 %v6433_v45 }
 0x2c4   :  { %4218 = vmatpush1.bf16.msra.mxu0 %v5495_v26  ;;  %4250 = vmatpush1.bf16.msra.mxu1 %v5498_v39 }
 0x2c5   :  { %4220 = vmatprep.subr.bf16.mxu0 %v5503_v52  ;;  %4252 = vmatprep.subr.bf16.mxu1 %v5505_v2 }
 0x2c8   :  { %4222 = vmatpush1.bf16.msra.mxu0 %v5507_v7  ;;  %4254 = vmatpush1.bf16.msra.mxu1 %v5510_v20  ;;  %v1416_v20 = vrot.slane %v1403_v0, %v5436_v27 }
 0x2c9   :  { %4224 = vmatprep.subr.bf16.mxu0 %v5515_v37  ;;  %4256 = vmatprep.subr.bf16.mxu1 %v5517_v55  ;;  %v1420_v37 = vrot.slane %v1403_v0, %v5439_v57 }
 0x2cc   :  { %4226 = vmatpush1.bf16.msra.mxu0 %v5519_v30  ;;  %4258 = vmatpush1.bf16.msra.mxu1 %v5522_v10 }
 0x2cd   :  { %4228 = vmatprep.subr.bf16.mxu0 %v5527_v24  ;;  %4260 = vmatprep.subr.bf16.mxu1 %v5529_v41 }
 0x2d0   :  { %4230 = vmatpush1.bf16.msra.mxu0 %v5531_v47  ;;  %4262 = vmatpush1.bf16.msra.mxu1 %v5534_v21 }
 0x2d1   :  { %4232 = vmatprep.subr.bf16.mxu0 %v5539_v3  ;;  %4264 = vmatprep.subr.bf16.mxu1 %v5541_v56 }
 0x2d4   :  { %4234 = vmatpush1.bf16.msra.mxu0 %v5543_v62  ;;  %4266 = vmatpush1.bf16.msra.mxu1 %v5546_v31 }
 0x2d5   :  { %4236 = vmatprep.subr.bf16.mxu0 %v5550_v51  ;;  %4268 = vmatprep.subr.bf16.mxu1 %v5552_v53 }
 0x2d8   :  { %4238 = vmatpush1.bf16.msra.mxu0 %v5555_v19  ;;  %4270 = vmatpush1.bf16.msra.mxu1 %v5559_v43 }
 0x2d9   :  { %4240 = vmatprep.subr.bf16.mxu0 %v5561_v50  ;;  %4272 = vmatprep.subr.bf16.mxu1 %v5563_v11 }
 0x2dc   :  { %4242 = vmatpush1.bf16.msra.mxu0 %v5566_v33  ;;  %4274 = vmatpush1.bf16.msra.mxu1 %v5570_v14  ;;  %v6460_v14 = vld [vmem:[#allocation12_spill] sm:$0xff] }
 0x2dd   :  { %4276 = vmatprep.subr.bf16.mxu0 %v5572_v49  ;;  %4308 = vmatprep.subr.bf16.mxu1 %v5575_v29  ;;  %v6461_v49 = vld [vmem:[#allocation13_spill] sm:$0xff]  ;;  %v6462_v29 = vld [vmem:[#allocation14_spill] sm:$0xff] }
 0x392   :  { %v1327_v48 = vpop.f32.mrb[4].mxu0  ;;  %v1398_v4 = vpop.f32.mrb[4].mxu1 }
 0x393   :  { %v1425_v22 = vadd.f32 %v1408_v15, %v1327_v48  ;;  %v1329_v26 = vpop.f32.mrb[5].mxu0  ;;  %v1400_v39 = vpop.f32.mrb[5].mxu1  ;;  %v1427_v55 = vadd.f32 %v1416_v20, %v1398_v4  ;;  %v1996_v15 = vld [vmem:[#allocation7 + $0x48] sm:$0xff]  ;;  %v1998_v48 = vld [vmem:[#allocation7 + $0x58] sm:$0xff]  ;;  %v2001_v20 = vld [vmem:[#allocation7 + $0x70] sm:$0xff] }
 0x394   :  { %v1426_v52 = vadd.f32 %v1412_v32, %v1329_v26  ;;  %v1428_v30 = vadd.f32 %v1420_v37, %v1400_v39  ;;  %v2000_v32 = vld [vmem:[#allocation7 + $0x68] sm:$0xff]  ;;  %v1995_v26 = vld [vmem:[#allocation7 + $0x40] sm:$0xff] }
 0x395   :  { %v3809_v2 = vmul.f32 -1.442695, %v1425_v22  ;;  %v3811_v10 = vmul.f32 -1.442695, %v1427_v55  ;;  %v5777_v4 = vpack.c.bf16 %v2000_v32, %v1996_v15  ;;  %v2002_v22 = vld [vmem:[#allocation7 + $0x78] sm:$0xff]  ;;  %v1999_v39 = vld [vmem:[#allocation7 + $0x60] sm:$0xff] }
 0x396   :  { %v3810_v7 = vmul.f32 -1.442695, %v1426_v52  ;;  %v5779_v52 = vpack.c.bf16 %v2002_v22, %v1998_v48  ;;  %v2004_v55 = vld [vmem:[#allocation7 + $0x88] sm:$0xff]  ;;  %v2031_v15 = vld [vmem:[#allocation7 + $0x160] sm:$0xff]  ;;  %v2029_v22 = vld [vmem:[#allocation7 + $0x150] sm:$0xff] }
 0x397   :  { %4924 = vpow2.f32 %v3809_v2  ;;  %v5781_v2 = vpack.c.bf16 %v1999_v39, %v1995_v26  ;;  %v2033_v26 = vld [vmem:[#allocation7 + $0x170] sm:$0xff] }
 0x398   :  { %4926 = vpow2.f32 %v3810_v7  ;;  %v1997_v7 = vld [vmem:[#allocation7 + $0x50] sm:$0xff]  ;;  %v5832_v39 = vpack.c.bf16 %v2033_v26, %v2029_v22 }
 0x399   :  { %4928 = vtanh.f32 %v1428_v30  ;;  %v5784_v37 = vpack.c.bf16 %v2001_v20, %v1997_v7  ;;  %v2008_v30 = vld [vmem:[#allocation7 + $0xa8] sm:$0xff] }
 0x39a   :  { %4930 = vpow2.f32 %v3811_v10  ;;  %v2006_v10 = vld [vmem:[#allocation7 + $0x98] sm:$0xff]  ;;  %v2036_v7 = vld [vmem:[#allocation7 + $0x188] sm:$0xff] }
 0x39b   :  { %v2040_v20 = vld [vmem:[#allocation7 + $0x1a8] sm:$0xff] }
 0x3a1   :  { %v4925_v24 = vpop.eup %4924 }
 0x3a2   :  { %v1438_v41 = vadd.f32 1.0, %v4925_v24  ;;  %v4927_v47 = vpop.eup %4926  ;;  %v5789_v24 = vpack.c.bf16 %v2008_v30, %v2004_v55  ;;  %v2038_v55 = vld [vmem:[#allocation7 + $0x198] sm:$0xff]  ;;  %v5836_v30 = vpack.c.bf16 %v2040_v20, %v2036_v7 }
 0x3a3   :  { %v1439_v21 = vadd.f32 1.0, %v4927_v47  ;;  %v4929_v3 = vpop.eup %4928  ;;  %v2003_v47 = vld [vmem:[#allocation7 + $0x80] sm:$0xff] }
 0x3a4   :  { %4932 = vrcp.f32 %v1438_v41  ;;  %v4931_v56 = vpop.eup %4930  ;;  %v2010_v41 = vld [vmem:[#allocation7 + $0xb8] sm:$0xff] }
 0x3a5   :  { %4934 = vrcp.f32 %v1439_v21  ;;  %v1440_v53 = vadd.f32 1.0, %v4931_v56  ;;  %v2007_v21 = vld [vmem:[#allocation7 + $0xa0] sm:$0xff] }
 0x3a6   :  { %v5793_v56 = vpack.c.bf16 %v2007_v21, %v2003_v47  ;;  %v2039_v47 = vld [vmem:[#allocation7 + $0x1a0] sm:$0xff] }
 0x3a7   :  { %4936 = vrcp.f32 %v1440_v53  ;;  %v2012_v53 = vld [vmem:[#allocation7 + $0xc8] sm:$0xff] }
 0x3ae   :  { %v4933_v62 = vpop.eup %4932 }
 0x3af   :  { %v1449_v31 = vmul.f32 %v4933_v62, %v4929_v3  ;;  %v4935_v51 = vpop.eup %4934  ;;  %v5791_v3 = vpack.c.bf16 %v2010_v41, %v2006_v10  ;;  %v2005_v62 = vld [vmem:[#allocation7 + $0x90] sm:$0xff]  ;;  %v2042_v10 = vld [vmem:[#allocation7 + $0x1b8] sm:$0xff]  ;;  %v2035_v41 = vld [vmem:[#allocation7 + $0x180] sm:$0xff] }
 0x3b0   :  { %v1448_v19 = vmul.f32 %v4935_v51, %v5589_v46  ;;  %v6463_v46 = vld [vmem:[#allocation15_spill] sm:$0xff]  ;;  %v5839_v21 = vpack.c.bf16 %v2042_v10, %v2038_v55 }
 0x3b1   :  { %v4937_v50 = vpop.eup %4936 }
 0x3b2   :  { %v5728_v43 = vadd.f32 %v1449_v31, %v1448_v19  ;;  %v2009_v31 = vld [vmem:[#allocation7 + $0xb0] sm:$0xff]  ;;  %v2016_v19 = vld [vmem:[#allocation7 + $0xe8] sm:$0xff] }
 0x3b3   :  { %v5796_v51 = vpack.c.bf16 %v2009_v31, %v2005_v62  ;;  %v5841_v62 = vpack.c.bf16 %v2039_v47, %v2035_v41  ;;  %v2037_v31 = vld [vmem:[#allocation7 + $0x190] sm:$0xff] }
 0x3b4   :  { %4938 = vtanh.f32 %v5728_v43 }
 0x3be   :  { %v4939_v11 = vpop.eup %4938 }
 0x3bf   :  { %v1452_v33 = vmul.f32 %v4939_v11, %v4937_v50  ;;  %v2014_v50 = vld [vmem:[#allocation7 + $0xd8] sm:$0xff]  ;;  %v5801_v11 = vpack.c.bf16 %v2016_v19, %v2012_v53  ;;  %v2041_v53 = vld [vmem:[#allocation7 + $0x1b0] sm:$0xff]  ;;  %v2044_v19 = vld [vmem:[#allocation7 + $0x1c8] sm:$0xff] }
 0x3c1   :  { %1454 = vst [vmem:[#allocation8 + $0x10] sm:$0xff] %v1452_v33  ;;  %1650 = vmatmul.mubr.f32.vlgmr.msra.gmra.mrb[6].mxu0 %v1452_v33  ;;  %1721 = vmatmul.mubr.f32.vlgmr.msra.gmra.mrb[6].mxu1 %v1452_v33  ;;  %v2018_v33 = vld [vmem:[#allocation7 + $0xf8] sm:$0xff] }
 0x3c2   :  { %4278 = vmatpush1.bf16.msra.mxu0 %v5592_v54  ;;  %4310 = vmatpush1.bf16.msra.mxu1 %v5594_v59  ;;  %v6467_v54 = vld [vmem:[#allocation19_spill] sm:$0xff]  ;;  %v6468_v59 = vld [vmem:[#allocation20_spill] sm:$0xff] }
 0x3c3   :  { %4280 = vmatprep.subr.bf16.mxu0 %v6460_v14  ;;  %4312 = vmatprep.subr.bf16.mxu1 %v6461_v49  ;;  %v2011_v14 = vld [vmem:[#allocation7 + $0xc0] sm:$0xff] }
 0x3c4   :  { %1791 = vmatprep.mubr.f32.mxu0 %v6433_v45  ;;  %1862 = vmatprep.mubr.f32.mxu1 %v6433_v45  ;;  %v2015_v49 = vld [vmem:[#allocation7 + $0xe0] sm:$0xff] }
 0x3c6   :  { %4282 = vmatpush1.bf16.msra.mxu0 %v6462_v29  ;;  %4314 = vmatpush1.bf16.msra.mxu1 %v6463_v46  ;;  %v5803_v29 = vpack.c.bf16 %v2018_v33, %v2014_v50  ;;  %v5805_v46 = vpack.c.bf16 %v2015_v49, %v2011_v14  ;;  %v5844_v50 = vpack.c.bf16 %v2041_v53, %v2037_v31  ;;  %v2048_v33 = vld [vmem:[#allocation7 + $0x1e8] sm:$0xff]  ;;  %v2046_v14 = vld [vmem:[#allocation7 + $0x1d8] sm:$0xff] }
 0x3c7   :  { %4284 = vmatprep.subr.bf16.mxu0 %v6464_v34  ;;  %4316 = vmatprep.subr.bf16.mxu1 %v6465_v38  ;;  %v2013_v34 = vld [vmem:[#allocation7 + $0xd0] sm:$0xff]  ;;  %v2050_v49 = vld [vmem:[#allocation7 + $0x1f8] sm:$0xff] }
 0x3c8   :  { %v2017_v38 = vld [vmem:[#allocation7 + $0xf0] sm:$0xff] }
 0x3ca   :  { %4286 = vmatpush1.bf16.msra.mxu0 %v6466_v61  ;;  %4318 = vmatpush1.bf16.msra.mxu1 %v6467_v54  ;;  %v5808_v61 = vpack.c.bf16 %v2017_v38, %v2013_v34  ;;  %v2020_v54 = vld [vmem:[#allocation7 + $0x108] sm:$0xff]  ;;  %v5847_v34 = vpack.c.bf16 %v2048_v33, %v2044_v19  ;;  %v5849_v38 = vpack.c.bf16 %v2050_v49, %v2046_v14 }
 0x3cb   :  { %4288 = vmatprep.subr.bf16.mxu0 %v6468_v59  ;;  %4320 = vmatprep.subr.bf16.mxu1 %v6469_v60  ;;  %v2024_v59 = vld [vmem:[#allocation7 + $0x128] sm:$0xff]  ;;  %v2022_v60 = vld [vmem:[#allocation7 + $0x118] sm:$0xff] }
 0x3ce   :  { %4290 = vmatpush1.bf16.msra.mxu0 %v6470_v5  ;;  %4322 = vmatpush1.bf16.msra.mxu1 %v6471_v13  ;;  %v5813_v5 = vpack.c.bf16 %v2024_v59, %v2020_v54  ;;  %v2026_v13 = vld [vmem:[#allocation7 + $0x138] sm:$0xff]  ;;  %v2043_v54 = vld [vmem:[#allocation7 + $0x1c0] sm:$0xff] }
 0x3cf   :  { %4292 = vmatprep.subr.bf16.mxu0 %v6472_v35  ;;  %4324 = vmatprep.subr.bf16.mxu1 %v6473_v40  ;;  %v2019_v35 = vld [vmem:[#allocation7 + $0x100] sm:$0xff] }
 0x3d0   :  { %v2023_v40 = vld [vmem:[#allocation7 + $0x120] sm:$0xff] }
 0x3d1   :  { %v2047_v59 = vld [vmem:[#allocation7 + $0x1e0] sm:$0xff] }
 0x3d2   :  { %4294 = vmatpush1.bf16.msra.mxu0 %v6474_v18  ;;  %4326 = vmatpush1.bf16.msra.mxu1 %v6475_v25  ;;  %v5815_v18 = vpack.c.bf16 %v2026_v13, %v2022_v60  ;;  %v5817_v25 = vpack.c.bf16 %v2023_v40, %v2019_v35  ;;  %v2045_v60 = vld [vmem:[#allocation7 + $0x1d0] sm:$0xff]  ;;  %v5852_v13 = vpack.c.bf16 %v2047_v59, %v2043_v54  ;;  %v1924_v40 = vld [vmem:[#allocation5 + $0x8] sm:$0xff] }
 0x3d3   :  { %4296 = vmatprep.subr.bf16.mxu0 %v5646_v23  ;;  %4328 = vmatprep.subr.bf16.mxu1 %v5648_v28  ;;  %v1456_v23 = vld [vmem:[#allocation2 + $0x18] sm:$0xff]  ;;  %v1988_v28 = vld [vmem:[#allocation7 + $0x8] sm:$0xff]  ;;  %v2049_v35 = vld [vmem:[#allocation7 + $0x1f0] sm:$0xff] }
 0x3d6   :  { %4298 = vmatpush1.bf16.msra.mxu0 %v5652_v1  ;;  %4330 = vmatpush1.bf16.msra.mxu1 %v5654_v16  ;;  %v1992_v1 = vld [vmem:[#allocation7 + $0x28] sm:$0xff]  ;;  %v1990_v16 = vld [vmem:[#allocation7 + $0x18] sm:$0xff] }
 0x3d7   :  { %4300 = vmatprep.subr.bf16.mxu0 %v5658_v44  ;;  %4332 = vmatprep.subr.bf16.mxu1 %v5660_v63  ;;  %v5765_v44 = vpack.c.bf16 %v1992_v1, %v1988_v28  ;;  %v1994_v63 = vld [vmem:[#allocation7 + $0x38] sm:$0xff]  ;;  %v2025_v28 = vld [vmem:[#allocation7 + $0x130] sm:$0xff] }
 0x3da   :  { %4302 = vmatpush1.bf16.msra.mxu0 %v5664_v58  ;;  %4334 = vmatpush1.bf16.msra.mxu1 %v5666_v8  ;;  %v1987_v58 = vld [vmem:[#allocation7] sm:$0xff] }
 0x3db   :  { %4304 = vmatprep.subr.bf16.mxu0 %v5670_v42  ;;  %4336 = vmatprep.subr.bf16.mxu1 %v5672_v6  ;;  %v1991_v8 = vld [vmem:[#allocation7 + $0x20] sm:$0xff]  ;;  %v5767_v42 = vpack.c.bf16 %v1994_v63, %v1990_v16  ;;  %v2028_v16 = vld [vmem:[#allocation7 + $0x148] sm:$0xff] }
 0x3dc   :  { %v5769_v6 = vpack.c.bf16 %v1991_v8, %v1987_v58  ;;  %v2032_v63 = vld [vmem:[#allocation7 + $0x168] sm:$0xff]  ;;  %v2030_v58 = vld [vmem:[#allocation7 + $0x158] sm:$0xff] }
 0x3dd   :  { %v5825_v8 = vpack.c.bf16 %v2032_v63, %v2028_v16  ;;  %v1926_v63 = vld [vmem:[#allocation5 + $0x18] sm:$0xff] }
 0x3de   :  { %4306 = vmatpush1.bf16.msra.mxu0 %v5676_v36  ;;  %4338 = vmatpush1.bf16.msra.mxu1 %v5678_v12  ;;  %v1989_v36 = vld [vmem:[#allocation7 + $0x10] sm:$0xff] }
 0x3df   :  { %v1993_v12 = vld [vmem:[#allocation7 + $0x30] sm:$0xff]  ;;  %4340 = vmatprep.subr.bf16.mxu0 %v5765_v44  ;;  %4372 = vmatprep.subr.bf16.mxu1 %v5767_v42 }
 0x3e0   :  { %v5772_v0 = vpack.c.bf16 %v1993_v12, %v1989_v36  ;;  %v2034_v36 = vld [vmem:[#allocation7 + $0x178] sm:$0xff]  ;;  %v2027_v12 = vld [vmem:[#allocation7 + $0x140] sm:$0xff] }
 0x3e1   :  { %1792 = vmatmul.mubr.f32.vlgmr.msra.gmra.mrb[6].mxu0 %v1456_v23  ;;  %1863 = vmatmul.mubr.f32.vlgmr.msra.gmra.mrb[6].mxu1 %v1456_v23  ;;  %v2021_v23 = vld [vmem:[#allocation7 + $0x110] sm:$0xff]  ;;  %v5827_v32 = vpack.c.bf16 %v2034_v36, %v2030_v58  ;;  %v5829_v48 = vpack.c.bf16 %v2031_v15, %v2027_v12  ;;  %v1930_v58 = vld [vmem:[#allocation5 + $0x38] sm:$0xff]  ;;  %v1869_v12 = vld [vmem:[%s6361_s3] sm:$0xf] }
 0x3e2   :  { %2115 = vmatprep.mubr.f32.mxu0 %v6433_v45  ;;  %2186 = vmatprep.mubr.f32.mxu1 %v6433_v45  ;;  %v5820_v1 = vpack.c.bf16 %v2025_v28, %v2021_v23  ;;  %v1928_v23 = vld [vmem:[#allocation5 + $0x28] sm:$0xff]  ;;  %v5856_v28 = vpack.c.bf16 %v2049_v35, %v2045_v60  ;;  %v5861_v36 = vpack.c.bf16 %v1930_v58, %v1926_v63 }
 0x3e3   :  { %4342 = vmatpush1.bf16.msra.mxu0 %v5769_v6  ;;  %4374 = vmatpush1.bf16.msra.mxu1 %v5772_v0  ;;  %v5858_v16 = vpack.c.bf16 %v1928_v23, %v1924_v40  ;;  %v1874_v15 = vrot.slane %v1869_v12, %v5427_v9  ;;  %v1878_v22 = vrot.slane %v1869_v12, %v5432_v17 }
 0x3e4   :  { %4344 = vmatprep.subr.bf16.mxu0 %v5777_v4  ;;  %4376 = vmatprep.subr.bf16.mxu1 %v5779_v52  ;;  %v1882_v53 = vrot.slane %v1869_v12, %v5436_v27  ;;  %v1886_v19 = vrot.slane %v1869_v12, %v5439_v57 }
 0x3e7   :  { %4346 = vmatpush1.bf16.msra.mxu0 %v5781_v2  ;;  %4378 = vmatpush1.bf16.msra.mxu1 %v5784_v37 }
 0x3e8   :  { %4348 = vmatprep.subr.bf16.mxu0 %v5789_v24  ;;  %4380 = vmatprep.subr.bf16.mxu1 %v5791_v3 }
 0x3eb   :  { %4350 = vmatpush1.bf16.msra.mxu0 %v5793_v56  ;;  %4382 = vmatpush1.bf16.msra.mxu1 %v5796_v51 }
 0x3ec   :  { %4352 = vmatprep.subr.bf16.mxu0 %v5801_v11  ;;  %4384 = vmatprep.subr.bf16.mxu1 %v5803_v29 }
 0x3ef   :  { %4354 = vmatpush1.bf16.msra.mxu0 %v5805_v46  ;;  %4386 = vmatpush1.bf16.msra.mxu1 %v5808_v61 }
 0x3f0   :  { %4356 = vmatprep.subr.bf16.mxu0 %v5813_v5  ;;  %4388 = vmatprep.subr.bf16.mxu1 %v5815_v18 }
 0x3f3   :  { %4358 = vmatpush1.bf16.msra.mxu0 %v5817_v25  ;;  %4390 = vmatpush1.bf16.msra.mxu1 %v5820_v1 }
 0x3f4   :  { %4360 = vmatprep.subr.bf16.mxu0 %v5825_v8  ;;  %4392 = vmatprep.subr.bf16.mxu1 %v5827_v32 }
 0x3f7   :  { %4362 = vmatpush1.bf16.msra.mxu0 %v5829_v48  ;;  %4394 = vmatpush1.bf16.msra.mxu1 %v5832_v39 }
 0x3f8   :  { %4364 = vmatprep.subr.bf16.mxu0 %v5836_v30  ;;  %4396 = vmatprep.subr.bf16.mxu1 %v5839_v21 }
 0x3fb   :  { %4366 = vmatpush1.bf16.msra.mxu0 %v5841_v62  ;;  %4398 = vmatpush1.bf16.msra.mxu1 %v5844_v50 }
 0x3fc   :  { %4368 = vmatprep.subr.bf16.mxu0 %v5847_v34  ;;  %4400 = vmatprep.subr.bf16.mxu1 %v5849_v38 }
 0x3ff   :  { %4370 = vmatpush1.bf16.msra.mxu0 %v5852_v13  ;;  %4402 = vmatpush1.bf16.msra.mxu1 %v5856_v28 }
 0x400   :  { %4404 = vmatprep.subr.bf16.mxu0 %v5858_v16  ;;  %4436 = vmatprep.subr.bf16.mxu1 %v5861_v36 }
 0x4b4   :  { %v1793_v26 = vpop.f32.mrb[6].mxu0  ;;  %v1864_v7 = vpop.f32.mrb[6].mxu1 }
 0x4b5   :  { %v1891_v20 = vadd.f32 %v1874_v15, %v1793_v26  ;;  %v1795_v55 = vpop.f32.mrb[7].mxu0  ;;  %v1866_v10 = vpop.f32.mrb[7].mxu1  ;;  %v1893_v33 = vadd.f32 %v1882_v53, %v1864_v7  ;;  %v1923_v7 = vld [vmem:[#allocation5] sm:$0xff]  ;;  %v1938_v53 = vld [vmem:[#allocation5 + $0x78] sm:$0xff] }
 0x4b6   :  { %v1892_v41 = vadd.f32 %v1878_v22, %v1795_v55  ;;  %v1894_v14 = vadd.f32 %v1886_v19, %v1866_v10  ;;  %v1925_v55 = vld [vmem:[#allocation5 + $0x10] sm:$0xff] }
 0x4b7   :  { %v3812_v47 = vmul.f32 -1.442695, %v1891_v20  ;;  %v3814_v49 = vmul.f32 -1.442695, %v1893_v33  ;;  %v1927_v20 = vld [vmem:[#allocation5 + $0x20] sm:$0xff]  ;;  %v1929_v10 = vld [vmem:[#allocation5 + $0x30] sm:$0xff] }
 0x4b8   :  { %v3813_v31 = vmul.f32 -1.442695, %v1892_v41  ;;  %v1932_v41 = vld [vmem:[#allocation5 + $0x48] sm:$0xff] }
 0x4b9   :  { %4940 = vpow2.f32 %v3812_v47  ;;  %v1936_v47 = vld [vmem:[#allocation5 + $0x68] sm:$0xff] }
 0x4ba   :  { %4942 = vpow2.f32 %v3813_v31  ;;  %v1934_v31 = vld [vmem:[#allocation5 + $0x58] sm:$0xff] }
 0x4bb   :  { %4944 = vtanh.f32 %v1894_v14  ;;  %v5878_v14 = vpack.c.bf16 %v1927_v20, %v1923_v7  ;;  %v1939_v20 = vld [vmem:[#allocation5 + $0x80] sm:$0xff] }
 0x4bc   :  { %4946 = vpow2.f32 %v3814_v49  ;;  %v5880_v49 = vpack.c.bf16 %v1929_v10, %v1925_v55  ;;  %v1943_v55 = vld [vmem:[#allocation5 + $0xa0] sm:$0xff] }
 0x4c3   :  { %v4941_v54 = vpop.eup %4940 }
 0x4c4   :  { %v1904_v59 = vadd.f32 1.0, %v4941_v54  ;;  %v4943_v60 = vpop.eup %4942  ;;  %v1935_v54 = vld [vmem:[#allocation5 + $0x60] sm:$0xff] }
 0x4c5   :  { %v1905_v35 = vadd.f32 1.0, %v4943_v60  ;;  %v4945_v40 = vpop.eup %4944  ;;  %v5882_v60 = vpack.c.bf16 %v1936_v47, %v1932_v41  ;;  %v1941_v47 = vld [vmem:[#allocation5 + $0x90] sm:$0xff] }
 0x4c6   :  { %4948 = vrcp.f32 %v1904_v59  ;;  %v4947_v23 = vpop.eup %4946 }
 0x4c7   :  { %4950 = vrcp.f32 %v1905_v35  ;;  %v1906_v22 = vadd.f32 1.0, %v4947_v23  ;;  %6476 = vst [vmem:[#allocation12_spill] sm:$0xff] %v5882_v60  ;;  %v5884_v35 = vpack.c.bf16 %v1938_v53, %v1934_v31  ;;  %v1937_v23 = vld [vmem:[#allocation5 + $0x70] sm:$0xff]  ;;  %v1948_v53 = vld [vmem:[#allocation5 + $0xc8] sm:$0xff] }
 0x4c8   :  { %v1945_v31 = vld [vmem:[#allocation5 + $0xb0] sm:$0xff] }
 0x4c9   :  { %4952 = vrcp.f32 %v1906_v22  ;;  %6477 = vst [vmem:[#allocation13_spill] sm:$0xff] %v5884_v35  ;;  %v1946_v22 = vld [vmem:[#allocation5 + $0xb8] sm:$0xff] }
 0x4d0   :  { %v4949_v63 = vpop.eup %4948 }
 0x4d1   :  { %v1915_v58 = vmul.f32 %v4949_v63, %v4945_v40  ;;  %v4951_v15 = vpop.eup %4950  ;;  %v1933_v40 = vld [vmem:[#allocation5 + $0x50] sm:$0xff]  ;;  %v1940_v63 = vld [vmem:[#allocation5 + $0x88] sm:$0xff] }
 0x4d2   :  { %v1914_v26 = vmul.f32 %v4951_v15, %v5728_v43  ;;  %v1931_v43 = vld [vmem:[#allocation5 + $0x40] sm:$0xff]  ;;  %v1942_v15 = vld [vmem:[#allocation5 + $0x98] sm:$0xff]  ;;  %v5890_v7 = vpack.c.bf16 %v1937_v23, %v1933_v40 }
 0x4d3   :  { %v4953_v19 = vpop.eup %4952  ;;  %v5896_v41 = vpack.c.bf16 %v1946_v22, %v1942_v15  ;;  %v1947_v40 = vld [vmem:[#allocation5 + $0xc0] sm:$0xff]  ;;  %v1949_v15 = vld [vmem:[#allocation5 + $0xd0] sm:$0xff] }
 0x4d4   :  { %v5875_v12 = vadd.f32 %v1915_v58, %v1914_v26  ;;  %v1944_v58 = vld [vmem:[#allocation5 + $0xa8] sm:$0xff]  ;;  %v5888_v26 = vpack.c.bf16 %v1935_v54, %v1931_v43  ;;  %6479 = vst [vmem:[#allocation15_spill] sm:$0xff] %v5890_v7  ;;  %v5902_v43 = vpack.c.bf16 %v1943_v55, %v1939_v20  ;;  %v5904_v54 = vpack.c.bf16 %v1945_v31, %v1941_v47  ;;  %v1951_v23 = vld [vmem:[#allocation5 + $0xe0] sm:$0xff]  ;;  %v1953_v22 = vld [vmem:[#allocation5 + $0xf0] sm:$0xff] }
 0x4d5   :  { %v5894_v10 = vpack.c.bf16 %v1944_v58, %v1940_v63  ;;  %6481 = vst [vmem:[#allocation17_spill] sm:$0xff] %v5896_v41  ;;  %v5914_v20 = vpack.c.bf16 %v1951_v23, %v1947_v40  ;;  %v5916_v55 = vpack.c.bf16 %v1953_v22, %v1949_v15  ;;  %v1955_v47 = vld [vmem:[#allocation5 + $0x100] sm:$0xff] }
 0x4d6   :  { %4954 = vtanh.f32 %v5875_v12  ;;  %6478 = vst [vmem:[#allocation14_spill] sm:$0xff] %v5888_v26  ;;  %6482 = vst [vmem:[#allocation18_spill] sm:$0xff] %v5902_v43  ;;  %v1959_v31 = vld [vmem:[#allocation5 + $0x120] sm:$0xff] }
 0x4d7   :  { %6480 = vst [vmem:[#allocation16_spill] sm:$0xff] %v5894_v10  ;;  %6483 = vst [vmem:[#allocation19_spill] sm:$0xff] %v5904_v54  ;;  %v5926_v40 = vpack.c.bf16 %v1959_v31, %v1955_v47  ;;  %v1963_v15 = vld [vmem:[#allocation5 + $0x140] sm:$0xff] }
 0x4d8   :  { %6486 = vst [vmem:[#allocation22_spill] sm:$0xff] %v5914_v20  ;;  %6487 = vst [vmem:[#allocation23_spill] sm:$0xff] %v5916_v55  ;;  %v1967_v22 = vld [vmem:[#allocation5 + $0x160] sm:$0xff] }
 0x4d9   :  { %6490 = vst [vmem:[#allocation26_spill] sm:$0xff] %v5926_v40  ;;  %v5938_v47 = vpack.c.bf16 %v1967_v22, %v1963_v15 }
 0x4e0   :  { %v4955_v33 = vpop.eup %4954 }
 0x4e1   :  { %v1918_v59 = vmul.f32 %v4955_v33, %v4953_v19  ;;  %v1952_v19 = vld [vmem:[#allocation5 + $0xe8] sm:$0xff]  ;;  %v1950_v33 = vld [vmem:[#allocation5 + $0xd8] sm:$0xff] }
 0x4e2   :  { %v5908_v63 = vpack.c.bf16 %v1952_v19, %v1948_v53 }
 0x4e3   :  { %1920 = vst [vmem:[#allocation8 + $0x18] sm:$0xff] %v1918_v59  ;;  %2116 = vmatmul.mubr.f32.vlgmr.msra.gmra.mrb[8].mxu0 %v1918_v59  ;;  %2187 = vmatmul.mubr.f32.vlgmr.msra.gmra.mrb[8].mxu1 %v1918_v59  ;;  %v1954_v59 = vld [vmem:[#allocation5 + $0xf8] sm:$0xff] }
 0x4e4   :  { %4406 = vmatpush1.bf16.msra.mxu0 %v5878_v14  ;;  %4438 = vmatpush1.bf16.msra.mxu1 %v5880_v49  ;;  %6484 = vst [vmem:[#allocation20_spill] sm:$0xff] %v5908_v63  ;;  %v5910_v58 = vpack.c.bf16 %v1954_v59, %v1950_v33  ;;  %v1957_v33 = vld [vmem:[#allocation5 + $0x110] sm:$0xff] }
 0x4e5   :  { %4408 = vmatprep.subr.bf16.mxu0 %v5882_v60  ;;  %4440 = vmatprep.subr.bf16.mxu1 %v5884_v35  ;;  %v1956_v35 = vld [vmem:[#allocation5 + $0x108] sm:$0xff]  ;;  %v1958_v60 = vld [vmem:[#allocation5 + $0x118] sm:$0xff]  ;;  %v1961_v59 = vld [vmem:[#allocation5 + $0x130] sm:$0xff] }
 0x4e6   :  { %2257 = vmatprep.mubr.f32.mxu0 %v6433_v45  ;;  %2328 = vmatprep.mubr.f32.mxu1 %v6433_v45  ;;  %6485 = vst [vmem:[#allocation21_spill] sm:$0xff] %v5910_v58  ;;  %v5928_v23 = vpack.c.bf16 %v1961_v59, %v1957_v33  ;;  %v1971_v33 = vld [vmem:[#allocation5 + $0x180] sm:$0xff] }
 0x4e7   :  { %v1975_v59 = vld [vmem:[#allocation5 + $0x1a0] sm:$0xff] }
 0x4e8   :  { %4410 = vmatpush1.bf16.msra.mxu0 %v5888_v26  ;;  %4442 = vmatpush1.bf16.msra.mxu1 %v5890_v7  ;;  %v1960_v26 = vld [vmem:[#allocation5 + $0x128] sm:$0xff]  ;;  %v1962_v7 = vld [vmem:[#allocation5 + $0x138] sm:$0xff]  ;;  %6491 = vst [vmem:[#allocation27_spill] sm:$0xff] %v5928_v23  ;;  %v5950_v15 = vpack.c.bf16 %v1975_v59, %v1971_v33 }
 0x4e9   :  { %4412 = vmatprep.subr.bf16.mxu0 %v5894_v10  ;;  %4444 = vmatprep.subr.bf16.mxu1 %v5896_v41  ;;  %v5920_v53 = vpack.c.bf16 %v1960_v26, %v1956_v35  ;;  %v5922_v19 = vpack.c.bf16 %v1962_v7, %v1958_v60  ;;  %v1964_v41 = vld [vmem:[#allocation5 + $0x148] sm:$0xff]  ;;  %v1966_v10 = vld [vmem:[#allocation5 + $0x158] sm:$0xff]  ;;  %v1965_v26 = vld [vmem:[#allocation5 + $0x150] sm:$0xff] }
 0x4ea   :  { %v1969_v7 = vld [vmem:[#allocation5 + $0x170] sm:$0xff] }
 0x4eb   :  { %6488 = vst [vmem:[#allocation24_spill] sm:$0xff] %v5920_v53  ;;  %6489 = vst [vmem:[#allocation25_spill] sm:$0xff] %v5922_v19  ;;  %v5940_v31 = vpack.c.bf16 %v1969_v7, %v1965_v26  ;;  %v1979_v26 = vld [vmem:[#allocation5 + $0x1c0] sm:$0xff]  ;;  %v1985_v7 = vld [vmem:[#allocation5 + $0x1f0] sm:$0xff] }
 0x4ec   :  { %4414 = vmatpush1.bf16.msra.mxu0 %v5902_v43  ;;  %4446 = vmatpush1.bf16.msra.mxu1 %v5904_v54  ;;  %v1968_v43 = vld [vmem:[#allocation5 + $0x168] sm:$0xff]  ;;  %v1970_v54 = vld [vmem:[#allocation5 + $0x178] sm:$0xff] }
 0x4ed   :  { %4416 = vmatprep.subr.bf16.mxu0 %v5908_v63  ;;  %4448 = vmatprep.subr.bf16.mxu1 %v5910_v58  ;;  %v5932_v60 = vpack.c.bf16 %v1968_v43, %v1964_v41  ;;  %v5934_v35 = vpack.c.bf16 %v1970_v54, %v1966_v10  ;;  %v1972_v58 = vld [vmem:[#allocation5 + $0x188] sm:$0xff]  ;;  %v1974_v63 = vld [vmem:[#allocation5 + $0x198] sm:$0xff]  ;;  %v1973_v43 = vld [vmem:[#allocation5 + $0x190] sm:$0xff] }
 0x4ee   :  { %v1977_v54 = vld [vmem:[#allocation5 + $0x1b0] sm:$0xff] }
 0x4ef   :  { %v5952_v22 = vpack.c.bf16 %v1977_v54, %v1973_v43  ;;  %v6501_v43 = vld [vmem:[#allocation21_spill] sm:$0xff]  ;;  %v6502_v54 = vld [vmem:[#allocation22_spill] sm:$0xff] }
 0x4f0   :  { %4418 = vmatpush1.bf16.msra.mxu0 %v5914_v20  ;;  %4450 = vmatpush1.bf16.msra.mxu1 %v5916_v55  ;;  %v1976_v20 = vld [vmem:[#allocation5 + $0x1a8] sm:$0xff]  ;;  %v1978_v55 = vld [vmem:[#allocation5 + $0x1b8] sm:$0xff] }
 0x4f1   :  { %4420 = vmatprep.subr.bf16.mxu0 %v5920_v53  ;;  %4452 = vmatprep.subr.bf16.mxu1 %v5922_v19  ;;  %v5944_v10 = vpack.c.bf16 %v1976_v20, %v1972_v58  ;;  %v5946_v41 = vpack.c.bf16 %v1978_v55, %v1974_v63  ;;  %v1980_v19 = vld [vmem:[#allocation5 + $0x1c8] sm:$0xff]  ;;  %v1982_v53 = vld [vmem:[#allocation5 + $0x1d8] sm:$0xff]  ;;  %v1983_v20 = vld [vmem:[#allocation5 + $0x1e0] sm:$0xff] }
 0x4f2   :  { %v1981_v55 = vld [vmem:[#allocation5 + $0x1d0] sm:$0xff]  ;;  %v5962_v33 = vpack.c.bf16 %v1983_v20, %v1979_v26  ;;  %v6503_v26 = vld [vmem:[#allocation23_spill] sm:$0xff]  ;;  %v6504_v20 = vld [vmem:[#allocation24_spill] sm:$0xff] }
 0x4f3   :  { %v5964_v59 = vpack.c.bf16 %v1985_v7, %v1981_v55  ;;  %v6505_v55 = vld [vmem:[#allocation25_spill] sm:$0xff]  ;;  %v6506_v7 = vld [vmem:[#allocation26_spill] sm:$0xff] }
 0x4f4   :  { %4422 = vmatpush1.bf16.msra.mxu0 %v5926_v40  ;;  %4454 = vmatpush1.bf16.msra.mxu1 %v5928_v23  ;;  %v1984_v40 = vld [vmem:[#allocation5 + $0x1e8] sm:$0xff]  ;;  %v1986_v23 = vld [vmem:[#allocation5 + $0x1f8] sm:$0xff] }
 0x4f5   :  { %4424 = vmatprep.subr.bf16.mxu0 %v5932_v60  ;;  %4456 = vmatprep.subr.bf16.mxu1 %v5934_v35  ;;  %v5956_v63 = vpack.c.bf16 %v1984_v40, %v1980_v19  ;;  %v5958_v58 = vpack.c.bf16 %v1986_v23, %v1982_v53  ;;  %v1922_v53 = vld [vmem:[#allocation2 + $0x20] sm:$0xff]  ;;  %v6497_v40 = vld [vmem:[#allocation17_spill] sm:$0xff]  ;;  %v6498_v23 = vld [vmem:[#allocation18_spill] sm:$0xff] }
 0x4f6   :  { %v6496_v19 = vld [vmem:[#allocation16_spill] sm:$0xff] }
 0x4f8   :  { %4426 = vmatpush1.bf16.msra.mxu0 %v5938_v47  ;;  %4458 = vmatpush1.bf16.msra.mxu1 %v5940_v31 }
 0x4f9   :  { %4428 = vmatprep.subr.bf16.mxu0 %v5944_v10  ;;  %4460 = vmatprep.subr.bf16.mxu1 %v5946_v41 }
 0x4fc   :  { %4430 = vmatpush1.bf16.msra.mxu0 %v5950_v15  ;;  %4462 = vmatpush1.bf16.msra.mxu1 %v5952_v22 }
 0x4fd   :  { %4432 = vmatprep.subr.bf16.mxu0 %v5956_v63  ;;  %4464 = vmatprep.subr.bf16.mxu1 %v5958_v58 }
 0x500   :  { %4434 = vmatpush1.bf16.msra.mxu0 %v5962_v33  ;;  %4466 = vmatpush1.bf16.msra.mxu1 %v5964_v59 }
 0x501   :  { %4468 = vmatprep.subr.bf16.mxu0 %v5765_v44  ;;  %4500 = vmatprep.subr.bf16.mxu1 %v5767_v42  ;;  %v2335_v44 = vld [vmem:[%s6361_s3] sm:$0xf] }
 0x502   :  { %v2340_v42 = vrot.slane %v2335_v44, %v5427_v9 }
 0x503   :  { %2258 = vmatmul.mubr.f32.vlgmr.msra.gmra.mrb[8].mxu0 %v1922_v53  ;;  %2329 = vmatmul.mubr.f32.vlgmr.msra.gmra.mrb[8].mxu1 %v1922_v53  ;;  %v6507_v53 = vld [vmem:[#allocation27_spill] sm:$0xff] }
 0x504   :  { %4470 = vmatpush1.bf16.msra.mxu0 %v5769_v6  ;;  %4502 = vmatpush1.bf16.msra.mxu1 %v5772_v0  ;;  %v2344_v6 = vrot.slane %v2335_v44, %v5432_v17 }
 0x505   :  { %4472 = vmatprep.subr.bf16.mxu0 %v5777_v4  ;;  %4504 = vmatprep.subr.bf16.mxu1 %v5779_v52 }
 0x506   :  { %2581 = vmatprep.mubr.f32.mxu0 %v6433_v45  ;;  %2652 = vmatprep.mubr.f32.mxu1 %v6433_v45 }
 0x508   :  { %4474 = vmatpush1.bf16.msra.mxu0 %v5781_v2  ;;  %4506 = vmatpush1.bf16.msra.mxu1 %v5784_v37 }
 0x509   :  { %4476 = vmatprep.subr.bf16.mxu0 %v5789_v24  ;;  %4508 = vmatprep.subr.bf16.mxu1 %v5791_v3 }
 0x50c   :  { %4478 = vmatpush1.bf16.msra.mxu0 %v5793_v56  ;;  %4510 = vmatpush1.bf16.msra.mxu1 %v5796_v51  ;;  %v2348_v51 = vrot.slane %v2335_v44, %v5436_v27 }
 0x50d   :  { %4480 = vmatprep.subr.bf16.mxu0 %v5801_v11  ;;  %4512 = vmatprep.subr.bf16.mxu1 %v5803_v29  ;;  %v2352_v11 = vrot.slane %v2335_v44, %v5439_v57 }
 0x510   :  { %4482 = vmatpush1.bf16.msra.mxu0 %v5805_v46  ;;  %4514 = vmatpush1.bf16.msra.mxu1 %v5808_v61 }
 0x511   :  { %4484 = vmatprep.subr.bf16.mxu0 %v5813_v5  ;;  %4516 = vmatprep.subr.bf16.mxu1 %v5815_v18 }
 0x514   :  { %4486 = vmatpush1.bf16.msra.mxu0 %v5817_v25  ;;  %4518 = vmatpush1.bf16.msra.mxu1 %v5820_v1 }
 0x515   :  { %4488 = vmatprep.subr.bf16.mxu0 %v5825_v8  ;;  %4520 = vmatprep.subr.bf16.mxu1 %v5827_v32 }
 0x518   :  { %4490 = vmatpush1.bf16.msra.mxu0 %v5829_v48  ;;  %4522 = vmatpush1.bf16.msra.mxu1 %v5832_v39 }
 0x519   :  { %4492 = vmatprep.subr.bf16.mxu0 %v5836_v30  ;;  %4524 = vmatprep.subr.bf16.mxu1 %v5839_v21 }
 0x51c   :  { %4494 = vmatpush1.bf16.msra.mxu0 %v5841_v62  ;;  %4526 = vmatpush1.bf16.msra.mxu1 %v5844_v50 }
 0x51d   :  { %4496 = vmatprep.subr.bf16.mxu0 %v5847_v34  ;;  %4528 = vmatprep.subr.bf16.mxu1 %v5849_v38 }
 0x520   :  { %4498 = vmatpush1.bf16.msra.mxu0 %v5852_v13  ;;  %4530 = vmatpush1.bf16.msra.mxu1 %v5856_v28  ;;  %v6492_v28 = vld [vmem:[#allocation12_spill] sm:$0xff] }
 0x521   :  { %4532 = vmatprep.subr.bf16.mxu0 %v5858_v16  ;;  %4564 = vmatprep.subr.bf16.mxu1 %v5861_v36  ;;  %v6493_v16 = vld [vmem:[#allocation13_spill] sm:$0xff]  ;;  %v6494_v36 = vld [vmem:[#allocation14_spill] sm:$0xff] }
 0x5d6   :  { %v2259_v0 = vpop.f32.mrb[8].mxu0  ;;  %v2330_v4 = vpop.f32.mrb[8].mxu1 }
 0x5d7   :  { %v2357_v52 = vadd.f32 %v2340_v42, %v2259_v0  ;;  %v2261_v2 = vpop.f32.mrb[9].mxu0  ;;  %v2332_v37 = vpop.f32.mrb[9].mxu1  ;;  %v2359_v29 = vadd.f32 %v2348_v51, %v2330_v4  ;;  %v2928_v42 = vld [vmem:[#allocation7 + $0x48] sm:$0xff]  ;;  %v2930_v0 = vld [vmem:[#allocation7 + $0x58] sm:$0xff]  ;;  %v2933_v51 = vld [vmem:[#allocation7 + $0x70] sm:$0xff] }
 0x5d8   :  { %v2358_v24 = vadd.f32 %v2344_v6, %v2261_v2  ;;  %v2360_v46 = vadd.f32 %v2352_v11, %v2332_v37  ;;  %v2932_v6 = vld [vmem:[#allocation7 + $0x68] sm:$0xff]  ;;  %v2927_v2 = vld [vmem:[#allocation7 + $0x40] sm:$0xff] }
 0x5d9   :  { %v3815_v3 = vmul.f32 -1.442695, %v2357_v52  ;;  %v3817_v61 = vmul.f32 -1.442695, %v2359_v29  ;;  %v6063_v4 = vpack.c.bf16 %v2932_v6, %v2928_v42  ;;  %v2934_v52 = vld [vmem:[#allocation7 + $0x78] sm:$0xff]  ;;  %v2931_v37 = vld [vmem:[#allocation7 + $0x60] sm:$0xff] }
 0x5da   :  { %v3816_v56 = vmul.f32 -1.442695, %v2358_v24  ;;  %v6065_v24 = vpack.c.bf16 %v2934_v52, %v2930_v0  ;;  %v2936_v29 = vld [vmem:[#allocation7 + $0x88] sm:$0xff]  ;;  %v2963_v42 = vld [vmem:[#allocation7 + $0x160] sm:$0xff]  ;;  %v2961_v52 = vld [vmem:[#allocation7 + $0x150] sm:$0xff] }
 0x5db   :  { %4956 = vpow2.f32 %v3815_v3  ;;  %v6067_v3 = vpack.c.bf16 %v2931_v37, %v2927_v2  ;;  %v2965_v2 = vld [vmem:[#allocation7 + $0x170] sm:$0xff] }
 0x5dc   :  { %4958 = vpow2.f32 %v3816_v56  ;;  %v2929_v56 = vld [vmem:[#allocation7 + $0x50] sm:$0xff]  ;;  %v6118_v37 = vpack.c.bf16 %v2965_v2, %v2961_v52 }
 0x5dd   :  { %4960 = vtanh.f32 %v2360_v46  ;;  %v6070_v11 = vpack.c.bf16 %v2933_v51, %v2929_v56  ;;  %v2940_v46 = vld [vmem:[#allocation7 + $0xa8] sm:$0xff] }
 0x5de   :  { %4962 = vpow2.f32 %v3817_v61  ;;  %v2938_v61 = vld [vmem:[#allocation7 + $0x98] sm:$0xff]  ;;  %v2968_v56 = vld [vmem:[#allocation7 + $0x188] sm:$0xff] }
 0x5df   :  { %v2972_v51 = vld [vmem:[#allocation7 + $0x1a8] sm:$0xff] }
 0x5e5   :  { %v4957_v5 = vpop.eup %4956 }
 0x5e6   :  { %v2370_v18 = vadd.f32 1.0, %v4957_v5  ;;  %v4959_v25 = vpop.eup %4958  ;;  %v6075_v5 = vpack.c.bf16 %v2940_v46, %v2936_v29  ;;  %v2970_v29 = vld [vmem:[#allocation7 + $0x198] sm:$0xff]  ;;  %v6122_v46 = vpack.c.bf16 %v2972_v51, %v2968_v56 }
 0x5e7   :  { %v2371_v1 = vadd.f32 1.0, %v4959_v25  ;;  %v4961_v8 = vpop.eup %4960  ;;  %v2935_v25 = vld [vmem:[#allocation7 + $0x80] sm:$0xff] }
 0x5e8   :  { %4964 = vrcp.f32 %v2370_v18  ;;  %v4963_v32 = vpop.eup %4962  ;;  %v2942_v18 = vld [vmem:[#allocation7 + $0xb8] sm:$0xff] }
 0x5e9   :  { %4966 = vrcp.f32 %v2371_v1  ;;  %v2372_v21 = vadd.f32 1.0, %v4963_v32  ;;  %v2939_v1 = vld [vmem:[#allocation7 + $0xa0] sm:$0xff] }
 0x5ea   :  { %v6079_v32 = vpack.c.bf16 %v2939_v1, %v2935_v25  ;;  %v2971_v25 = vld [vmem:[#allocation7 + $0x1a0] sm:$0xff] }
 0x5eb   :  { %4968 = vrcp.f32 %v2372_v21  ;;  %v2944_v21 = vld [vmem:[#allocation7 + $0xc8] sm:$0xff] }
 0x5f2   :  { %v4965_v48 = vpop.eup %4964 }
 0x5f3   :  { %v2381_v39 = vmul.f32 %v4965_v48, %v4961_v8  ;;  %v4967_v30 = vpop.eup %4966  ;;  %v6077_v8 = vpack.c.bf16 %v2942_v18, %v2938_v61  ;;  %v2937_v48 = vld [vmem:[#allocation7 + $0x90] sm:$0xff]  ;;  %v2974_v61 = vld [vmem:[#allocation7 + $0x1b8] sm:$0xff]  ;;  %v2967_v18 = vld [vmem:[#allocation7 + $0x180] sm:$0xff] }
 0x5f4   :  { %v2380_v62 = vmul.f32 %v4967_v30, %v5875_v12  ;;  %v6495_v12 = vld [vmem:[#allocation15_spill] sm:$0xff]  ;;  %v6125_v1 = vpack.c.bf16 %v2974_v61, %v2970_v29 }
 0x5f5   :  { %v4969_v34 = vpop.eup %4968 }
 0x5f6   :  { %v6014_v50 = vadd.f32 %v2381_v39, %v2380_v62  ;;  %v2941_v39 = vld [vmem:[#allocation7 + $0xb0] sm:$0xff]  ;;  %v2948_v62 = vld [vmem:[#allocation7 + $0xe8] sm:$0xff] }
 0x5f7   :  { %v6082_v30 = vpack.c.bf16 %v2941_v39, %v2937_v48  ;;  %v6127_v48 = vpack.c.bf16 %v2971_v25, %v2967_v18  ;;  %v2969_v39 = vld [vmem:[#allocation7 + $0x190] sm:$0xff] }
 0x5f8   :  { %4970 = vtanh.f32 %v6014_v50 }
 0x602   :  { %v4971_v38 = vpop.eup %4970 }
 0x603   :  { %v2384_v13 = vmul.f32 %v4971_v38, %v4969_v34  ;;  %v2946_v34 = vld [vmem:[#allocation7 + $0xd8] sm:$0xff]  ;;  %v6087_v38 = vpack.c.bf16 %v2948_v62, %v2944_v21  ;;  %v2973_v21 = vld [vmem:[#allocation7 + $0x1b0] sm:$0xff]  ;;  %v2976_v62 = vld [vmem:[#allocation7 + $0x1c8] sm:$0xff] }
 0x605   :  { %2386 = vst [vmem:[#allocation8 + $0x20] sm:$0xff] %v2384_v13  ;;  %2582 = vmatmul.mubr.f32.vlgmr.msra.gmra.mrb[10].mxu0 %v2384_v13  ;;  %2653 = vmatmul.mubr.f32.vlgmr.msra.gmra.mrb[10].mxu1 %v2384_v13  ;;  %v2950_v13 = vld [vmem:[#allocation7 + $0xf8] sm:$0xff] }
 0x606   :  { %4534 = vmatpush1.bf16.msra.mxu0 %v5878_v14  ;;  %4566 = vmatpush1.bf16.msra.mxu1 %v5880_v49  ;;  %v6499_v14 = vld [vmem:[#allocation19_spill] sm:$0xff]  ;;  %v6500_v49 = vld [vmem:[#allocation20_spill] sm:$0xff] }
 0x607   :  { %4536 = vmatprep.subr.bf16.mxu0 %v6492_v28  ;;  %4568 = vmatprep.subr.bf16.mxu1 %v6493_v16  ;;  %v2943_v28 = vld [vmem:[#allocation7 + $0xc0] sm:$0xff] }
 0x608   :  { %2723 = vmatprep.mubr.f32.mxu0 %v6433_v45  ;;  %2794 = vmatprep.mubr.f32.mxu1 %v6433_v45  ;;  %v2947_v16 = vld [vmem:[#allocation7 + $0xe0] sm:$0xff] }
 0x60a   :  { %4538 = vmatpush1.bf16.msra.mxu0 %v6494_v36  ;;  %4570 = vmatpush1.bf16.msra.mxu1 %v6495_v12  ;;  %v6089_v36 = vpack.c.bf16 %v2950_v13, %v2946_v34  ;;  %v6091_v12 = vpack.c.bf16 %v2947_v16, %v2943_v28  ;;  %v6130_v34 = vpack.c.bf16 %v2973_v21, %v2969_v39  ;;  %v2980_v13 = vld [vmem:[#allocation7 + $0x1e8] sm:$0xff]  ;;  %v2978_v28 = vld [vmem:[#allocation7 + $0x1d8] sm:$0xff] }
 0x60b   :  { %4540 = vmatprep.subr.bf16.mxu0 %v6496_v19  ;;  %4572 = vmatprep.subr.bf16.mxu1 %v6497_v40  ;;  %v2945_v19 = vld [vmem:[#allocation7 + $0xd0] sm:$0xff]  ;;  %v2982_v16 = vld [vmem:[#allocation7 + $0x1f8] sm:$0xff] }
 0x60c   :  { %v2949_v40 = vld [vmem:[#allocation7 + $0xf0] sm:$0xff] }
 0x60e   :  { %4542 = vmatpush1.bf16.msra.mxu0 %v6498_v23  ;;  %4574 = vmatpush1.bf16.msra.mxu1 %v6499_v14  ;;  %v6094_v23 = vpack.c.bf16 %v2949_v40, %v2945_v19  ;;  %v2952_v14 = vld [vmem:[#allocation7 + $0x108] sm:$0xff]  ;;  %v6133_v19 = vpack.c.bf16 %v2980_v13, %v2976_v62  ;;  %v6135_v40 = vpack.c.bf16 %v2982_v16, %v2978_v28 }
 0x60f   :  { %4544 = vmatprep.subr.bf16.mxu0 %v6500_v49  ;;  %4576 = vmatprep.subr.bf16.mxu1 %v6501_v43  ;;  %v2956_v49 = vld [vmem:[#allocation7 + $0x128] sm:$0xff]  ;;  %v2954_v43 = vld [vmem:[#allocation7 + $0x118] sm:$0xff] }
 0x612   :  { %4546 = vmatpush1.bf16.msra.mxu0 %v6502_v54  ;;  %4578 = vmatpush1.bf16.msra.mxu1 %v6503_v26  ;;  %v6099_v54 = vpack.c.bf16 %v2956_v49, %v2952_v14  ;;  %v2958_v26 = vld [vmem:[#allocation7 + $0x138] sm:$0xff]  ;;  %v2975_v14 = vld [vmem:[#allocation7 + $0x1c0] sm:$0xff] }
 0x613   :  { %4548 = vmatprep.subr.bf16.mxu0 %v6504_v20  ;;  %4580 = vmatprep.subr.bf16.mxu1 %v6505_v55  ;;  %v2951_v20 = vld [vmem:[#allocation7 + $0x100] sm:$0xff] }
 0x614   :  { %v2955_v55 = vld [vmem:[#allocation7 + $0x120] sm:$0xff] }
 0x615   :  { %v2979_v49 = vld [vmem:[#allocation7 + $0x1e0] sm:$0xff] }
 0x616   :  { %4550 = vmatpush1.bf16.msra.mxu0 %v6506_v7  ;;  %4582 = vmatpush1.bf16.msra.mxu1 %v6507_v53  ;;  %v6101_v7 = vpack.c.bf16 %v2958_v26, %v2954_v43  ;;  %v6103_v53 = vpack.c.bf16 %v2955_v55, %v2951_v20  ;;  %v2977_v43 = vld [vmem:[#allocation7 + $0x1d0] sm:$0xff]  ;;  %v6138_v26 = vpack.c.bf16 %v2979_v49, %v2975_v14  ;;  %v2856_v55 = vld [vmem:[#allocation5 + $0x8] sm:$0xff] }
 0x617   :  { %4552 = vmatprep.subr.bf16.mxu0 %v5932_v60  ;;  %4584 = vmatprep.subr.bf16.mxu1 %v5934_v35  ;;  %v2388_v60 = vld [vmem:[#allocation2 + $0x28] sm:$0xff]  ;;  %v2981_v20 = vld [vmem:[#allocation7 + $0x1f0] sm:$0xff] }
 0x618   :  { %v2920_v35 = vld [vmem:[#allocation7 + $0x8] sm:$0xff] }
 0x61a   :  { %4554 = vmatpush1.bf16.msra.mxu0 %v5938_v47  ;;  %4586 = vmatpush1.bf16.msra.mxu1 %v5940_v31  ;;  %v2924_v47 = vld [vmem:[#allocation7 + $0x28] sm:$0xff]  ;;  %v2922_v31 = vld [vmem:[#allocation7 + $0x18] sm:$0xff] }
 0x61b   :  { %4556 = vmatprep.subr.bf16.mxu0 %v5944_v10  ;;  %4588 = vmatprep.subr.bf16.mxu1 %v5946_v41  ;;  %v6051_v10 = vpack.c.bf16 %v2924_v47, %v2920_v35  ;;  %v2926_v41 = vld [vmem:[#allocation7 + $0x38] sm:$0xff]  ;;  %v2957_v35 = vld [vmem:[#allocation7 + $0x130] sm:$0xff] }
 0x61e   :  { %4558 = vmatpush1.bf16.msra.mxu0 %v5950_v15  ;;  %4590 = vmatpush1.bf16.msra.mxu1 %v5952_v22  ;;  %v2919_v15 = vld [vmem:[#allocation7] sm:$0xff] }
 0x61f   :  { %4560 = vmatprep.subr.bf16.mxu0 %v5956_v63  ;;  %4592 = vmatprep.subr.bf16.mxu1 %v5958_v58  ;;  %v2923_v22 = vld [vmem:[#allocation7 + $0x20] sm:$0xff]  ;;  %v6053_v63 = vpack.c.bf16 %v2926_v41, %v2922_v31  ;;  %v2960_v31 = vld [vmem:[#allocation7 + $0x148] sm:$0xff] }
 0x620   :  { %v6055_v58 = vpack.c.bf16 %v2923_v22, %v2919_v15  ;;  %v2964_v41 = vld [vmem:[#allocation7 + $0x168] sm:$0xff]  ;;  %v2962_v15 = vld [vmem:[#allocation7 + $0x158] sm:$0xff] }
 0x621   :  { %v6111_v22 = vpack.c.bf16 %v2964_v41, %v2960_v31  ;;  %v2858_v41 = vld [vmem:[#allocation5 + $0x18] sm:$0xff] }
 0x622   :  { %4562 = vmatpush1.bf16.msra.mxu0 %v5962_v33  ;;  %4594 = vmatpush1.bf16.msra.mxu1 %v5964_v59  ;;  %v2921_v33 = vld [vmem:[#allocation7 + $0x10] sm:$0xff] }
 0x623   :  { %v2925_v59 = vld [vmem:[#allocation7 + $0x30] sm:$0xff]  ;;  %4596 = vmatprep.subr.bf16.mxu0 %v6051_v10  ;;  %4628 = vmatprep.subr.bf16.mxu1 %v6053_v63 }
 0x624   :  { %v6058_v44 = vpack.c.bf16 %v2925_v59, %v2921_v33  ;;  %v2966_v33 = vld [vmem:[#allocation7 + $0x178] sm:$0xff]  ;;  %v2959_v59 = vld [vmem:[#allocation7 + $0x140] sm:$0xff] }
 0x625   :  { %2724 = vmatmul.mubr.f32.vlgmr.msra.gmra.mrb[10].mxu0 %v2388_v60  ;;  %2795 = vmatmul.mubr.f32.vlgmr.msra.gmra.mrb[10].mxu1 %v2388_v60  ;;  %v2953_v60 = vld [vmem:[#allocation7 + $0x110] sm:$0xff]  ;;  %v6113_v6 = vpack.c.bf16 %v2966_v33, %v2962_v15  ;;  %v6115_v0 = vpack.c.bf16 %v2963_v42, %v2959_v59  ;;  %v2862_v15 = vld [vmem:[#allocation5 + $0x38] sm:$0xff]  ;;  %v2801_v59 = vld [vmem:[%s6361_s3] sm:$0xf] }
 0x626   :  { %3047 = vmatprep.mubr.f32.mxu0 %v6433_v45  ;;  %3118 = vmatprep.mubr.f32.mxu1 %v6433_v45  ;;  %v6106_v47 = vpack.c.bf16 %v2957_v35, %v2953_v60  ;;  %v2860_v60 = vld [vmem:[#allocation5 + $0x28] sm:$0xff]  ;;  %v6142_v35 = vpack.c.bf16 %v2981_v20, %v2977_v43  ;;  %v6147_v33 = vpack.c.bf16 %v2862_v15, %v2858_v41 }
 0x627   :  { %4598 = vmatpush1.bf16.msra.mxu0 %v6055_v58  ;;  %4630 = vmatpush1.bf16.msra.mxu1 %v6058_v44  ;;  %v6144_v31 = vpack.c.bf16 %v2860_v60, %v2856_v55  ;;  %v2806_v42 = vrot.slane %v2801_v59, %v5427_v9  ;;  %v2810_v52 = vrot.slane %v2801_v59, %v5432_v17 }
 0x628   :  { %4600 = vmatprep.subr.bf16.mxu0 %v6063_v4  ;;  %4632 = vmatprep.subr.bf16.mxu1 %v6065_v24  ;;  %v2814_v21 = vrot.slane %v2801_v59, %v5436_v27  ;;  %v2818_v62 = vrot.slane %v2801_v59, %v5439_v57 }
 0x62b   :  { %4602 = vmatpush1.bf16.msra.mxu0 %v6067_v3  ;;  %4634 = vmatpush1.bf16.msra.mxu1 %v6070_v11 }
 0x62c   :  { %4604 = vmatprep.subr.bf16.mxu0 %v6075_v5  ;;  %4636 = vmatprep.subr.bf16.mxu1 %v6077_v8 }
 0x62f   :  { %4606 = vmatpush1.bf16.msra.mxu0 %v6079_v32  ;;  %4638 = vmatpush1.bf16.msra.mxu1 %v6082_v30 }
 0x630   :  { %4608 = vmatprep.subr.bf16.mxu0 %v6087_v38  ;;  %4640 = vmatprep.subr.bf16.mxu1 %v6089_v36 }
 0x633   :  { %4610 = vmatpush1.bf16.msra.mxu0 %v6091_v12  ;;  %4642 = vmatpush1.bf16.msra.mxu1 %v6094_v23 }
 0x634   :  { %4612 = vmatprep.subr.bf16.mxu0 %v6099_v54  ;;  %4644 = vmatprep.subr.bf16.mxu1 %v6101_v7 }
 0x637   :  { %4614 = vmatpush1.bf16.msra.mxu0 %v6103_v53  ;;  %4646 = vmatpush1.bf16.msra.mxu1 %v6106_v47 }
 0x638   :  { %4616 = vmatprep.subr.bf16.mxu0 %v6111_v22  ;;  %4648 = vmatprep.subr.bf16.mxu1 %v6113_v6 }
 0x63b   :  { %4618 = vmatpush1.bf16.msra.mxu0 %v6115_v0  ;;  %4650 = vmatpush1.bf16.msra.mxu1 %v6118_v37 }
 0x63c   :  { %4620 = vmatprep.subr.bf16.mxu0 %v6122_v46  ;;  %4652 = vmatprep.subr.bf16.mxu1 %v6125_v1 }
 0x63f   :  { %4622 = vmatpush1.bf16.msra.mxu0 %v6127_v48  ;;  %4654 = vmatpush1.bf16.msra.mxu1 %v6130_v34 }
 0x640   :  { %4624 = vmatprep.subr.bf16.mxu0 %v6133_v19  ;;  %4656 = vmatprep.subr.bf16.mxu1 %v6135_v40 }
 0x643   :  { %4626 = vmatpush1.bf16.msra.mxu0 %v6138_v26  ;;  %4658 = vmatpush1.bf16.msra.mxu1 %v6142_v35 }
 0x644   :  { %4660 = vmatprep.subr.bf16.mxu0 %v6144_v31  ;;  %4692 = vmatprep.subr.bf16.mxu1 %v6147_v33 }
 0x6f8   :  { %v2725_v2 = vpop.f32.mrb[10].mxu0  ;;  %v2796_v56 = vpop.f32.mrb[10].mxu1 }
 0x6f9   :  { %v2823_v51 = vadd.f32 %v2806_v42, %v2725_v2  ;;  %v2727_v29 = vpop.f32.mrb[11].mxu0  ;;  %v2798_v61 = vpop.f32.mrb[11].mxu1  ;;  %v2825_v13 = vadd.f32 %v2814_v21, %v2796_v56  ;;  %v2855_v56 = vld [vmem:[#allocation5] sm:$0xff]  ;;  %v2870_v21 = vld [vmem:[#allocation5 + $0x78] sm:$0xff] }
 0x6fa   :  { %v2824_v18 = vadd.f32 %v2810_v52, %v2727_v29  ;;  %v2826_v28 = vadd.f32 %v2818_v62, %v2798_v61  ;;  %v2857_v29 = vld [vmem:[#allocation5 + $0x10] sm:$0xff] }
 0x6fb   :  { %v3818_v25 = vmul.f32 -1.442695, %v2823_v51  ;;  %v3820_v16 = vmul.f32 -1.442695, %v2825_v13  ;;  %v2859_v51 = vld [vmem:[#allocation5 + $0x20] sm:$0xff]  ;;  %v2861_v61 = vld [vmem:[#allocation5 + $0x30] sm:$0xff] }
 0x6fc   :  { %v3819_v39 = vmul.f32 -1.442695, %v2824_v18  ;;  %v2864_v18 = vld [vmem:[#allocation5 + $0x48] sm:$0xff] }
 0x6fd   :  { %4972 = vpow2.f32 %v3818_v25  ;;  %v2868_v25 = vld [vmem:[#allocation5 + $0x68] sm:$0xff] }
 0x6fe   :  { %4974 = vpow2.f32 %v3819_v39  ;;  %v2866_v39 = vld [vmem:[#allocation5 + $0x58] sm:$0xff] }
 0x6ff   :  { %4976 = vtanh.f32 %v2826_v28  ;;  %v6164_v28 = vpack.c.bf16 %v2859_v51, %v2855_v56  ;;  %v2871_v51 = vld [vmem:[#allocation5 + $0x80] sm:$0xff] }
 0x700   :  { %4978 = vpow2.f32 %v3820_v16  ;;  %v6166_v16 = vpack.c.bf16 %v2861_v61, %v2857_v29  ;;  %v2875_v29 = vld [vmem:[#allocation5 + $0xa0] sm:$0xff] }
 0x707   :  { %v4973_v14 = vpop.eup %4972 }
 0x708   :  { %v2836_v49 = vadd.f32 1.0, %v4973_v14  ;;  %v4975_v43 = vpop.eup %4974  ;;  %v2867_v14 = vld [vmem:[#allocation5 + $0x60] sm:$0xff] }
 0x709   :  { %v2837_v20 = vadd.f32 1.0, %v4975_v43  ;;  %v4977_v55 = vpop.eup %4976  ;;  %v6168_v43 = vpack.c.bf16 %v2868_v25, %v2864_v18  ;;  %v2873_v25 = vld [vmem:[#allocation5 + $0x90] sm:$0xff] }
 0x70a   :  { %4980 = vrcp.f32 %v2836_v49  ;;  %v4979_v60 = vpop.eup %4978 }
 0x70b   :  { %4982 = vrcp.f32 %v2837_v20  ;;  %v2838_v52 = vadd.f32 1.0, %v4979_v60  ;;  %6508 = vst [vmem:[#allocation12_spill] sm:$0xff] %v6168_v43  ;;  %v6170_v20 = vpack.c.bf16 %v2870_v21, %v2866_v39  ;;  %v2869_v60 = vld [vmem:[#allocation5 + $0x70] sm:$0xff]  ;;  %v2880_v21 = vld [vmem:[#allocation5 + $0xc8] sm:$0xff] }
 0x70c   :  { %v2877_v39 = vld [vmem:[#allocation5 + $0xb0] sm:$0xff] }
 0x70d   :  { %4984 = vrcp.f32 %v2838_v52  ;;  %6509 = vst [vmem:[#allocation13_spill] sm:$0xff] %v6170_v20  ;;  %v2878_v52 = vld [vmem:[#allocation5 + $0xb8] sm:$0xff] }
 0x714   :  { %v4981_v41 = vpop.eup %4980 }
 0x715   :  { %v2847_v15 = vmul.f32 %v4981_v41, %v4977_v55  ;;  %v4983_v42 = vpop.eup %4982  ;;  %v2865_v55 = vld [vmem:[#allocation5 + $0x50] sm:$0xff]  ;;  %v2872_v41 = vld [vmem:[#allocation5 + $0x88] sm:$0xff] }
 0x716   :  { %v2846_v2 = vmul.f32 %v4983_v42, %v6014_v50  ;;  %v2863_v50 = vld [vmem:[#allocation5 + $0x40] sm:$0xff]  ;;  %v2874_v42 = vld [vmem:[#allocation5 + $0x98] sm:$0xff]  ;;  %v6176_v56 = vpack.c.bf16 %v2869_v60, %v2865_v55 }
 0x717   :  { %v4985_v62 = vpop.eup %4984  ;;  %v6182_v18 = vpack.c.bf16 %v2878_v52, %v2874_v42  ;;  %v2879_v55 = vld [vmem:[#allocation5 + $0xc0] sm:$0xff]  ;;  %v2881_v42 = vld [vmem:[#allocation5 + $0xd0] sm:$0xff] }
 0x718   :  { %v6161_v59 = vadd.f32 %v2847_v15, %v2846_v2  ;;  %v2876_v15 = vld [vmem:[#allocation5 + $0xa8] sm:$0xff]  ;;  %v6174_v2 = vpack.c.bf16 %v2867_v14, %v2863_v50  ;;  %6511 = vst [vmem:[#allocation15_spill] sm:$0xff] %v6176_v56  ;;  %v6188_v50 = vpack.c.bf16 %v2875_v29, %v2871_v51  ;;  %v6190_v14 = vpack.c.bf16 %v2877_v39, %v2873_v25  ;;  %v2883_v60 = vld [vmem:[#allocation5 + $0xe0] sm:$0xff]  ;;  %v2885_v52 = vld [vmem:[#allocation5 + $0xf0] sm:$0xff] }
 0x719   :  { %v6180_v61 = vpack.c.bf16 %v2876_v15, %v2872_v41  ;;  %6513 = vst [vmem:[#allocation17_spill] sm:$0xff] %v6182_v18  ;;  %v6200_v51 = vpack.c.bf16 %v2883_v60, %v2879_v55  ;;  %v6202_v29 = vpack.c.bf16 %v2885_v52, %v2881_v42  ;;  %v2887_v25 = vld [vmem:[#allocation5 + $0x100] sm:$0xff] }
 0x71a   :  { %4986 = vtanh.f32 %v6161_v59  ;;  %6510 = vst [vmem:[#allocation14_spill] sm:$0xff] %v6174_v2  ;;  %6514 = vst [vmem:[#allocation18_spill] sm:$0xff] %v6188_v50  ;;  %v2891_v39 = vld [vmem:[#allocation5 + $0x120] sm:$0xff] }
 0x71b   :  { %6512 = vst [vmem:[#allocation16_spill] sm:$0xff] %v6180_v61  ;;  %6515 = vst [vmem:[#allocation19_spill] sm:$0xff] %v6190_v14  ;;  %v6212_v55 = vpack.c.bf16 %v2891_v39, %v2887_v25  ;;  %v2895_v42 = vld [vmem:[#allocation5 + $0x140] sm:$0xff] }
 0x71c   :  { %6518 = vst [vmem:[#allocation22_spill] sm:$0xff] %v6200_v51  ;;  %6519 = vst [vmem:[#allocation23_spill] sm:$0xff] %v6202_v29  ;;  %v2899_v52 = vld [vmem:[#allocation5 + $0x160] sm:$0xff] }
 0x71d   :  { %6522 = vst [vmem:[#allocation26_spill] sm:$0xff] %v6212_v55  ;;  %v6224_v25 = vpack.c.bf16 %v2899_v52, %v2895_v42 }
 0x724   :  { %v4987_v13 = vpop.eup %4986 }
 0x725   :  { %v2850_v49 = vmul.f32 %v4987_v13, %v4985_v62  ;;  %v2884_v62 = vld [vmem:[#allocation5 + $0xe8] sm:$0xff]  ;;  %v2882_v13 = vld [vmem:[#allocation5 + $0xd8] sm:$0xff] }
 0x726   :  { %v6194_v41 = vpack.c.bf16 %v2884_v62, %v2880_v21 }
 0x727   :  { %2852 = vst [vmem:[#allocation8 + $0x28] sm:$0xff] %v2850_v49  ;;  %3048 = vmatmul.mubr.f32.vlgmr.msra.gmra.mrb[12].mxu0 %v2850_v49  ;;  %3119 = vmatmul.mubr.f32.vlgmr.msra.gmra.mrb[12].mxu1 %v2850_v49  ;;  %v2886_v49 = vld [vmem:[#allocation5 + $0xf8] sm:$0xff] }
 0x728   :  { %4662 = vmatpush1.bf16.msra.mxu0 %v6164_v28  ;;  %4694 = vmatpush1.bf16.msra.mxu1 %v6166_v16  ;;  %6516 = vst [vmem:[#allocation20_spill] sm:$0xff] %v6194_v41  ;;  %v6196_v15 = vpack.c.bf16 %v2886_v49, %v2882_v13  ;;  %v2889_v13 = vld [vmem:[#allocation5 + $0x110] sm:$0xff] }
 0x729   :  { %4664 = vmatprep.subr.bf16.mxu0 %v6168_v43  ;;  %4696 = vmatprep.subr.bf16.mxu1 %v6170_v20  ;;  %v2888_v20 = vld [vmem:[#allocation5 + $0x108] sm:$0xff]  ;;  %v2890_v43 = vld [vmem:[#allocation5 + $0x118] sm:$0xff]  ;;  %v2893_v49 = vld [vmem:[#allocation5 + $0x130] sm:$0xff] }
 0x72a   :  { %3189 = vmatprep.mubr.f32.mxu0 %v6433_v45  ;;  %3260 = vmatprep.mubr.f32.mxu1 %v6433_v45  ;;  %6517 = vst [vmem:[#allocation21_spill] sm:$0xff] %v6196_v15  ;;  %v6214_v60 = vpack.c.bf16 %v2893_v49, %v2889_v13  ;;  %v2903_v13 = vld [vmem:[#allocation5 + $0x180] sm:$0xff] }
 0x72b   :  { %v2907_v49 = vld [vmem:[#allocation5 + $0x1a0] sm:$0xff] }
 0x72c   :  { %4666 = vmatpush1.bf16.msra.mxu0 %v6174_v2  ;;  %4698 = vmatpush1.bf16.msra.mxu1 %v6176_v56  ;;  %v2892_v2 = vld [vmem:[#allocation5 + $0x128] sm:$0xff]  ;;  %v2894_v56 = vld [vmem:[#allocation5 + $0x138] sm:$0xff]  ;;  %6523 = vst [vmem:[#allocation27_spill] sm:$0xff] %v6214_v60  ;;  %v6236_v42 = vpack.c.bf16 %v2907_v49, %v2903_v13 }
 0x72d   :  { %4668 = vmatprep.subr.bf16.mxu0 %v6180_v61  ;;  %4700 = vmatprep.subr.bf16.mxu1 %v6182_v18  ;;  %v6206_v21 = vpack.c.bf16 %v2892_v2, %v2888_v20  ;;  %v6208_v62 = vpack.c.bf16 %v2894_v56, %v2890_v43  ;;  %v2896_v18 = vld [vmem:[#allocation5 + $0x148] sm:$0xff]  ;;  %v2898_v61 = vld [vmem:[#allocation5 + $0x158] sm:$0xff]  ;;  %v2897_v2 = vld [vmem:[#allocation5 + $0x150] sm:$0xff] }
 0x72e   :  { %v2901_v56 = vld [vmem:[#allocation5 + $0x170] sm:$0xff] }
 0x72f   :  { %6520 = vst [vmem:[#allocation24_spill] sm:$0xff] %v6206_v21  ;;  %6521 = vst [vmem:[#allocation25_spill] sm:$0xff] %v6208_v62  ;;  %v6226_v39 = vpack.c.bf16 %v2901_v56, %v2897_v2  ;;  %v2911_v2 = vld [vmem:[#allocation5 + $0x1c0] sm:$0xff]  ;;  %v2917_v56 = vld [vmem:[#allocation5 + $0x1f0] sm:$0xff] }
 0x730   :  { %4670 = vmatpush1.bf16.msra.mxu0 %v6188_v50  ;;  %4702 = vmatpush1.bf16.msra.mxu1 %v6190_v14  ;;  %v2900_v50 = vld [vmem:[#allocation5 + $0x168] sm:$0xff]  ;;  %v2902_v14 = vld [vmem:[#allocation5 + $0x178] sm:$0xff] }
 0x731   :  { %4672 = vmatprep.subr.bf16.mxu0 %v6194_v41  ;;  %4704 = vmatprep.subr.bf16.mxu1 %v6196_v15  ;;  %v6218_v43 = vpack.c.bf16 %v2900_v50, %v2896_v18  ;;  %v6220_v20 = vpack.c.bf16 %v2902_v14, %v2898_v61  ;;  %v2904_v15 = vld [vmem:[#allocation5 + $0x188] sm:$0xff]  ;;  %v2906_v41 = vld [vmem:[#allocation5 + $0x198] sm:$0xff]  ;;  %v2905_v50 = vld [vmem:[#allocation5 + $0x190] sm:$0xff] }
 0x732   :  { %v2909_v14 = vld [vmem:[#allocation5 + $0x1b0] sm:$0xff] }
 0x733   :  { %v6238_v52 = vpack.c.bf16 %v2909_v14, %v2905_v50  ;;  %v6533_v50 = vld [vmem:[#allocation21_spill] sm:$0xff]  ;;  %v6534_v14 = vld [vmem:[#allocation22_spill] sm:$0xff] }
 0x734   :  { %4674 = vmatpush1.bf16.msra.mxu0 %v6200_v51  ;;  %4706 = vmatpush1.bf16.msra.mxu1 %v6202_v29  ;;  %v2908_v51 = vld [vmem:[#allocation5 + $0x1a8] sm:$0xff]  ;;  %v2910_v29 = vld [vmem:[#allocation5 + $0x1b8] sm:$0xff] }
 0x735   :  { %4676 = vmatprep.subr.bf16.mxu0 %v6206_v21  ;;  %4708 = vmatprep.subr.bf16.mxu1 %v6208_v62  ;;  %v6230_v61 = vpack.c.bf16 %v2908_v51, %v2904_v15  ;;  %v6232_v18 = vpack.c.bf16 %v2910_v29, %v2906_v41  ;;  %v2912_v62 = vld [vmem:[#allocation5 + $0x1c8] sm:$0xff]  ;;  %v2914_v21 = vld [vmem:[#allocation5 + $0x1d8] sm:$0xff]  ;;  %v2915_v51 = vld [vmem:[#allocation5 + $0x1e0] sm:$0xff] }
 0x736   :  { %v2913_v29 = vld [vmem:[#allocation5 + $0x1d0] sm:$0xff]  ;;  %v6248_v13 = vpack.c.bf16 %v2915_v51, %v2911_v2  ;;  %v6535_v2 = vld [vmem:[#allocation23_spill] sm:$0xff]  ;;  %v6537_v51 = vld [vmem:[#allocation25_spill] sm:$0xff] }
 0x737   :  { %v6250_v49 = vpack.c.bf16 %v2917_v56, %v2913_v29  ;;  %v6538_v29 = vld [vmem:[#allocation26_spill] sm:$0xff]  ;;  %v6539_v56 = vld [vmem:[#allocation27_spill] sm:$0xff] }
 0x738   :  { %4678 = vmatpush1.bf16.msra.mxu0 %v6212_v55  ;;  %4710 = vmatpush1.bf16.msra.mxu1 %v6214_v60  ;;  %v2916_v55 = vld [vmem:[#allocation5 + $0x1e8] sm:$0xff]  ;;  %v2918_v60 = vld [vmem:[#allocation5 + $0x1f8] sm:$0xff] }
 0x739   :  { %4680 = vmatprep.subr.bf16.mxu0 %v6218_v43  ;;  %4712 = vmatprep.subr.bf16.mxu1 %v6220_v20  ;;  %v6242_v41 = vpack.c.bf16 %v2916_v55, %v2912_v62  ;;  %v6244_v15 = vpack.c.bf16 %v2918_v60, %v2914_v21  ;;  %v2854_v21 = vld [vmem:[#allocation2 + $0x30] sm:$0xff]  ;;  %v6528_v62 = vld [vmem:[#allocation16_spill] sm:$0xff]  ;;  %v6529_v55 = vld [vmem:[#allocation17_spill] sm:$0xff] }
 0x73a   :  { %v6530_v60 = vld [vmem:[#allocation18_spill] sm:$0xff] }
 0x73c   :  { %4682 = vmatpush1.bf16.msra.mxu0 %v6224_v25  ;;  %4714 = vmatpush1.bf16.msra.mxu1 %v6226_v39 }
 0x73d   :  { %4684 = vmatprep.subr.bf16.mxu0 %v6230_v61  ;;  %4716 = vmatprep.subr.bf16.mxu1 %v6232_v18 }
 0x740   :  { %4686 = vmatpush1.bf16.msra.mxu0 %v6236_v42  ;;  %4718 = vmatpush1.bf16.msra.mxu1 %v6238_v52 }
 0x741   :  { %4688 = vmatprep.subr.bf16.mxu0 %v6242_v41  ;;  %4720 = vmatprep.subr.bf16.mxu1 %v6244_v15 }
 0x744   :  { %4690 = vmatpush1.bf16.msra.mxu0 %v6248_v13  ;;  %4722 = vmatpush1.bf16.msra.mxu1 %v6250_v49 }
 0x745   :  { %4724 = vmatprep.subr.bf16.mxu0 %v6051_v10  ;;  %4756 = vmatprep.subr.bf16.mxu1 %v6053_v63  ;;  %v3267_v10 = vld [vmem:[%s6361_s3] sm:$0xf] }
 0x746   :  { %v3272_v63 = vrot.slane %v3267_v10, %v5427_v9 }
 0x747   :  { %3190 = vmatmul.mubr.f32.vlgmr.msra.gmra.mrb[12].mxu0 %v2854_v21  ;;  %3261 = vmatmul.mubr.f32.vlgmr.msra.gmra.mrb[12].mxu1 %v2854_v21 }
 0x748   :  { %4726 = vmatpush1.bf16.msra.mxu0 %v6055_v58  ;;  %4758 = vmatpush1.bf16.msra.mxu1 %v6058_v44  ;;  %v3276_v58 = vrot.slane %v3267_v10, %v5432_v17 }
 0x749   :  { %4728 = vmatprep.subr.bf16.mxu0 %v6063_v4  ;;  %4760 = vmatprep.subr.bf16.mxu1 %v6065_v24 }
 0x74a   :  { %3513 = vmatprep.mubr.f32.mxu0 %v6433_v45  ;;  %3584 = vmatprep.mubr.f32.mxu1 %v6433_v45 }
 0x74c   :  { %4730 = vmatpush1.bf16.msra.mxu0 %v6067_v3  ;;  %4762 = vmatpush1.bf16.msra.mxu1 %v6070_v11 }
 0x74d   :  { %4732 = vmatprep.subr.bf16.mxu0 %v6075_v5  ;;  %4764 = vmatprep.subr.bf16.mxu1 %v6077_v8 }
 0x750   :  { %4734 = vmatpush1.bf16.msra.mxu0 %v6079_v32  ;;  %4766 = vmatpush1.bf16.msra.mxu1 %v6082_v30  ;;  %v3280_v30 = vrot.slane %v3267_v10, %v5436_v27 }
 0x751   :  { %4736 = vmatprep.subr.bf16.mxu0 %v6087_v38  ;;  %4768 = vmatprep.subr.bf16.mxu1 %v6089_v36  ;;  %v3284_v38 = vrot.slane %v3267_v10, %v5439_v57 }
 0x754   :  { %4738 = vmatpush1.bf16.msra.mxu0 %v6091_v12  ;;  %4770 = vmatpush1.bf16.msra.mxu1 %v6094_v23 }
 0x755   :  { %4740 = vmatprep.subr.bf16.mxu0 %v6099_v54  ;;  %4772 = vmatprep.subr.bf16.mxu1 %v6101_v7 }
 0x758   :  { %4742 = vmatpush1.bf16.msra.mxu0 %v6103_v53  ;;  %4774 = vmatpush1.bf16.msra.mxu1 %v6106_v47 }
 0x759   :  { %4744 = vmatprep.subr.bf16.mxu0 %v6111_v22  ;;  %4776 = vmatprep.subr.bf16.mxu1 %v6113_v6 }
 0x75c   :  { %4746 = vmatpush1.bf16.msra.mxu0 %v6115_v0  ;;  %4778 = vmatpush1.bf16.msra.mxu1 %v6118_v37 }
 0x75d   :  { %4748 = vmatprep.subr.bf16.mxu0 %v6122_v46  ;;  %4780 = vmatprep.subr.bf16.mxu1 %v6125_v1 }
 0x760   :  { %4750 = vmatpush1.bf16.msra.mxu0 %v6127_v48  ;;  %4782 = vmatpush1.bf16.msra.mxu1 %v6130_v34 }
 0x761   :  { %4752 = vmatprep.subr.bf16.mxu0 %v6133_v19  ;;  %4784 = vmatprep.subr.bf16.mxu1 %v6135_v40 }
 0x764   :  { %4754 = vmatpush1.bf16.msra.mxu0 %v6138_v26  ;;  %4786 = vmatpush1.bf16.msra.mxu1 %v6142_v35  ;;  %v6524_v35 = vld [vmem:[#allocation12_spill] sm:$0xff] }
 0x765   :  { %4788 = vmatprep.subr.bf16.mxu0 %v6144_v31  ;;  %4820 = vmatprep.subr.bf16.mxu1 %v6147_v33  ;;  %v6525_v31 = vld [vmem:[#allocation13_spill] sm:$0xff]  ;;  %v6526_v33 = vld [vmem:[#allocation14_spill] sm:$0xff] }
 0x81a   :  { %v3191_v44 = vpop.f32.mrb[12].mxu0  ;;  %v3262_v4 = vpop.f32.mrb[12].mxu1 }
 0x81b   :  { %v3289_v24 = vadd.f32 %v3272_v63, %v3191_v44  ;;  %v3193_v3 = vpop.f32.mrb[13].mxu0  ;;  %v3264_v11 = vpop.f32.mrb[13].mxu1  ;;  %v3291_v36 = vadd.f32 %v3280_v30, %v3262_v4 }
 0x81c   :  { %v3290_v5 = vadd.f32 %v3276_v58, %v3193_v3  ;;  %v3292_v12 = vadd.f32 %v3284_v38, %v3264_v11 }
 0x81d   :  { %v3821_v8 = vmul.f32 -1.442695, %v3289_v24  ;;  %v3823_v23 = vmul.f32 -1.442695, %v3291_v36 }
 0x81e   :  { %v3822_v32 = vmul.f32 -1.442695, %v3290_v5 }
 0x81f   :  { %4988 = vpow2.f32 %v3821_v8 }
 0x820   :  { %4990 = vpow2.f32 %v3822_v32 }
 0x821   :  { %4992 = vtanh.f32 %v3292_v12 }
 0x822   :  { %4994 = vpow2.f32 %v3823_v23 }
 0x829   :  { %v4989_v54 = vpop.eup %4988 }
 0x82a   :  { %v3302_v7 = vadd.f32 1.0, %v4989_v54  ;;  %v4991_v53 = vpop.eup %4990 }
 0x82b   :  { %v3303_v47 = vadd.f32 1.0, %v4991_v53  ;;  %v4993_v22 = vpop.eup %4992 }
 0x82c   :  { %4996 = vrcp.f32 %v3302_v7  ;;  %v4995_v6 = vpop.eup %4994 }
 0x82d   :  { %4998 = vrcp.f32 %v3303_v47  ;;  %v3304_v1 = vadd.f32 1.0, %v4995_v6 }
 0x82f   :  { %5000 = vrcp.f32 %v3304_v1 }
 0x836   :  { %v4997_v0 = vpop.eup %4996 }
 0x837   :  { %v3313_v37 = vmul.f32 %v4997_v0, %v4993_v22  ;;  %v4999_v46 = vpop.eup %4998 }
 0x838   :  { %v3312_v48 = vmul.f32 %v4999_v46, %v6161_v59  ;;  %v6527_v59 = vld [vmem:[#allocation15_spill] sm:$0xff] }
 0x839   :  { %v5001_v19 = vpop.eup %5000 }
 0x83a   :  { %v6300_v34 = vadd.f32 %v3313_v37, %v3312_v48 }
 0x83c   :  { %5002 = vtanh.f32 %v6300_v34 }
 0x846   :  { %v5003_v40 = vpop.eup %5002 }
 0x847   :  { %v3316_v26 = vmul.f32 %v5003_v40, %v5001_v19 }
 0x849   :  { %3318 = vst [vmem:[#allocation8 + $0x30] sm:$0xff] %v3316_v26  ;;  %3514 = vmatmul.mubr.f32.vlgmr.msra.gmra.mrb[14].mxu0 %v3316_v26  ;;  %3585 = vmatmul.mubr.f32.vlgmr.msra.gmra.mrb[14].mxu1 %v3316_v26 }
 0x84a   :  { %4790 = vmatpush1.bf16.msra.mxu0 %v6164_v28  ;;  %4822 = vmatpush1.bf16.msra.mxu1 %v6166_v16  ;;  %v6531_v28 = vld [vmem:[#allocation19_spill] sm:$0xff]  ;;  %v6532_v16 = vld [vmem:[#allocation20_spill] sm:$0xff] }
 0x84b   :  { %4792 = vmatprep.subr.bf16.mxu0 %v6524_v35  ;;  %4824 = vmatprep.subr.bf16.mxu1 %v6525_v31 }
 0x84c   :  { %3655 = vmatprep.mubr.f32.mxu0 %v6433_v45  ;;  %3726 = vmatprep.mubr.f32.mxu1 %v6433_v45  ;;  %v6536_v45 = vld [vmem:[#allocation24_spill] sm:$0xff] }
 0x84e   :  { %4794 = vmatpush1.bf16.msra.mxu0 %v6526_v33  ;;  %4826 = vmatpush1.bf16.msra.mxu1 %v6527_v59 }
 0x84f   :  { %4796 = vmatprep.subr.bf16.mxu0 %v6528_v62  ;;  %4828 = vmatprep.subr.bf16.mxu1 %v6529_v55 }
 0x852   :  { %4798 = vmatpush1.bf16.msra.mxu0 %v6530_v60  ;;  %4830 = vmatpush1.bf16.msra.mxu1 %v6531_v28 }
 0x853   :  { %4800 = vmatprep.subr.bf16.mxu0 %v6532_v16  ;;  %4832 = vmatprep.subr.bf16.mxu1 %v6533_v50 }
 0x856   :  { %4802 = vmatpush1.bf16.msra.mxu0 %v6534_v14  ;;  %4834 = vmatpush1.bf16.msra.mxu1 %v6535_v2 }
 0x857   :  { %4804 = vmatprep.subr.bf16.mxu0 %v6536_v45  ;;  %4836 = vmatprep.subr.bf16.mxu1 %v6537_v51 }
 0x85a   :  { %4806 = vmatpush1.bf16.msra.mxu0 %v6538_v29  ;;  %4838 = vmatpush1.bf16.msra.mxu1 %v6539_v56 }
 0x85b   :  { %4808 = vmatprep.subr.bf16.mxu0 %v6218_v43  ;;  %4840 = vmatprep.subr.bf16.mxu1 %v6220_v20  ;;  %v3320_v43 = vld [vmem:[#allocation2 + $0x38] sm:$0xff]  ;;  %v3733_v20 = vld [vmem:[%s6361_s3] sm:$0xf]  ;;  %s5122_s3 = smov [#allocation8]  }
 0x85c   :  { %v3750_v10 = vrot.slane %v3733_v20, %v5439_v57  ;;  %s3790_s17 = sshll.u32 %s5122_s3, 4  ;;  %s3791_s17 = int_to_ptr.vmem [resolvable:$true] %s3790_s17 }
 0x85d   :  { %s5086_s18 = scalar_lea.vmem %s3791_s17, 1024  ;;  %p5091_p11 = scmp.lt.s32.totalorder %s3791_s17, %s3791_s17 }
 0x85e   :  { %4810 = vmatpush1.bf16.msra.mxu0 %v6224_v25  ;;  %4842 = vmatpush1.bf16.msra.mxu1 %v6226_v39  ;;  %v3738_v25 = vrot.slane %v3733_v20, %v5427_v9  ;;  %v3742_v39 = vrot.slane %v3733_v20, %v5432_v17  ;;  %p5087_p10 = scmp.ne.s32.totalorder %s3791_s17, %s5086_s18  ;;  %p5092_p12 = scmp.lt.s32.totalorder %s5086_s18, %s5086_s18 }
 0x85f   :  { %4812 = vmatprep.subr.bf16.mxu0 %v6230_v61  ;;  %4844 = vmatprep.subr.bf16.mxu1 %v6232_v18 }
 0x860   :  { %p5093_p13 = por %p5092_p12, %p5091_p11 }
 0x862   :  { %4814 = vmatpush1.bf16.msra.mxu0 %v6236_v42  ;;  %4846 = vmatpush1.bf16.msra.mxu1 %v6238_v52  ;;  %p5094_p0 = pnand %p5093_p13, %p5087_p10 }
 0x863   :  { %4816 = vmatprep.subr.bf16.mxu0 %v6242_v41  ;;  %4848 = vmatprep.subr.bf16.mxu1 %v6244_v15 }
 0x866   :  { %4818 = vmatpush1.bf16.msra.mxu0 %v6248_v13  ;;  %4850 = vmatpush1.bf16.msra.mxu1 %v6250_v49  ;;  %v3746_v49 = vrot.slane %v3733_v20, %v5436_v27 }
 0x869   :  { %3656 = vmatmul.mubr.f32.vlgmr.msra.gmra.mrb[14].mxu0 %v3320_v43  ;;  %3727 = vmatmul.mubr.f32.vlgmr.msra.gmra.mrb[14].mxu1 %v3320_v43 }
 0x93c   :  { %v3657_v61 = vpop.f32.mrb[14].mxu0  ;;  %v3728_v18 = vpop.f32.mrb[14].mxu1 }
 0x93d   :  { %v3755_v42 = vadd.f32 %v3738_v25, %v3657_v61  ;;  %v3659_v52 = vpop.f32.mrb[15].mxu0  ;;  %v3730_v41 = vpop.f32.mrb[15].mxu1  ;;  %v3757_v63 = vadd.f32 %v3746_v49, %v3728_v18 }
 0x93e   :  { %v3756_v15 = vadd.f32 %v3742_v39, %v3659_v52  ;;  %v3758_v58 = vadd.f32 %v3750_v10, %v3730_v41 }
 0x93f   :  { %v3824_v13 = vmul.f32 -1.442695, %v3755_v42  ;;  %v3826_v44 = vmul.f32 -1.442695, %v3757_v63 }
 0x940   :  { %v3825_v21 = vmul.f32 -1.442695, %v3756_v15 }
 0x941   :  { %5004 = vpow2.f32 %v3824_v13 }
 0x942   :  { %5006 = vpow2.f32 %v3825_v21 }
 0x943   :  { %5008 = vtanh.f32 %v3758_v58 }
 0x944   :  { %5010 = vpow2.f32 %v3826_v44 }
 0x94b   :  { %v5005_v9 = vpop.eup %5004 }
 0x94c   :  { %v3768_v4 = vadd.f32 1.0, %v5005_v9  ;;  %v5007_v17 = vpop.eup %5006 }
 0x94d   :  { %v3769_v24 = vadd.f32 1.0, %v5007_v17  ;;  %v5009_v3 = vpop.eup %5008 }
 0x94e   :  { %5012 = vrcp.f32 %v3768_v4  ;;  %v5011_v11 = vpop.eup %5010 }
 0x94f   :  { %5014 = vrcp.f32 %v3769_v24  ;;  %v3770_v27 = vadd.f32 1.0, %v5011_v11 }
 0x951   :  { %5016 = vrcp.f32 %v3770_v27 }
 0x958   :  { %v5013_v5 = vpop.eup %5012 }
 0x959   :  { %v3779_v8 = vmul.f32 %v5013_v5, %v5009_v3  ;;  %v5015_v32 = vpop.eup %5014 }
 0x95a   :  { %v3778_v30 = vmul.f32 %v5015_v32, %v6300_v34 }
 0x95b   :  { %v5017_v38 = vpop.eup %5016 }
 0x95c   :  { %v3780_v57 = vadd.f32 %v3779_v8, %v3778_v30 }
 0x95e   :  { %5018 = vtanh.f32 %v3780_v57 }
 0x968   :  { %v5019_v36 = vpop.eup %5018 }
 0x969   :  { %v3782_v12 = vmul.f32 %v5019_v36, %v5017_v38 }
 0x96b   :  { %3784 = vst [vmem:[#allocation8 + $0x38] sm:$0xff] %v3782_v12 }
 0x96c   :  { %5097 = shalt.err (!%p5094_p0)
}
 0x96d   :  { %s5098_s21 = scalar_lea.hbm %s6362_s4, 1024 }
 0x96e   :  { %p5099_p1 = scmp.ne.s32.totalorder %s6362_s4, %s5098_s21  ;;  %p5102_p2 = scmp.lt.u32.totalorder %s5098_s21, %s6362_s4 }
 0x970   :  { %p5104_p3 = pnand %p5102_p2, %p5099_p1 }
 0x972   :  { %5107 = shalt.err (!%p5104_p3)
}
 0x973   :  { %3796 = dma.vmem_to_hbm [thread:$0]  %s3791_s17, 1024, %s6362_s4, [#allocation4], %s5118_s1, %s5118_s1, %s5119_s13  }
 0x974   :  { %5112 = dma.done.wait [#allocation4], 1024  }
 0x975   :  { %5113 = vsyncadd [#allocation4], 4294966272 }
 0x976   :  { %3800 = vsyncpa [#allocation3], 1 }
 0x977   :  { %3801 = vsyncpa [#allocation6], 1 }
 0x978   :  { %3802 = vsyncpa [#allocation4], 1 }

</bundles_post_ra>
